<compile_context>
chip_gen: v5e
topology: v5e:2x2
jax: 0.10.0
libtpu: 0.0.40
codegen_flags: <defaults>
</compile_context>

<pallas_src>
import math
from functools import partial

import jax
import jax.numpy as jnp
from jax.experimental import pallas as pl
from jax.experimental.pallas import tpu as pltpu  # noqa: F401  (TPU backend / memory spaces)

# ----------------------------- config ---------------------------------------
B, T = 2, 8            # batch, time
IDIM = 16              # input feature dim
ATT_DIM = 64           # attention_dim
HEADS = 4              # attention_heads
HEAD_DIM = ATT_DIM // HEADS
FF_DIM = 128           # linear_units
NUM_BLOCKS = 2         # num_blocks


# ----------------------------- fused Pallas kernel --------------------------
def _layernorm(x, eps):
    mu = jnp.mean(x, axis=-1, keepdims=True)
    xc = x - mu
    var = jnp.mean(xc * xc, axis=-1, keepdims=True)
    return xc * jax.lax.rsqrt(var + eps)


def _cond_encoder_kernel(
    xs_ref, mask_ref, cond_ref, pe_ref,
    ew_ref, eb_ref, elng_ref, elnb_ref,
    nm_ew_ref, nm_eb_ref, nm_lw_ref, nm_lb_ref,
    nf_ew_ref, nf_eb_ref, nf_lw_ref, nf_lb_ref,
    wqkv_ref, bqkv_ref, wo_ref, bo_ref,
    w1_ref, b1_ref, w2_ref, b2_ref,
    ang_ref, anb_ref,
    o_ref,
    *, num_blocks, heads,
):
    f32 = jnp.float32
    Bq = cond_ref.shape[0]
    Tq = pe_ref.shape[0]
    D = pe_ref.shape[1]
    BT = xs_ref.shape[0]
    dh = D // heads
    neg = jnp.finfo(f32).min
    inv_sqrt_dh = 1.0 / math.sqrt(dh)

    # ---- embed: Linear -> LayerNorm(eps=1e-5, affine) -> Dropout(id) -> abs pos enc ----
    x = jnp.dot(xs_ref[...].astype(f32), ew_ref[...], preferred_element_type=f32) + eb_ref[...]
    x = _layernorm(x, 1e-5) * elng_ref[...] + elnb_ref[...]
    x = (x * math.sqrt(D)).reshape(Bq, Tq, D) + pe_ref[...][None, :, :]
    x = x.reshape(BT, D)

    cond = cond_ref[...].astype(f32)            # (B, D)   conditioning vector
    mbool = mask_ref[...][:, None, :] > 0.0     # (B, 1, T) key mask (same for all heads)

    def adaln(x2, emb_w, emb_b, lin_w, lin_b):
        # AdaLayerNorm: LN(x, no affine) * (1 + scale) + shift; scale/shift from cond
        h = jnp.dot(cond, emb_w, preferred_element_type=f32) + emb_b
        h = h * jax.nn.sigmoid(h)                                     # SiLU
        e = jnp.dot(h, lin_w, preferred_element_type=f32) + lin_b     # (B, 2D)
        scale, shift = e[:, :D], e[:, D:]
        xn = _layernorm(x2, 1e-5).reshape(Bq, Tq, D)
        y = xn * (1.0 + scale[:, None, :]) + shift[:, None, :]
        return y.reshape(BT, D)

    for l in range(num_blocks):
        # ---------------- MHA block (normalize_before=True, concat_after=False) ----------
        xn = adaln(x, nm_ew_ref[l], nm_eb_ref[l], nm_lw_ref[l], nm_lb_ref[l])
        # fused QKV projection: (BT, D) @ (D, 3D) -> lane-dense (BT, 192)
        qkv = jnp.dot(xn, wqkv_ref[l], preferred_element_type=f32) + bqkv_ref[l]
        qkv = qkv.reshape(Bq, Tq, 3 * D)
        head_outs = []
        for h in range(heads):  # heads are contiguous 16-lane groups
            qh = qkv[:, :, h * dh:(h + 1) * dh]
            kh = qkv[:, :, D + h * dh:D + (h + 1) * dh]
            vh = qkv[:, :, 2 * D + h * dh:2 * D + (h + 1) * dh]
            s = jnp.einsum('bqd,bkd->bqk', qh, kh,
                           preferred_element_type=f32) * inv_sqrt_dh   # (B, T, T)
            s = jnp.where(mbool, s, neg)
            s = s - jnp.max(s, axis=-1, keepdims=True)
            e = jnp.exp(s)
            p = e * pl.reciprocal(jnp.sum(e, axis=-1, keepdims=True), approx=True)
            p = jnp.where(mbool, p, 0.0)   # zero fully-masked rows (matches reference)
            head_outs.append(jnp.einsum('bqk,bkd->bqd', p, vh,
                                        preferred_element_type=f32))
        attn = jnp.concatenate(head_outs, axis=-1).reshape(BT, D)
        # output projection + residual (fused epilogue)
        x = x + jnp.dot(attn, wo_ref[l], preferred_element_type=f32) + bo_ref[l]

        # ---------------- FF block (ff_scale = 1.0, macaron off) -------------------------
        xn = adaln(x, nf_ew_ref[l], nf_eb_ref[l], nf_lw_ref[l], nf_lb_ref[l])
        h1 = jnp.dot(xn, w1_ref[l], preferred_element_type=f32) + b1_ref[l]
        h1 = h1 * jax.nn.sigmoid(h1)                                   # swish / SiLU
        x = x + jnp.dot(h1, w2_ref[l], preferred_element_type=f32) + b2_ref[l]

    # ---- after_norm: LayerNorm(eps=1e-12, affine) ----
    o_ref[...] = (_layernorm(x, 1e-12) * ang_ref[...] + anb_ref[...]).astype(o_ref.dtype)


# ----------------------------- parameters -----------------------------------
def make_params(key):
    keys = iter(jax.random.split(key, 256))

    def lin(fan_in, fan_out):
        w = jax.random.normal(next(keys), (fan_in, fan_out), jnp.float32) * 0.02
        b = jax.random.normal(next(keys), (fan_out,), jnp.float32) * 0.02
        return w, b

    D = ATT_DIM
    params = {}
    w_in, b_in = lin(IDIM, D)
    params["embed"] = dict(w=w_in, b=b_in,
                           ln_g=jnp.ones((D,), jnp.float32),
                           ln_b=jnp.zeros((D,), jnp.float32))
    layers = []
    for _ in range(NUM_BLOCKS):
        lp = {}
        for name in ("norm_mha", "norm_ff"):  # AdaLayerNorm params
            ew, eb = lin(D, D)
            lw, lb = lin(D, 2 * D)
            lp[name] = dict(emb_w=ew, emb_b=eb, lin_w=lw, lin_b=lb)
        wq, bq = lin(D, D)
        wk, bk = lin(D, D)
        wv, bv = lin(D, D)
        wo, bo = lin(D, D)
        lp["attn"] = dict(wq=wq, bq=bq, wk=wk, bk=bk, wv=wv, bv=bv, wo=wo, bo=bo)
        w1, b1 = lin(D, FF_DIM)
        w2, b2 = lin(FF_DIM, D)
        lp["ff"] = dict(w1=w1, b1=b1, w2=w2, b2=b2)
        layers.append(lp)
    params["layers"] = layers
    params["after_norm"] = dict(g=jnp.ones((D,), jnp.float32),
                                b=jnp.zeros((D,), jnp.float32))
    return params


def pack_params(params):
    """Stack per-layer weights along a leading layer axis and fuse QKV for the kernel."""
    D = ATT_DIM

    def stack(fn):
        return jnp.stack([fn(lp) for lp in params["layers"]], axis=0)

    return dict(
        ew=params["embed"]["w"],
        eb=params["embed"]["b"].reshape(1, D),
        elng=params["embed"]["ln_g"].reshape(1, D),
        elnb=params["embed"]["ln_b"].reshape(1, D),
        nm_ew=stack(lambda lp: lp["norm_mha"]["emb_w"]),
        nm_eb=stack(lambda lp: lp["norm_mha"]["emb_b"].reshape(1, D)),
        nm_lw=stack(lambda lp: lp["norm_mha"]["lin_w"]),
        nm_lb=stack(lambda lp: lp["norm_mha"]["lin_b"].reshape(1, 2 * D)),
        nf_ew=stack(lambda lp: lp["norm_ff"]["emb_w"]),
        nf_eb=stack(lambda lp: lp["norm_ff"]["emb_b"].reshape(1, D)),
        nf_lw=stack(lambda lp: lp["norm_ff"]["lin_w"]),
        nf_lb=stack(lambda lp: lp["norm_ff"]["lin_b"].reshape(1, 2 * D)),
        wqkv=stack(lambda lp: jnp.concatenate(
            [lp["attn"]["wq"], lp["attn"]["wk"], lp["attn"]["wv"]], axis=1)),
        bqkv=stack(lambda lp: jnp.concatenate(
            [lp["attn"]["bq"], lp["attn"]["bk"], lp["attn"]["bv"]]).reshape(1, 3 * D)),
        wo=stack(lambda lp: lp["attn"]["wo"]),
        bo=stack(lambda lp: lp["attn"]["bo"].reshape(1, D)),
        w1=stack(lambda lp: lp["ff"]["w1"]),
        b1=stack(lambda lp: lp["ff"]["b1"].reshape(1, FF_DIM)),
        w2=stack(lambda lp: lp["ff"]["w2"]),
        b2=stack(lambda lp: lp["ff"]["b2"].reshape(1, D)),
        ang=params["after_norm"]["g"].reshape(1, D),
        anb=params["after_norm"]["b"].reshape(1, D),
    )


def positional_encoding(t, d):
    pos = jnp.arange(t, dtype=jnp.float32)[:, None]
    div = jnp.exp(jnp.arange(0, d, 2, dtype=jnp.float32) * -(math.log(10000.0) / d))
    pe = jnp.zeros((t, d), jnp.float32)
    pe = pe.at[:, 0::2].set(jnp.sin(pos * div))
    pe = pe.at[:, 1::2].set(jnp.cos(pos * div))
    return pe  # (T, D)


# ----------------------------- forward (Pallas, fully fused) -----------------
def cond_encoder_forward(packed, xs, masks, cond):
    Bx, Tx, _ = xs.shape
    D = ATT_DIM
    pe = positional_encoding(Tx, D)                       # (T, D), trivial constant
    out2 = pl.pallas_call(
        partial(_cond_encoder_kernel, num_blocks=NUM_BLOCKS, heads=HEADS),
        out_shape=jax.ShapeDtypeStruct((Bx * Tx, D), jnp.float32),
        # no grid: single invocation; every operand is mapped whole into VMEM
    )(
        xs.reshape(Bx * Tx, IDIM).astype(jnp.float32),
        masks.reshape(Bx, Tx).astype(jnp.float32),
        cond.reshape(Bx, D).astype(jnp.float32),
        pe,
        packed["ew"], packed["eb"], packed["elng"], packed["elnb"],
        packed["nm_ew"], packed["nm_eb"], packed["nm_lw"], packed["nm_lb"],
        packed["nf_ew"], packed["nf_eb"], packed["nf_lw"], packed["nf_lb"],
        packed["wqkv"], packed["bqkv"], packed["wo"], packed["bo"],
        packed["w1"], packed["b1"], packed["w2"], packed["b2"],
        packed["ang"], packed["anb"],
    )
    return out2.reshape(Bx, Tx, D)


# ----------------------------- pure-JAX reference ----------------------------
def _ref_ln(x, g, b, eps):
    mu = jnp.mean(x, -1, keepdims=True)
    var = jnp.mean((x - mu) ** 2, -1, keepdims=True)
    return (x - mu) * jax.lax.rsqrt(var + eps) * g + b


def _ref_adaln(p, x, cond):
    h = cond @ p["emb_w"] + p["emb_b"]
    h = h * jax.nn.sigmoid(h)
    emb = h @ p["lin_w"] + p["lin_b"]
    D = x.shape[-1]
    scale, shift = emb[..., :D], emb[..., D:]
    xn = _ref_ln(x, 1.0, 0.0, 1e-5)
    return xn * (1.0 + scale) + shift


def _ref_mha(p, x, masks):
    Bx, Tx, D = x.shape
    H, dh = HEADS, HEAD_DIM
    q = (x @ p["wq"] + p["bq"]).reshape(Bx, Tx, H, dh).transpose(0, 2, 1, 3)
    k = (x @ p["wk"] + p["bk"]).reshape(Bx, Tx, H, dh).transpose(0, 2, 1, 3)
    v = (x @ p["wv"] + p["bv"]).reshape(Bx, Tx, H, dh).transpose(0, 2, 1, 3)
    s = jnp.einsum("bhqd,bhkd->bhqk", q, k) / math.sqrt(dh)
    m = masks[:, None, :, :] > 0                     # (B,1,1,T)
    s = jnp.where(m, s, jnp.finfo(jnp.float32).min)
    p_att = jax.nn.softmax(s, axis=-1)
    p_att = jnp.where(m, p_att, 0.0)
    o = jnp.einsum("bhqk,bhkd->bhqd", p_att, v)
    o = o.transpose(0, 2, 1, 3).reshape(Bx, Tx, D)
    return o @ p["wo"] + p["bo"]


def ref_forward(params, xs, masks, cond):
    D = ATT_DIM
    h = xs @ params["embed"]["w"] + params["embed"]["b"]
    h = _ref_ln(h, params["embed"]["ln_g"], params["embed"]["ln_b"], 1e-5)
    x = h * math.sqrt(D) + positional_encoding(xs.shape[1], D)[None]
    for lp in params["layers"]:
        x = x + _ref_mha(lp["attn"], _ref_adaln(lp["norm_mha"], x, cond), masks)
        xn = _ref_adaln(lp["norm_ff"], x, cond)
        hh = xn @ lp["ff"]["w1"] + lp["ff"]["b1"]
        hh = hh * jax.nn.sigmoid(hh)
        x = x + (hh @ lp["ff"]["w2"] + lp["ff"]["b2"])
    return _ref_ln(x, params["after_norm"]["g"], params["after_norm"]["b"], 1e-12)


# ----------------------------- main ------------------------------------------
if __name__ == "__main__":
    key = jax.random.PRNGKey(0)
    kp, kx, kc = jax.random.split(key, 3)
    params = make_params(kp)
    packed = pack_params(params)

    xs = jax.random.normal(kx, (B, T, IDIM), jnp.float32)
    masks = jnp.ones((B, 1, T), jnp.float32)              # (#batch, 1, time)
    cond = jax.random.normal(kc, (B, 1, ATT_DIM), jnp.float32)

    fwd = jax.jit(lambda a, m, c: cond_encoder_forward(packed, a, m, c))
    out = fwd(xs, masks, cond)
    out = jax.block_until_ready(out)

    ref = ref_forward(params, xs, masks, cond)
    assert out.shape == (B, T, ATT_DIM)
    # tolerance slightly relaxed vs pure-f32 because of approx EUP reciprocal in softmax
    assert bool(jnp.allclose(out, ref, atol=2e-3, rtol=2e-3)), "mismatch vs reference"
    print("KERNEL_OK")
</pallas_src>

<mosaic_0001>
module attributes {stable_mosaic.version = 11 : i64} {
  func.func @_cond_encoder_kernel(%arg0: memref<16x16xf32, #tpu.memory_space<vmem>>, %arg1: memref<2x8xf32, #tpu.memory_space<vmem>>, %arg2: memref<2x64xf32, #tpu.memory_space<vmem>>, %arg3: memref<8x64xf32, #tpu.memory_space<vmem>>, %arg4: memref<16x64xf32, #tpu.memory_space<vmem>>, %arg5: memref<1x64xf32, #tpu.memory_space<vmem>>, %arg6: memref<1x64xf32, #tpu.memory_space<vmem>>, %arg7: memref<1x64xf32, #tpu.memory_space<vmem>>, %arg8: memref<2x64x64xf32, #tpu.memory_space<vmem>>, %arg9: memref<2x1x64xf32, #tpu.memory_space<vmem>>, %arg10: memref<2x64x128xf32, #tpu.memory_space<vmem>>, %arg11: memref<2x1x128xf32, #tpu.memory_space<vmem>>, %arg12: memref<2x64x64xf32, #tpu.memory_space<vmem>>, %arg13: memref<2x1x64xf32, #tpu.memory_space<vmem>>, %arg14: memref<2x64x128xf32, #tpu.memory_space<vmem>>, %arg15: memref<2x1x128xf32, #tpu.memory_space<vmem>>, %arg16: memref<2x64x192xf32, #tpu.memory_space<vmem>>, %arg17: memref<2x1x192xf32, #tpu.memory_space<vmem>>, %arg18: memref<2x64x64xf32, #tpu.memory_space<vmem>>, %arg19: memref<2x1x64xf32, #tpu.memory_space<vmem>>, %arg20: memref<2x64x128xf32, #tpu.memory_space<vmem>>, %arg21: memref<2x1x128xf32, #tpu.memory_space<vmem>>, %arg22: memref<2x128x64xf32, #tpu.memory_space<vmem>>, %arg23: memref<2x1x64xf32, #tpu.memory_space<vmem>>, %arg24: memref<1x64xf32, #tpu.memory_space<vmem>>, %arg25: memref<1x64xf32, #tpu.memory_space<vmem>>, %arg26: memref<16x64xf32, #tpu.memory_space<vmem>>) attributes {dimension_semantics = [], scalar_prefetch = 0 : i64, scratch_operands = 0 : i64, tpu.core_type = #tpu.core_type<tc>} {
    %c0 = arith.constant 0 : index
    %c0_0 = arith.constant 0 : index
    %0 = vector.load %arg0[%c0, %c0_0] : memref<16x16xf32, #tpu.memory_space<vmem>>, vector<16x16xf32>
    %c0_1 = arith.constant 0 : index
    %c0_2 = arith.constant 0 : index
    %1 = vector.load %arg4[%c0_1, %c0_2] : memref<16x64xf32, #tpu.memory_space<vmem>>, vector<16x64xf32>
    %cst = arith.constant dense<0.000000e+00> : vector<16x64xf32>
    %2 = tpu.matmul %0, %1, %cst {dimension_numbers = #tpu.dot_dimension_numbers<[1], [0], [0], [1], [0, 0, 1, 1], [], []>} : vector<16x16xf32>, vector<16x64xf32>, vector<16x64xf32> -> vector<16x64xf32>
    %c0_3 = arith.constant 0 : index
    %c0_4 = arith.constant 0 : index
    %3 = vector.load %arg5[%c0_3, %c0_4] : memref<1x64xf32, #tpu.memory_space<vmem>>, vector<1x64xf32>
    %4 = vector.broadcast %3 : vector<1x64xf32> to vector<16x64xf32>
    %5 = arith.addf %2, %4 : vector<16x64xf32>
    %cst_5 = arith.constant dense<0.000000e+00> : vector<16xf32>
    %6 = vector.multi_reduction <add>, %5, %cst_5 [1] : vector<16x64xf32> to vector<16xf32>
    %7 = vector.shape_cast %6 : vector<16xf32> to vector<16x1xf32>
    %cst_6 = arith.constant 6.400000e+01 : f32
    %8 = vector.broadcast %cst_6 : f32 to vector<16x1xf32>
    %9 = arith.divf %7, %8 : vector<16x1xf32>
    %10 = vector.broadcast %9 : vector<16x1xf32> to vector<16x64xf32>
    %11 = arith.subf %5, %10 : vector<16x64xf32>
    %12 = arith.mulf %11, %11 : vector<16x64xf32>
    %cst_7 = arith.constant dense<0.000000e+00> : vector<16xf32>
    %13 = vector.multi_reduction <add>, %12, %cst_7 [1] : vector<16x64xf32> to vector<16xf32>
    %14 = vector.shape_cast %13 : vector<16xf32> to vector<16x1xf32>
    %cst_8 = arith.constant 6.400000e+01 : f32
    %15 = vector.broadcast %cst_8 : f32 to vector<16x1xf32>
    %16 = arith.divf %14, %15 : vector<16x1xf32>
    %cst_9 = arith.constant 9.99999974E-6 : f32
    %17 = vector.broadcast %cst_9 : f32 to vector<16x1xf32>
    %18 = arith.addf %16, %17 : vector<16x1xf32>
    %19 = math.rsqrt %18 : vector<16x1xf32>
    %20 = vector.broadcast %19 : vector<16x1xf32> to vector<16x64xf32>
    %21 = arith.mulf %11, %20 : vector<16x64xf32>
    %c0_10 = arith.constant 0 : index
    %c0_11 = arith.constant 0 : index
    %22 = vector.load %arg6[%c0_10, %c0_11] : memref<1x64xf32, #tpu.memory_space<vmem>>, vector<1x64xf32>
    %23 = vector.broadcast %22 : vector<1x64xf32> to vector<16x64xf32>
    %24 = arith.mulf %21, %23 : vector<16x64xf32>
    %c0_12 = arith.constant 0 : index
    %c0_13 = arith.constant 0 : index
    %25 = vector.load %arg7[%c0_12, %c0_13] : memref<1x64xf32, #tpu.memory_space<vmem>>, vector<1x64xf32>
    %26 = vector.broadcast %25 : vector<1x64xf32> to vector<16x64xf32>
    %27 = arith.addf %24, %26 : vector<16x64xf32>
    %cst_14 = arith.constant 8.000000e+00 : f32
    %28 = vector.broadcast %cst_14 : f32 to vector<16x64xf32>
    %29 = arith.mulf %27, %28 : vector<16x64xf32>
    %30 = vector.shape_cast %29 : vector<16x64xf32> to vector<2x8x64xf32>
    %c0_15 = arith.constant 0 : index
    %c0_16 = arith.constant 0 : index
    %31 = vector.load %arg3[%c0_15, %c0_16] : memref<8x64xf32, #tpu.memory_space<vmem>>, vector<8x64xf32>
    %32 = vector.shape_cast %31 : vector<8x64xf32> to vector<1x8x64xf32>
    %33 = vector.broadcast %32 : vector<1x8x64xf32> to vector<2x8x64xf32>
    %34 = arith.addf %30, %33 : vector<2x8x64xf32>
    %35 = vector.shape_cast %34 : vector<2x8x64xf32> to vector<16x64xf32>
    %c0_17 = arith.constant 0 : index
    %c0_18 = arith.constant 0 : index
    %36 = vector.load %arg2[%c0_17, %c0_18] : memref<2x64xf32, #tpu.memory_space<vmem>>, vector<2x64xf32>
    %c0_19 = arith.constant 0 : index
    %c0_20 = arith.constant 0 : index
    %37 = vector.load %arg1[%c0_19, %c0_20] : memref<2x8xf32, #tpu.memory_space<vmem>>, vector<2x8xf32>
    %38 = vector.shape_cast %37 : vector<2x8xf32> to vector<2x1x8xf32>
    %cst_21 = arith.constant 0.000000e+00 : f32
    %39 = vector.broadcast %cst_21 : f32 to vector<2x1x8xf32>
    %40 = arith.cmpf ogt, %38, %39 : vector<2x1x8xf32>
    %c0_22 = arith.constant 0 : index
    %c0_23 = arith.constant 0 : index
    %c0_24 = arith.constant 0 : index
    %41 = vector.load %arg8[%c0_22, %c0_23, %c0_24] : memref<2x64x64xf32, #tpu.memory_space<vmem>>, vector<1x64x64xf32>
    %42 = vector.shape_cast %41 : vector<1x64x64xf32> to vector<64x64xf32>
    %c0_25 = arith.constant 0 : index
    %c0_26 = arith.constant 0 : index
    %c0_27 = arith.constant 0 : index
    %43 = vector.load %arg9[%c0_25, %c0_26, %c0_27] : memref<2x1x64xf32, #tpu.memory_space<vmem>>, vector<1x1x64xf32>
    %44 = vector.shape_cast %43 : vector<1x1x64xf32> to vector<1x64xf32>
    %c0_28 = arith.constant 0 : index
    %c0_29 = arith.constant 0 : index
    %c0_30 = arith.constant 0 : index
    %45 = vector.load %arg10[%c0_28, %c0_29, %c0_30] : memref<2x64x128xf32, #tpu.memory_space<vmem>>, vector<1x64x128xf32>
    %46 = vector.shape_cast %45 : vector<1x64x128xf32> to vector<64x128xf32>
    %c0_31 = arith.constant 0 : index
    %c0_32 = arith.constant 0 : index
    %c0_33 = arith.constant 0 : index
    %47 = vector.load %arg11[%c0_31, %c0_32, %c0_33] : memref<2x1x128xf32, #tpu.memory_space<vmem>>, vector<1x1x128xf32>
    %48 = vector.shape_cast %47 : vector<1x1x128xf32> to vector<1x128xf32>
    %cst_34 = arith.constant dense<0.000000e+00> : vector<2x64xf32>
    %49 = tpu.matmul %36, %42, %cst_34 {dimension_numbers = #tpu.dot_dimension_numbers<[1], [0], [0], [1], [0, 0, 1, 1], [], []>} : vector<2x64xf32>, vector<64x64xf32>, vector<2x64xf32> -> vector<2x64xf32>
    %50 = vector.broadcast %44 : vector<1x64xf32> to vector<2x64xf32>
    %51 = arith.addf %49, %50 : vector<2x64xf32>
    %52 = arith.negf %51 : vector<2x64xf32>
    %53 = math.exp %52 : vector<2x64xf32>
    %cst_35 = arith.constant 1.000000e+00 : f32
    %54 = vector.broadcast %cst_35 : f32 to vector<2x64xf32>
    %55 = arith.addf %54, %53 : vector<2x64xf32>
    %56 = arith.divf %54, %55 : vector<2x64xf32>
    %57 = arith.mulf %51, %56 : vector<2x64xf32>
    %cst_36 = arith.constant dense<0.000000e+00> : vector<2x128xf32>
    %58 = tpu.matmul %57, %46, %cst_36 {dimension_numbers = #tpu.dot_dimension_numbers<[1], [0], [0], [1], [0, 0, 1, 1], [], []>} : vector<2x64xf32>, vector<64x128xf32>, vector<2x128xf32> -> vector<2x128xf32>
    %59 = vector.broadcast %48 : vector<1x128xf32> to vector<2x128xf32>
    %60 = arith.addf %58, %59 : vector<2x128xf32>
    %61 = vector.extract_strided_slice %60 {offsets = [0, 0], sizes = [2, 64], strides = [1, 1]} : vector<2x128xf32> to vector<2x64xf32>
    %62 = vector.extract_strided_slice %60 {offsets = [0, 64], sizes = [2, 64], strides = [1, 1]} : vector<2x128xf32> to vector<2x64xf32>
    %cst_37 = arith.constant dense<0.000000e+00> : vector<16xf32>
    %63 = vector.multi_reduction <add>, %35, %cst_37 [1] : vector<16x64xf32> to vector<16xf32>
    %64 = vector.shape_cast %63 : vector<16xf32> to vector<16x1xf32>
    %cst_38 = arith.constant 6.400000e+01 : f32
    %65 = vector.broadcast %cst_38 : f32 to vector<16x1xf32>
    %66 = arith.divf %64, %65 : vector<16x1xf32>
    %67 = vector.broadcast %66 : vector<16x1xf32> to vector<16x64xf32>
    %68 = arith.subf %35, %67 : vector<16x64xf32>
    %69 = arith.mulf %68, %68 : vector<16x64xf32>
    %cst_39 = arith.constant dense<0.000000e+00> : vector<16xf32>
    %70 = vector.multi_reduction <add>, %69, %cst_39 [1] : vector<16x64xf32> to vector<16xf32>
    %71 = vector.shape_cast %70 : vector<16xf32> to vector<16x1xf32>
    %cst_40 = arith.constant 6.400000e+01 : f32
    %72 = vector.broadcast %cst_40 : f32 to vector<16x1xf32>
    %73 = arith.divf %71, %72 : vector<16x1xf32>
    %cst_41 = arith.constant 9.99999974E-6 : f32
    %74 = vector.broadcast %cst_41 : f32 to vector<16x1xf32>
    %75 = arith.addf %73, %74 : vector<16x1xf32>
    %76 = math.rsqrt %75 : vector<16x1xf32>
    %77 = vector.broadcast %76 : vector<16x1xf32> to vector<16x64xf32>
    %78 = arith.mulf %68, %77 : vector<16x64xf32>
    %79 = vector.shape_cast %78 : vector<16x64xf32> to vector<2x8x64xf32>
    %80 = vector.shape_cast %61 : vector<2x64xf32> to vector<2x1x64xf32>
    %cst_42 = arith.constant 1.000000e+00 : f32
    %81 = vector.broadcast %cst_42 : f32 to vector<2x1x64xf32>
    %82 = arith.addf %81, %80 : vector<2x1x64xf32>
    %83 = vector.broadcast %82 : vector<2x1x64xf32> to vector<2x8x64xf32>
    %84 = arith.mulf %79, %83 : vector<2x8x64xf32>
    %85 = vector.shape_cast %62 : vector<2x64xf32> to vector<2x1x64xf32>
    %86 = vector.broadcast %85 : vector<2x1x64xf32> to vector<2x8x64xf32>
    %87 = arith.addf %84, %86 : vector<2x8x64xf32>
    %88 = vector.shape_cast %87 : vector<2x8x64xf32> to vector<16x64xf32>
    %c0_43 = arith.constant 0 : index
    %c0_44 = arith.constant 0 : index
    %c0_45 = arith.constant 0 : index
    %89 = vector.load %arg16[%c0_43, %c0_44, %c0_45] : memref<2x64x192xf32, #tpu.memory_space<vmem>>, vector<1x64x192xf32>
    %90 = vector.shape_cast %89 : vector<1x64x192xf32> to vector<64x192xf32>
    %cst_46 = arith.constant dense<0.000000e+00> : vector<16x192xf32>
    %91 = tpu.matmul %88, %90, %cst_46 {dimension_numbers = #tpu.dot_dimension_numbers<[1], [0], [0], [1], [0, 0, 1, 1], [], []>} : vector<16x64xf32>, vector<64x192xf32>, vector<16x192xf32> -> vector<16x192xf32>
    %c0_47 = arith.constant 0 : index
    %c0_48 = arith.constant 0 : index
    %c0_49 = arith.constant 0 : index
    %92 = vector.load %arg17[%c0_47, %c0_48, %c0_49] : memref<2x1x192xf32, #tpu.memory_space<vmem>>, vector<1x1x192xf32>
    %93 = vector.shape_cast %92 : vector<1x1x192xf32> to vector<1x192xf32>
    %94 = vector.broadcast %93 : vector<1x192xf32> to vector<16x192xf32>
    %95 = arith.addf %91, %94 : vector<16x192xf32>
    %96 = vector.shape_cast %95 : vector<16x192xf32> to vector<2x8x192xf32>
    %97 = vector.extract_strided_slice %96 {offsets = [0, 0, 0], sizes = [2, 8, 16], strides = [1, 1, 1]} : vector<2x8x192xf32> to vector<2x8x16xf32>
    %98 = vector.extract_strided_slice %96 {offsets = [0, 0, 64], sizes = [2, 8, 16], strides = [1, 1, 1]} : vector<2x8x192xf32> to vector<2x8x16xf32>
    %99 = vector.extract_strided_slice %96 {offsets = [0, 0, 128], sizes = [2, 8, 16], strides = [1, 1, 1]} : vector<2x8x192xf32> to vector<2x8x16xf32>
    "tpu.trace_start"() <{level = 10 : i32, message = "bqd,bkd->bqk"}> : () -> ()
    %cst_50 = arith.constant dense<0.000000e+00> : vector<2x8x8xf32>
    %100 = tpu.matmul %97, %98, %cst_50 {dimension_numbers = #tpu.dot_dimension_numbers<[2], [2], [1], [1], [0, 0, 0, 1, 1, 1], [0], [0]>} : vector<2x8x16xf32>, vector<2x8x16xf32>, vector<2x8x8xf32> -> vector<2x8x8xf32>
    "tpu.trace_stop"() : () -> ()
    %cst_51 = arith.constant 2.500000e-01 : f32
    %101 = vector.broadcast %cst_51 : f32 to vector<2x8x8xf32>
    %102 = arith.mulf %100, %101 : vector<2x8x8xf32>
    %cst_52 = arith.constant -3.40282347E+38 : f32
    %103 = vector.shape_cast %40 : vector<2x1x8xi1> to vector<2x1x8xi1>
    %104 = vector.broadcast %103 : vector<2x1x8xi1> to vector<2x8x8xi1>
    %105 = vector.broadcast %cst_52 : f32 to vector<2x8x8xf32>
    %106 = arith.select %104, %102, %105 : vector<2x8x8xi1>, vector<2x8x8xf32>
    %cst_53 = arith.constant dense<0xFF800000> : vector<2x8xf32>
    %107 = vector.multi_reduction <maximumf>, %106, %cst_53 [2] : vector<2x8x8xf32> to vector<2x8xf32>
    %108 = vector.shape_cast %107 : vector<2x8xf32> to vector<2x8x1xf32>
    %109 = vector.broadcast %108 : vector<2x8x1xf32> to vector<2x8x8xf32>
    %110 = arith.subf %106, %109 : vector<2x8x8xf32>
    %111 = math.exp %110 : vector<2x8x8xf32>
    %cst_54 = arith.constant dense<0.000000e+00> : vector<2x8xf32>
    %112 = vector.multi_reduction <add>, %111, %cst_54 [2] : vector<2x8x8xf32> to vector<2x8xf32>
    %113 = vector.shape_cast %112 : vector<2x8xf32> to vector<2x8x1xf32>
    %114 = tpu.reciprocal %113 {approx = true} : vector<2x8x1xf32> -> vector<2x8x1xf32>
    %115 = vector.broadcast %114 : vector<2x8x1xf32> to vector<2x8x8xf32>
    %116 = arith.mulf %111, %115 : vector<2x8x8xf32>
    %cst_55 = arith.constant 0.000000e+00 : f32
    %117 = vector.shape_cast %40 : vector<2x1x8xi1> to vector<2x1x8xi1>
    %118 = vector.broadcast %117 : vector<2x1x8xi1> to vector<2x8x8xi1>
    %119 = vector.broadcast %cst_55 : f32 to vector<2x8x8xf32>
    %120 = arith.select %118, %116, %119 : vector<2x8x8xi1>, vector<2x8x8xf32>
    "tpu.trace_start"() <{level = 10 : i32, message = "bqk,bkd->bqd"}> : () -> ()
    %cst_56 = arith.constant dense<0.000000e+00> : vector<2x8x16xf32>
    %121 = tpu.matmul %120, %99, %cst_56 {dimension_numbers = #tpu.dot_dimension_numbers<[2], [1], [1], [2], [0, 0, 0, 1, 1, 2], [0], [0]>} : vector<2x8x8xf32>, vector<2x8x16xf32>, vector<2x8x16xf32> -> vector<2x8x16xf32>
    "tpu.trace_stop"() : () -> ()
    %122 = vector.extract_strided_slice %96 {offsets = [0, 0, 16], sizes = [2, 8, 16], strides = [1, 1, 1]} : vector<2x8x192xf32> to vector<2x8x16xf32>
    %123 = vector.extract_strided_slice %96 {offsets = [0, 0, 80], sizes = [2, 8, 16], strides = [1, 1, 1]} : vector<2x8x192xf32> to vector<2x8x16xf32>
    %124 = vector.extract_strided_slice %96 {offsets = [0, 0, 144], sizes = [2, 8, 16], strides = [1, 1, 1]} : vector<2x8x192xf32> to vector<2x8x16xf32>
    "tpu.trace_start"() <{level = 10 : i32, message = "bqd,bkd->bqk"}> : () -> ()
    %cst_57 = arith.constant dense<0.000000e+00> : vector<2x8x8xf32>
    %125 = tpu.matmul %122, %123, %cst_57 {dimension_numbers = #tpu.dot_dimension_numbers<[2], [2], [1], [1], [0, 0, 0, 1, 1, 1], [0], [0]>} : vector<2x8x16xf32>, vector<2x8x16xf32>, vector<2x8x8xf32> -> vector<2x8x8xf32>
    "tpu.trace_stop"() : () -> ()
    %cst_58 = arith.constant 2.500000e-01 : f32
    %126 = vector.broadcast %cst_58 : f32 to vector<2x8x8xf32>
    %127 = arith.mulf %125, %126 : vector<2x8x8xf32>
    %cst_59 = arith.constant -3.40282347E+38 : f32
    %128 = vector.shape_cast %40 : vector<2x1x8xi1> to vector<2x1x8xi1>
    %129 = vector.broadcast %128 : vector<2x1x8xi1> to vector<2x8x8xi1>
    %130 = vector.broadcast %cst_59 : f32 to vector<2x8x8xf32>
    %131 = arith.select %129, %127, %130 : vector<2x8x8xi1>, vector<2x8x8xf32>
    %cst_60 = arith.constant dense<0xFF800000> : vector<2x8xf32>
    %132 = vector.multi_reduction <maximumf>, %131, %cst_60 [2] : vector<2x8x8xf32> to vector<2x8xf32>
    %133 = vector.shape_cast %132 : vector<2x8xf32> to vector<2x8x1xf32>
    %134 = vector.broadcast %133 : vector<2x8x1xf32> to vector<2x8x8xf32>
    %135 = arith.subf %131, %134 : vector<2x8x8xf32>
    %136 = math.exp %135 : vector<2x8x8xf32>
    %cst_61 = arith.constant dense<0.000000e+00> : vector<2x8xf32>
    %137 = vector.multi_reduction <add>, %136, %cst_61 [2] : vector<2x8x8xf32> to vector<2x8xf32>
    %138 = vector.shape_cast %137 : vector<2x8xf32> to vector<2x8x1xf32>
    %139 = tpu.reciprocal %138 {approx = true} : vector<2x8x1xf32> -> vector<2x8x1xf32>
    %140 = vector.broadcast %139 : vector<2x8x1xf32> to vector<2x8x8xf32>
    %141 = arith.mulf %136, %140 : vector<2x8x8xf32>
    %cst_62 = arith.constant 0.000000e+00 : f32
    %142 = vector.shape_cast %40 : vector<2x1x8xi1> to vector<2x1x8xi1>
    %143 = vector.broadcast %142 : vector<2x1x8xi1> to vector<2x8x8xi1>
    %144 = vector.broadcast %cst_62 : f32 to vector<2x8x8xf32>
    %145 = arith.select %143, %141, %144 : vector<2x8x8xi1>, vector<2x8x8xf32>
    "tpu.trace_start"() <{level = 10 : i32, message = "bqk,bkd->bqd"}> : () -> ()
    %cst_63 = arith.constant dense<0.000000e+00> : vector<2x8x16xf32>
    %146 = tpu.matmul %145, %124, %cst_63 {dimension_numbers = #tpu.dot_dimension_numbers<[2], [1], [1], [2], [0, 0, 0, 1, 1, 2], [0], [0]>} : vector<2x8x8xf32>, vector<2x8x16xf32>, vector<2x8x16xf32> -> vector<2x8x16xf32>
    "tpu.trace_stop"() : () -> ()
    %147 = vector.extract_strided_slice %96 {offsets = [0, 0, 32], sizes = [2, 8, 16], strides = [1, 1, 1]} : vector<2x8x192xf32> to vector<2x8x16xf32>
    %148 = vector.extract_strided_slice %96 {offsets = [0, 0, 96], sizes = [2, 8, 16], strides = [1, 1, 1]} : vector<2x8x192xf32> to vector<2x8x16xf32>
    %149 = vector.extract_strided_slice %96 {offsets = [0, 0, 160], sizes = [2, 8, 16], strides = [1, 1, 1]} : vector<2x8x192xf32> to vector<2x8x16xf32>
    "tpu.trace_start"() <{level = 10 : i32, message = "bqd,bkd->bqk"}> : () -> ()
    %cst_64 = arith.constant dense<0.000000e+00> : vector<2x8x8xf32>
    %150 = tpu.matmul %147, %148, %cst_64 {dimension_numbers = #tpu.dot_dimension_numbers<[2], [2], [1], [1], [0, 0, 0, 1, 1, 1], [0], [0]>} : vector<2x8x16xf32>, vector<2x8x16xf32>, vector<2x8x8xf32> -> vector<2x8x8xf32>
    "tpu.trace_stop"() : () -> ()
    %cst_65 = arith.constant 2.500000e-01 : f32
    %151 = vector.broadcast %cst_65 : f32 to vector<2x8x8xf32>
    %152 = arith.mulf %150, %151 : vector<2x8x8xf32>
    %cst_66 = arith.constant -3.40282347E+38 : f32
    %153 = vector.shape_cast %40 : vector<2x1x8xi1> to vector<2x1x8xi1>
    %154 = vector.broadcast %153 : vector<2x1x8xi1> to vector<2x8x8xi1>
    %155 = vector.broadcast %cst_66 : f32 to vector<2x8x8xf32>
    %156 = arith.select %154, %152, %155 : vector<2x8x8xi1>, vector<2x8x8xf32>
    %cst_67 = arith.constant dense<0xFF800000> : vector<2x8xf32>
    %157 = vector.multi_reduction <maximumf>, %156, %cst_67 [2] : vector<2x8x8xf32> to vector<2x8xf32>
    %158 = vector.shape_cast %157 : vector<2x8xf32> to vector<2x8x1xf32>
    %159 = vector.broadcast %158 : vector<2x8x1xf32> to vector<2x8x8xf32>
    %160 = arith.subf %156, %159 : vector<2x8x8xf32>
    %161 = math.exp %160 : vector<2x8x8xf32>
    %cst_68 = arith.constant dense<0.000000e+00> : vector<2x8xf32>
    %162 = vector.multi_reduction <add>, %161, %cst_68 [2] : vector<2x8x8xf32> to vector<2x8xf32>
    %163 = vector.shape_cast %162 : vector<2x8xf32> to vector<2x8x1xf32>
    %164 = tpu.reciprocal %163 {approx = true} : vector<2x8x1xf32> -> vector<2x8x1xf32>
    %165 = vector.broadcast %164 : vector<2x8x1xf32> to vector<2x8x8xf32>
    %166 = arith.mulf %161, %165 : vector<2x8x8xf32>
    %cst_69 = arith.constant 0.000000e+00 : f32
    %167 = vector.shape_cast %40 : vector<2x1x8xi1> to vector<2x1x8xi1>
    %168 = vector.broadcast %167 : vector<2x1x8xi1> to vector<2x8x8xi1>
    %169 = vector.broadcast %cst_69 : f32 to vector<2x8x8xf32>
    %170 = arith.select %168, %166, %169 : vector<2x8x8xi1>, vector<2x8x8xf32>
    "tpu.trace_start"() <{level = 10 : i32, message = "bqk,bkd->bqd"}> : () -> ()
    %cst_70 = arith.constant dense<0.000000e+00> : vector<2x8x16xf32>
    %171 = tpu.matmul %170, %149, %cst_70 {dimension_numbers = #tpu.dot_dimension_numbers<[2], [1], [1], [2], [0, 0, 0, 1, 1, 2], [0], [0]>} : vector<2x8x8xf32>, vector<2x8x16xf32>, vector<2x8x16xf32> -> vector<2x8x16xf32>
    "tpu.trace_stop"() : () -> ()
    %172 = vector.extract_strided_slice %96 {offsets = [0, 0, 48], sizes = [2, 8, 16], strides = [1, 1, 1]} : vector<2x8x192xf32> to vector<2x8x16xf32>
    %173 = vector.extract_strided_slice %96 {offsets = [0, 0, 112], sizes = [2, 8, 16], strides = [1, 1, 1]} : vector<2x8x192xf32> to vector<2x8x16xf32>
    %174 = vector.extract_strided_slice %96 {offsets = [0, 0, 176], sizes = [2, 8, 16], strides = [1, 1, 1]} : vector<2x8x192xf32> to vector<2x8x16xf32>
    "tpu.trace_start"() <{level = 10 : i32, message = "bqd,bkd->bqk"}> : () -> ()
    %cst_71 = arith.constant dense<0.000000e+00> : vector<2x8x8xf32>
    %175 = tpu.matmul %172, %173, %cst_71 {dimension_numbers = #tpu.dot_dimension_numbers<[2], [2], [1], [1], [0, 0, 0, 1, 1, 1], [0], [0]>} : vector<2x8x16xf32>, vector<2x8x16xf32>, vector<2x8x8xf32> -> vector<2x8x8xf32>
    "tpu.trace_stop"() : () -> ()
    %cst_72 = arith.constant 2.500000e-01 : f32
    %176 = vector.broadcast %cst_72 : f32 to vector<2x8x8xf32>
    %177 = arith.mulf %175, %176 : vector<2x8x8xf32>
    %cst_73 = arith.constant -3.40282347E+38 : f32
    %178 = vector.shape_cast %40 : vector<2x1x8xi1> to vector<2x1x8xi1>
    %179 = vector.broadcast %178 : vector<2x1x8xi1> to vector<2x8x8xi1>
    %180 = vector.broadcast %cst_73 : f32 to vector<2x8x8xf32>
    %181 = arith.select %179, %177, %180 : vector<2x8x8xi1>, vector<2x8x8xf32>
    %cst_74 = arith.constant dense<0xFF800000> : vector<2x8xf32>
    %182 = vector.multi_reduction <maximumf>, %181, %cst_74 [2] : vector<2x8x8xf32> to vector<2x8xf32>
    %183 = vector.shape_cast %182 : vector<2x8xf32> to vector<2x8x1xf32>
    %184 = vector.broadcast %183 : vector<2x8x1xf32> to vector<2x8x8xf32>
    %185 = arith.subf %181, %184 : vector<2x8x8xf32>
    %186 = math.exp %185 : vector<2x8x8xf32>
    %cst_75 = arith.constant dense<0.000000e+00> : vector<2x8xf32>
    %187 = vector.multi_reduction <add>, %186, %cst_75 [2] : vector<2x8x8xf32> to vector<2x8xf32>
    %188 = vector.shape_cast %187 : vector<2x8xf32> to vector<2x8x1xf32>
    %189 = tpu.reciprocal %188 {approx = true} : vector<2x8x1xf32> -> vector<2x8x1xf32>
    %190 = vector.broadcast %189 : vector<2x8x1xf32> to vector<2x8x8xf32>
    %191 = arith.mulf %186, %190 : vector<2x8x8xf32>
    %cst_76 = arith.constant 0.000000e+00 : f32
    %192 = vector.shape_cast %40 : vector<2x1x8xi1> to vector<2x1x8xi1>
    %193 = vector.broadcast %192 : vector<2x1x8xi1> to vector<2x8x8xi1>
    %194 = vector.broadcast %cst_76 : f32 to vector<2x8x8xf32>
    %195 = arith.select %193, %191, %194 : vector<2x8x8xi1>, vector<2x8x8xf32>
    "tpu.trace_start"() <{level = 10 : i32, message = "bqk,bkd->bqd"}> : () -> ()
    %cst_77 = arith.constant dense<0.000000e+00> : vector<2x8x16xf32>
    %196 = tpu.matmul %195, %174, %cst_77 {dimension_numbers = #tpu.dot_dimension_numbers<[2], [1], [1], [2], [0, 0, 0, 1, 1, 2], [0], [0]>} : vector<2x8x8xf32>, vector<2x8x16xf32>, vector<2x8x16xf32> -> vector<2x8x16xf32>
    "tpu.trace_stop"() : () -> ()
    %197 = tpu.concatenate %121, %146, %171, %196 in 2 : vector<2x8x16xf32>, vector<2x8x16xf32>, vector<2x8x16xf32>, vector<2x8x16xf32> -> vector<2x8x64xf32>
    %198 = vector.shape_cast %197 : vector<2x8x64xf32> to vector<16x64xf32>
    %c0_78 = arith.constant 0 : index
    %c0_79 = arith.constant 0 : index
    %c0_80 = arith.constant 0 : index
    %199 = vector.load %arg18[%c0_78, %c0_79, %c0_80] : memref<2x64x64xf32, #tpu.memory_space<vmem>>, vector<1x64x64xf32>
    %200 = vector.shape_cast %199 : vector<1x64x64xf32> to vector<64x64xf32>
    %cst_81 = arith.constant dense<0.000000e+00> : vector<16x64xf32>
    %201 = tpu.matmul %198, %200, %cst_81 {dimension_numbers = #tpu.dot_dimension_numbers<[1], [0], [0], [1], [0, 0, 1, 1], [], []>} : vector<16x64xf32>, vector<64x64xf32>, vector<16x64xf32> -> vector<16x64xf32>
    %202 = arith.addf %35, %201 : vector<16x64xf32>
    %c0_82 = arith.constant 0 : index
    %c0_83 = arith.constant 0 : index
    %c0_84 = arith.constant 0 : index
    %203 = vector.load %arg19[%c0_82, %c0_83, %c0_84] : memref<2x1x64xf32, #tpu.memory_space<vmem>>, vector<1x1x64xf32>
    %204 = vector.shape_cast %203 : vector<1x1x64xf32> to vector<1x64xf32>
    %205 = vector.broadcast %204 : vector<1x64xf32> to vector<16x64xf32>
    %206 = arith.addf %202, %205 : vector<16x64xf32>
    %c0_85 = arith.constant 0 : index
    %c0_86 = arith.constant 0 : index
    %c0_87 = arith.constant 0 : index
    %207 = vector.load %arg12[%c0_85, %c0_86, %c0_87] : memref<2x64x64xf32, #tpu.memory_space<vmem>>, vector<1x64x64xf32>
    %208 = vector.shape_cast %207 : vector<1x64x64xf32> to vector<64x64xf32>
    %c0_88 = arith.constant 0 : index
    %c0_89 = arith.constant 0 : index
    %c0_90 = arith.constant 0 : index
    %209 = vector.load %arg13[%c0_88, %c0_89, %c0_90] : memref<2x1x64xf32, #tpu.memory_space<vmem>>, vector<1x1x64xf32>
    %210 = vector.shape_cast %209 : vector<1x1x64xf32> to vector<1x64xf32>
    %c0_91 = arith.constant 0 : index
    %c0_92 = arith.constant 0 : index
    %c0_93 = arith.constant 0 : index
    %211 = vector.load %arg14[%c0_91, %c0_92, %c0_93] : memref<2x64x128xf32, #tpu.memory_space<vmem>>, vector<1x64x128xf32>
    %212 = vector.shape_cast %211 : vector<1x64x128xf32> to vector<64x128xf32>
    %c0_94 = arith.constant 0 : index
    %c0_95 = arith.constant 0 : index
    %c0_96 = arith.constant 0 : index
    %213 = vector.load %arg15[%c0_94, %c0_95, %c0_96] : memref<2x1x128xf32, #tpu.memory_space<vmem>>, vector<1x1x128xf32>
    %214 = vector.shape_cast %213 : vector<1x1x128xf32> to vector<1x128xf32>
    %cst_97 = arith.constant dense<0.000000e+00> : vector<2x64xf32>
    %215 = tpu.matmul %36, %208, %cst_97 {dimension_numbers = #tpu.dot_dimension_numbers<[1], [0], [0], [1], [0, 0, 1, 1], [], []>} : vector<2x64xf32>, vector<64x64xf32>, vector<2x64xf32> -> vector<2x64xf32>
    %216 = vector.broadcast %210 : vector<1x64xf32> to vector<2x64xf32>
    %217 = arith.addf %215, %216 : vector<2x64xf32>
    %218 = arith.negf %217 : vector<2x64xf32>
    %219 = math.exp %218 : vector<2x64xf32>
    %cst_98 = arith.constant 1.000000e+00 : f32
    %220 = vector.broadcast %cst_98 : f32 to vector<2x64xf32>
    %221 = arith.addf %220, %219 : vector<2x64xf32>
    %222 = arith.divf %220, %221 : vector<2x64xf32>
    %223 = arith.mulf %217, %222 : vector<2x64xf32>
    %cst_99 = arith.constant dense<0.000000e+00> : vector<2x128xf32>
    %224 = tpu.matmul %223, %212, %cst_99 {dimension_numbers = #tpu.dot_dimension_numbers<[1], [0], [0], [1], [0, 0, 1, 1], [], []>} : vector<2x64xf32>, vector<64x128xf32>, vector<2x128xf32> -> vector<2x128xf32>
    %225 = vector.broadcast %214 : vector<1x128xf32> to vector<2x128xf32>
    %226 = arith.addf %224, %225 : vector<2x128xf32>
    %227 = vector.extract_strided_slice %226 {offsets = [0, 0], sizes = [2, 64], strides = [1, 1]} : vector<2x128xf32> to vector<2x64xf32>
    %228 = vector.extract_strided_slice %226 {offsets = [0, 64], sizes = [2, 64], strides = [1, 1]} : vector<2x128xf32> to vector<2x64xf32>
    %cst_100 = arith.constant dense<0.000000e+00> : vector<16xf32>
    %229 = vector.multi_reduction <add>, %206, %cst_100 [1] : vector<16x64xf32> to vector<16xf32>
    %230 = vector.shape_cast %229 : vector<16xf32> to vector<16x1xf32>
    %cst_101 = arith.constant 6.400000e+01 : f32
    %231 = vector.broadcast %cst_101 : f32 to vector<16x1xf32>
    %232 = arith.divf %230, %231 : vector<16x1xf32>
    %233 = vector.broadcast %232 : vector<16x1xf32> to vector<16x64xf32>
    %234 = arith.subf %206, %233 : vector<16x64xf32>
    %235 = arith.mulf %234, %234 : vector<16x64xf32>
    %cst_102 = arith.constant dense<0.000000e+00> : vector<16xf32>
    %236 = vector.multi_reduction <add>, %235, %cst_102 [1] : vector<16x64xf32> to vector<16xf32>
    %237 = vector.shape_cast %236 : vector<16xf32> to vector<16x1xf32>
    %cst_103 = arith.constant 6.400000e+01 : f32
    %238 = vector.broadcast %cst_103 : f32 to vector<16x1xf32>
    %239 = arith.divf %237, %238 : vector<16x1xf32>
    %cst_104 = arith.constant 9.99999974E-6 : f32
    %240 = vector.broadcast %cst_104 : f32 to vector<16x1xf32>
    %241 = arith.addf %239, %240 : vector<16x1xf32>
    %242 = math.rsqrt %241 : vector<16x1xf32>
    %243 = vector.broadcast %242 : vector<16x1xf32> to vector<16x64xf32>
    %244 = arith.mulf %234, %243 : vector<16x64xf32>
    %245 = vector.shape_cast %244 : vector<16x64xf32> to vector<2x8x64xf32>
    %246 = vector.shape_cast %227 : vector<2x64xf32> to vector<2x1x64xf32>
    %cst_105 = arith.constant 1.000000e+00 : f32
    %247 = vector.broadcast %cst_105 : f32 to vector<2x1x64xf32>
    %248 = arith.addf %247, %246 : vector<2x1x64xf32>
    %249 = vector.broadcast %248 : vector<2x1x64xf32> to vector<2x8x64xf32>
    %250 = arith.mulf %245, %249 : vector<2x8x64xf32>
    %251 = vector.shape_cast %228 : vector<2x64xf32> to vector<2x1x64xf32>
    %252 = vector.broadcast %251 : vector<2x1x64xf32> to vector<2x8x64xf32>
    %253 = arith.addf %250, %252 : vector<2x8x64xf32>
    %254 = vector.shape_cast %253 : vector<2x8x64xf32> to vector<16x64xf32>
    %c0_106 = arith.constant 0 : index
    %c0_107 = arith.constant 0 : index
    %c0_108 = arith.constant 0 : index
    %255 = vector.load %arg20[%c0_106, %c0_107, %c0_108] : memref<2x64x128xf32, #tpu.memory_space<vmem>>, vector<1x64x128xf32>
    %256 = vector.shape_cast %255 : vector<1x64x128xf32> to vector<64x128xf32>
    %cst_109 = arith.constant dense<0.000000e+00> : vector<16x128xf32>
    %257 = tpu.matmul %254, %256, %cst_109 {dimension_numbers = #tpu.dot_dimension_numbers<[1], [0], [0], [1], [0, 0, 1, 1], [], []>} : vector<16x64xf32>, vector<64x128xf32>, vector<16x128xf32> -> vector<16x128xf32>
    %c0_110 = arith.constant 0 : index
    %c0_111 = arith.constant 0 : index
    %c0_112 = arith.constant 0 : index
    %258 = vector.load %arg21[%c0_110, %c0_111, %c0_112] : memref<2x1x128xf32, #tpu.memory_space<vmem>>, vector<1x1x128xf32>
    %259 = vector.shape_cast %258 : vector<1x1x128xf32> to vector<1x128xf32>
    %260 = vector.broadcast %259 : vector<1x128xf32> to vector<16x128xf32>
    %261 = arith.addf %257, %260 : vector<16x128xf32>
    %262 = arith.negf %261 : vector<16x128xf32>
    %263 = math.exp %262 : vector<16x128xf32>
    %cst_113 = arith.constant 1.000000e+00 : f32
    %264 = vector.broadcast %cst_113 : f32 to vector<16x128xf32>
    %265 = arith.addf %264, %263 : vector<16x128xf32>
    %266 = arith.divf %264, %265 : vector<16x128xf32>
    %267 = arith.mulf %261, %266 : vector<16x128xf32>
    %c0_114 = arith.constant 0 : index
    %c0_115 = arith.constant 0 : index
    %c0_116 = arith.constant 0 : index
    %268 = vector.load %arg22[%c0_114, %c0_115, %c0_116] : memref<2x128x64xf32, #tpu.memory_space<vmem>>, vector<1x128x64xf32>
    %269 = vector.shape_cast %268 : vector<1x128x64xf32> to vector<128x64xf32>
    %cst_117 = arith.constant dense<0.000000e+00> : vector<16x64xf32>
    %270 = tpu.matmul %267, %269, %cst_117 {dimension_numbers = #tpu.dot_dimension_numbers<[1], [0], [0], [1], [0, 0, 1, 1], [], []>} : vector<16x128xf32>, vector<128x64xf32>, vector<16x64xf32> -> vector<16x64xf32>
    %271 = arith.addf %206, %270 : vector<16x64xf32>
    %c0_118 = arith.constant 0 : index
    %c0_119 = arith.constant 0 : index
    %c0_120 = arith.constant 0 : index
    %272 = vector.load %arg23[%c0_118, %c0_119, %c0_120] : memref<2x1x64xf32, #tpu.memory_space<vmem>>, vector<1x1x64xf32>
    %273 = vector.shape_cast %272 : vector<1x1x64xf32> to vector<1x64xf32>
    %274 = vector.broadcast %273 : vector<1x64xf32> to vector<16x64xf32>
    %275 = arith.addf %271, %274 : vector<16x64xf32>
    %c1 = arith.constant 1 : index
    %c0_121 = arith.constant 0 : index
    %c0_122 = arith.constant 0 : index
    %276 = vector.load %arg8[%c1, %c0_121, %c0_122] : memref<2x64x64xf32, #tpu.memory_space<vmem>>, vector<1x64x64xf32>
    %277 = vector.shape_cast %276 : vector<1x64x64xf32> to vector<64x64xf32>
    %c1_123 = arith.constant 1 : index
    %c0_124 = arith.constant 0 : index
    %c0_125 = arith.constant 0 : index
    %278 = vector.load %arg9[%c1_123, %c0_124, %c0_125] : memref<2x1x64xf32, #tpu.memory_space<vmem>>, vector<1x1x64xf32>
    %279 = vector.shape_cast %278 : vector<1x1x64xf32> to vector<1x64xf32>
    %c1_126 = arith.constant 1 : index
    %c0_127 = arith.constant 0 : index
    %c0_128 = arith.constant 0 : index
    %280 = vector.load %arg10[%c1_126, %c0_127, %c0_128] : memref<2x64x128xf32, #tpu.memory_space<vmem>>, vector<1x64x128xf32>
    %281 = vector.shape_cast %280 : vector<1x64x128xf32> to vector<64x128xf32>
    %c1_129 = arith.constant 1 : index
    %c0_130 = arith.constant 0 : index
    %c0_131 = arith.constant 0 : index
    %282 = vector.load %arg11[%c1_129, %c0_130, %c0_131] : memref<2x1x128xf32, #tpu.memory_space<vmem>>, vector<1x1x128xf32>
    %283 = vector.shape_cast %282 : vector<1x1x128xf32> to vector<1x128xf32>
    %cst_132 = arith.constant dense<0.000000e+00> : vector<2x64xf32>
    %284 = tpu.matmul %36, %277, %cst_132 {dimension_numbers = #tpu.dot_dimension_numbers<[1], [0], [0], [1], [0, 0, 1, 1], [], []>} : vector<2x64xf32>, vector<64x64xf32>, vector<2x64xf32> -> vector<2x64xf32>
    %285 = vector.broadcast %279 : vector<1x64xf32> to vector<2x64xf32>
    %286 = arith.addf %284, %285 : vector<2x64xf32>
    %287 = arith.negf %286 : vector<2x64xf32>
    %288 = math.exp %287 : vector<2x64xf32>
    %cst_133 = arith.constant 1.000000e+00 : f32
    %289 = vector.broadcast %cst_133 : f32 to vector<2x64xf32>
    %290 = arith.addf %289, %288 : vector<2x64xf32>
    %291 = arith.divf %289, %290 : vector<2x64xf32>
    %292 = arith.mulf %286, %291 : vector<2x64xf32>
    %cst_134 = arith.constant dense<0.000000e+00> : vector<2x128xf32>
    %293 = tpu.matmul %292, %281, %cst_134 {dimension_numbers = #tpu.dot_dimension_numbers<[1], [0], [0], [1], [0, 0, 1, 1], [], []>} : vector<2x64xf32>, vector<64x128xf32>, vector<2x128xf32> -> vector<2x128xf32>
    %294 = vector.broadcast %283 : vector<1x128xf32> to vector<2x128xf32>
    %295 = arith.addf %293, %294 : vector<2x128xf32>
    %296 = vector.extract_strided_slice %295 {offsets = [0, 0], sizes = [2, 64], strides = [1, 1]} : vector<2x128xf32> to vector<2x64xf32>
    %297 = vector.extract_strided_slice %295 {offsets = [0, 64], sizes = [2, 64], strides = [1, 1]} : vector<2x128xf32> to vector<2x64xf32>
    %cst_135 = arith.constant dense<0.000000e+00> : vector<16xf32>
    %298 = vector.multi_reduction <add>, %275, %cst_135 [1] : vector<16x64xf32> to vector<16xf32>
    %299 = vector.shape_cast %298 : vector<16xf32> to vector<16x1xf32>
    %cst_136 = arith.constant 6.400000e+01 : f32
    %300 = vector.broadcast %cst_136 : f32 to vector<16x1xf32>
    %301 = arith.divf %299, %300 : vector<16x1xf32>
    %302 = vector.broadcast %301 : vector<16x1xf32> to vector<16x64xf32>
    %303 = arith.subf %275, %302 : vector<16x64xf32>
    %304 = arith.mulf %303, %303 : vector<16x64xf32>
    %cst_137 = arith.constant dense<0.000000e+00> : vector<16xf32>
    %305 = vector.multi_reduction <add>, %304, %cst_137 [1] : vector<16x64xf32> to vector<16xf32>
    %306 = vector.shape_cast %305 : vector<16xf32> to vector<16x1xf32>
    %cst_138 = arith.constant 6.400000e+01 : f32
    %307 = vector.broadcast %cst_138 : f32 to vector<16x1xf32>
    %308 = arith.divf %306, %307 : vector<16x1xf32>
    %cst_139 = arith.constant 9.99999974E-6 : f32
    %309 = vector.broadcast %cst_139 : f32 to vector<16x1xf32>
    %310 = arith.addf %308, %309 : vector<16x1xf32>
    %311 = math.rsqrt %310 : vector<16x1xf32>
    %312 = vector.broadcast %311 : vector<16x1xf32> to vector<16x64xf32>
    %313 = arith.mulf %303, %312 : vector<16x64xf32>
    %314 = vector.shape_cast %313 : vector<16x64xf32> to vector<2x8x64xf32>
    %315 = vector.shape_cast %296 : vector<2x64xf32> to vector<2x1x64xf32>
    %cst_140 = arith.constant 1.000000e+00 : f32
    %316 = vector.broadcast %cst_140 : f32 to vector<2x1x64xf32>
    %317 = arith.addf %316, %315 : vector<2x1x64xf32>
    %318 = vector.broadcast %317 : vector<2x1x64xf32> to vector<2x8x64xf32>
    %319 = arith.mulf %314, %318 : vector<2x8x64xf32>
    %320 = vector.shape_cast %297 : vector<2x64xf32> to vector<2x1x64xf32>
    %321 = vector.broadcast %320 : vector<2x1x64xf32> to vector<2x8x64xf32>
    %322 = arith.addf %319, %321 : vector<2x8x64xf32>
    %323 = vector.shape_cast %322 : vector<2x8x64xf32> to vector<16x64xf32>
    %c1_141 = arith.constant 1 : index
    %c0_142 = arith.constant 0 : index
    %c0_143 = arith.constant 0 : index
    %324 = vector.load %arg16[%c1_141, %c0_142, %c0_143] : memref<2x64x192xf32, #tpu.memory_space<vmem>>, vector<1x64x192xf32>
    %325 = vector.shape_cast %324 : vector<1x64x192xf32> to vector<64x192xf32>
    %cst_144 = arith.constant dense<0.000000e+00> : vector<16x192xf32>
    %326 = tpu.matmul %323, %325, %cst_144 {dimension_numbers = #tpu.dot_dimension_numbers<[1], [0], [0], [1], [0, 0, 1, 1], [], []>} : vector<16x64xf32>, vector<64x192xf32>, vector<16x192xf32> -> vector<16x192xf32>
    %c1_145 = arith.constant 1 : index
    %c0_146 = arith.constant 0 : index
    %c0_147 = arith.constant 0 : index
    %327 = vector.load %arg17[%c1_145, %c0_146, %c0_147] : memref<2x1x192xf32, #tpu.memory_space<vmem>>, vector<1x1x192xf32>
    %328 = vector.shape_cast %327 : vector<1x1x192xf32> to vector<1x192xf32>
    %329 = vector.broadcast %328 : vector<1x192xf32> to vector<16x192xf32>
    %330 = arith.addf %326, %329 : vector<16x192xf32>
    %331 = vector.shape_cast %330 : vector<16x192xf32> to vector<2x8x192xf32>
    %332 = vector.extract_strided_slice %331 {offsets = [0, 0, 0], sizes = [2, 8, 16], strides = [1, 1, 1]} : vector<2x8x192xf32> to vector<2x8x16xf32>
    %333 = vector.extract_strided_slice %331 {offsets = [0, 0, 64], sizes = [2, 8, 16], strides = [1, 1, 1]} : vector<2x8x192xf32> to vector<2x8x16xf32>
    %334 = vector.extract_strided_slice %331 {offsets = [0, 0, 128], sizes = [2, 8, 16], strides = [1, 1, 1]} : vector<2x8x192xf32> to vector<2x8x16xf32>
    "tpu.trace_start"() <{level = 10 : i32, message = "bqd,bkd->bqk"}> : () -> ()
    %cst_148 = arith.constant dense<0.000000e+00> : vector<2x8x8xf32>
    %335 = tpu.matmul %332, %333, %cst_148 {dimension_numbers = #tpu.dot_dimension_numbers<[2], [2], [1], [1], [0, 0, 0, 1, 1, 1], [0], [0]>} : vector<2x8x16xf32>, vector<2x8x16xf32>, vector<2x8x8xf32> -> vector<2x8x8xf32>
    "tpu.trace_stop"() : () -> ()
    %cst_149 = arith.constant 2.500000e-01 : f32
    %336 = vector.broadcast %cst_149 : f32 to vector<2x8x8xf32>
    %337 = arith.mulf %335, %336 : vector<2x8x8xf32>
    %cst_150 = arith.constant -3.40282347E+38 : f32
    %338 = vector.shape_cast %40 : vector<2x1x8xi1> to vector<2x1x8xi1>
    %339 = vector.broadcast %338 : vector<2x1x8xi1> to vector<2x8x8xi1>
    %340 = vector.broadcast %cst_150 : f32 to vector<2x8x8xf32>
    %341 = arith.select %339, %337, %340 : vector<2x8x8xi1>, vector<2x8x8xf32>
    %cst_151 = arith.constant dense<0xFF800000> : vector<2x8xf32>
    %342 = vector.multi_reduction <maximumf>, %341, %cst_151 [2] : vector<2x8x8xf32> to vector<2x8xf32>
    %343 = vector.shape_cast %342 : vector<2x8xf32> to vector<2x8x1xf32>
    %344 = vector.broadcast %343 : vector<2x8x1xf32> to vector<2x8x8xf32>
    %345 = arith.subf %341, %344 : vector<2x8x8xf32>
    %346 = math.exp %345 : vector<2x8x8xf32>
    %cst_152 = arith.constant dense<0.000000e+00> : vector<2x8xf32>
    %347 = vector.multi_reduction <add>, %346, %cst_152 [2] : vector<2x8x8xf32> to vector<2x8xf32>
    %348 = vector.shape_cast %347 : vector<2x8xf32> to vector<2x8x1xf32>
    %349 = tpu.reciprocal %348 {approx = true} : vector<2x8x1xf32> -> vector<2x8x1xf32>
    %350 = vector.broadcast %349 : vector<2x8x1xf32> to vector<2x8x8xf32>
    %351 = arith.mulf %346, %350 : vector<2x8x8xf32>
    %cst_153 = arith.constant 0.000000e+00 : f32
    %352 = vector.shape_cast %40 : vector<2x1x8xi1> to vector<2x1x8xi1>
    %353 = vector.broadcast %352 : vector<2x1x8xi1> to vector<2x8x8xi1>
    %354 = vector.broadcast %cst_153 : f32 to vector<2x8x8xf32>
    %355 = arith.select %353, %351, %354 : vector<2x8x8xi1>, vector<2x8x8xf32>
    "tpu.trace_start"() <{level = 10 : i32, message = "bqk,bkd->bqd"}> : () -> ()
    %cst_154 = arith.constant dense<0.000000e+00> : vector<2x8x16xf32>
    %356 = tpu.matmul %355, %334, %cst_154 {dimension_numbers = #tpu.dot_dimension_numbers<[2], [1], [1], [2], [0, 0, 0, 1, 1, 2], [0], [0]>} : vector<2x8x8xf32>, vector<2x8x16xf32>, vector<2x8x16xf32> -> vector<2x8x16xf32>
    "tpu.trace_stop"() : () -> ()
    %357 = vector.extract_strided_slice %331 {offsets = [0, 0, 16], sizes = [2, 8, 16], strides = [1, 1, 1]} : vector<2x8x192xf32> to vector<2x8x16xf32>
    %358 = vector.extract_strided_slice %331 {offsets = [0, 0, 80], sizes = [2, 8, 16], strides = [1, 1, 1]} : vector<2x8x192xf32> to vector<2x8x16xf32>
    %359 = vector.extract_strided_slice %331 {offsets = [0, 0, 144], sizes = [2, 8, 16], strides = [1, 1, 1]} : vector<2x8x192xf32> to vector<2x8x16xf32>
    "tpu.trace_start"() <{level = 10 : i32, message = "bqd,bkd->bqk"}> : () -> ()
    %cst_155 = arith.constant dense<0.000000e+00> : vector<2x8x8xf32>
    %360 = tpu.matmul %357, %358, %cst_155 {dimension_numbers = #tpu.dot_dimension_numbers<[2], [2], [1], [1], [0, 0, 0, 1, 1, 1], [0], [0]>} : vector<2x8x16xf32>, vector<2x8x16xf32>, vector<2x8x8xf32> -> vector<2x8x8xf32>
    "tpu.trace_stop"() : () -> ()
    %cst_156 = arith.constant 2.500000e-01 : f32
    %361 = vector.broadcast %cst_156 : f32 to vector<2x8x8xf32>
    %362 = arith.mulf %360, %361 : vector<2x8x8xf32>
    %cst_157 = arith.constant -3.40282347E+38 : f32
    %363 = vector.shape_cast %40 : vector<2x1x8xi1> to vector<2x1x8xi1>
    %364 = vector.broadcast %363 : vector<2x1x8xi1> to vector<2x8x8xi1>
    %365 = vector.broadcast %cst_157 : f32 to vector<2x8x8xf32>
    %366 = arith.select %364, %362, %365 : vector<2x8x8xi1>, vector<2x8x8xf32>
    %cst_158 = arith.constant dense<0xFF800000> : vector<2x8xf32>
    %367 = vector.multi_reduction <maximumf>, %366, %cst_158 [2] : vector<2x8x8xf32> to vector<2x8xf32>
    %368 = vector.shape_cast %367 : vector<2x8xf32> to vector<2x8x1xf32>
    %369 = vector.broadcast %368 : vector<2x8x1xf32> to vector<2x8x8xf32>
    %370 = arith.subf %366, %369 : vector<2x8x8xf32>
    %371 = math.exp %370 : vector<2x8x8xf32>
    %cst_159 = arith.constant dense<0.000000e+00> : vector<2x8xf32>
    %372 = vector.multi_reduction <add>, %371, %cst_159 [2] : vector<2x8x8xf32> to vector<2x8xf32>
    %373 = vector.shape_cast %372 : vector<2x8xf32> to vector<2x8x1xf32>
    %374 = tpu.reciprocal %373 {approx = true} : vector<2x8x1xf32> -> vector<2x8x1xf32>
    %375 = vector.broadcast %374 : vector<2x8x1xf32> to vector<2x8x8xf32>
    %376 = arith.mulf %371, %375 : vector<2x8x8xf32>
    %cst_160 = arith.constant 0.000000e+00 : f32
    %377 = vector.shape_cast %40 : vector<2x1x8xi1> to vector<2x1x8xi1>
    %378 = vector.broadcast %377 : vector<2x1x8xi1> to vector<2x8x8xi1>
    %379 = vector.broadcast %cst_160 : f32 to vector<2x8x8xf32>
    %380 = arith.select %378, %376, %379 : vector<2x8x8xi1>, vector<2x8x8xf32>
    "tpu.trace_start"() <{level = 10 : i32, message = "bqk,bkd->bqd"}> : () -> ()
    %cst_161 = arith.constant dense<0.000000e+00> : vector<2x8x16xf32>
    %381 = tpu.matmul %380, %359, %cst_161 {dimension_numbers = #tpu.dot_dimension_numbers<[2], [1], [1], [2], [0, 0, 0, 1, 1, 2], [0], [0]>} : vector<2x8x8xf32>, vector<2x8x16xf32>, vector<2x8x16xf32> -> vector<2x8x16xf32>
    "tpu.trace_stop"() : () -> ()
    %382 = vector.extract_strided_slice %331 {offsets = [0, 0, 32], sizes = [2, 8, 16], strides = [1, 1, 1]} : vector<2x8x192xf32> to vector<2x8x16xf32>
    %383 = vector.extract_strided_slice %331 {offsets = [0, 0, 96], sizes = [2, 8, 16], strides = [1, 1, 1]} : vector<2x8x192xf32> to vector<2x8x16xf32>
    %384 = vector.extract_strided_slice %331 {offsets = [0, 0, 160], sizes = [2, 8, 16], strides = [1, 1, 1]} : vector<2x8x192xf32> to vector<2x8x16xf32>
    "tpu.trace_start"() <{level = 10 : i32, message = "bqd,bkd->bqk"}> : () -> ()
    %cst_162 = arith.constant dense<0.000000e+00> : vector<2x8x8xf32>
    %385 = tpu.matmul %382, %383, %cst_162 {dimension_numbers = #tpu.dot_dimension_numbers<[2], [2], [1], [1], [0, 0, 0, 1, 1, 1], [0], [0]>} : vector<2x8x16xf32>, vector<2x8x16xf32>, vector<2x8x8xf32> -> vector<2x8x8xf32>
    "tpu.trace_stop"() : () -> ()
    %cst_163 = arith.constant 2.500000e-01 : f32
    %386 = vector.broadcast %cst_163 : f32 to vector<2x8x8xf32>
    %387 = arith.mulf %385, %386 : vector<2x8x8xf32>
    %cst_164 = arith.constant -3.40282347E+38 : f32
    %388 = vector.shape_cast %40 : vector<2x1x8xi1> to vector<2x1x8xi1>
    %389 = vector.broadcast %388 : vector<2x1x8xi1> to vector<2x8x8xi1>
    %390 = vector.broadcast %cst_164 : f32 to vector<2x8x8xf32>
    %391 = arith.select %389, %387, %390 : vector<2x8x8xi1>, vector<2x8x8xf32>
    %cst_165 = arith.constant dense<0xFF800000> : vector<2x8xf32>
    %392 = vector.multi_reduction <maximumf>, %391, %cst_165 [2] : vector<2x8x8xf32> to vector<2x8xf32>
    %393 = vector.shape_cast %392 : vector<2x8xf32> to vector<2x8x1xf32>
    %394 = vector.broadcast %393 : vector<2x8x1xf32> to vector<2x8x8xf32>
    %395 = arith.subf %391, %394 : vector<2x8x8xf32>
    %396 = math.exp %395 : vector<2x8x8xf32>
    %cst_166 = arith.constant dense<0.000000e+00> : vector<2x8xf32>
    %397 = vector.multi_reduction <add>, %396, %cst_166 [2] : vector<2x8x8xf32> to vector<2x8xf32>
    %398 = vector.shape_cast %397 : vector<2x8xf32> to vector<2x8x1xf32>
    %399 = tpu.reciprocal %398 {approx = true} : vector<2x8x1xf32> -> vector<2x8x1xf32>
    %400 = vector.broadcast %399 : vector<2x8x1xf32> to vector<2x8x8xf32>
    %401 = arith.mulf %396, %400 : vector<2x8x8xf32>
    %cst_167 = arith.constant 0.000000e+00 : f32
    %402 = vector.shape_cast %40 : vector<2x1x8xi1> to vector<2x1x8xi1>
    %403 = vector.broadcast %402 : vector<2x1x8xi1> to vector<2x8x8xi1>
    %404 = vector.broadcast %cst_167 : f32 to vector<2x8x8xf32>
    %405 = arith.select %403, %401, %404 : vector<2x8x8xi1>, vector<2x8x8xf32>
    "tpu.trace_start"() <{level = 10 : i32, message = "bqk,bkd->bqd"}> : () -> ()
    %cst_168 = arith.constant dense<0.000000e+00> : vector<2x8x16xf32>
    %406 = tpu.matmul %405, %384, %cst_168 {dimension_numbers = #tpu.dot_dimension_numbers<[2], [1], [1], [2], [0, 0, 0, 1, 1, 2], [0], [0]>} : vector<2x8x8xf32>, vector<2x8x16xf32>, vector<2x8x16xf32> -> vector<2x8x16xf32>
    "tpu.trace_stop"() : () -> ()
    %407 = vector.extract_strided_slice %331 {offsets = [0, 0, 48], sizes = [2, 8, 16], strides = [1, 1, 1]} : vector<2x8x192xf32> to vector<2x8x16xf32>
    %408 = vector.extract_strided_slice %331 {offsets = [0, 0, 112], sizes = [2, 8, 16], strides = [1, 1, 1]} : vector<2x8x192xf32> to vector<2x8x16xf32>
    %409 = vector.extract_strided_slice %331 {offsets = [0, 0, 176], sizes = [2, 8, 16], strides = [1, 1, 1]} : vector<2x8x192xf32> to vector<2x8x16xf32>
    "tpu.trace_start"() <{level = 10 : i32, message = "bqd,bkd->bqk"}> : () -> ()
    %cst_169 = arith.constant dense<0.000000e+00> : vector<2x8x8xf32>
    %410 = tpu.matmul %407, %408, %cst_169 {dimension_numbers = #tpu.dot_dimension_numbers<[2], [2], [1], [1], [0, 0, 0, 1, 1, 1], [0], [0]>} : vector<2x8x16xf32>, vector<2x8x16xf32>, vector<2x8x8xf32> -> vector<2x8x8xf32>
    "tpu.trace_stop"() : () -> ()
    %cst_170 = arith.constant 2.500000e-01 : f32
    %411 = vector.broadcast %cst_170 : f32 to vector<2x8x8xf32>
    %412 = arith.mulf %410, %411 : vector<2x8x8xf32>
    %cst_171 = arith.constant -3.40282347E+38 : f32
    %413 = vector.shape_cast %40 : vector<2x1x8xi1> to vector<2x1x8xi1>
    %414 = vector.broadcast %413 : vector<2x1x8xi1> to vector<2x8x8xi1>
    %415 = vector.broadcast %cst_171 : f32 to vector<2x8x8xf32>
    %416 = arith.select %414, %412, %415 : vector<2x8x8xi1>, vector<2x8x8xf32>
    %cst_172 = arith.constant dense<0xFF800000> : vector<2x8xf32>
    %417 = vector.multi_reduction <maximumf>, %416, %cst_172 [2] : vector<2x8x8xf32> to vector<2x8xf32>
    %418 = vector.shape_cast %417 : vector<2x8xf32> to vector<2x8x1xf32>
    %419 = vector.broadcast %418 : vector<2x8x1xf32> to vector<2x8x8xf32>
    %420 = arith.subf %416, %419 : vector<2x8x8xf32>
    %421 = math.exp %420 : vector<2x8x8xf32>
    %cst_173 = arith.constant dense<0.000000e+00> : vector<2x8xf32>
    %422 = vector.multi_reduction <add>, %421, %cst_173 [2] : vector<2x8x8xf32> to vector<2x8xf32>
    %423 = vector.shape_cast %422 : vector<2x8xf32> to vector<2x8x1xf32>
    %424 = tpu.reciprocal %423 {approx = true} : vector<2x8x1xf32> -> vector<2x8x1xf32>
    %425 = vector.broadcast %424 : vector<2x8x1xf32> to vector<2x8x8xf32>
    %426 = arith.mulf %421, %425 : vector<2x8x8xf32>
    %cst_174 = arith.constant 0.000000e+00 : f32
    %427 = vector.shape_cast %40 : vector<2x1x8xi1> to vector<2x1x8xi1>
    %428 = vector.broadcast %427 : vector<2x1x8xi1> to vector<2x8x8xi1>
    %429 = vector.broadcast %cst_174 : f32 to vector<2x8x8xf32>
    %430 = arith.select %428, %426, %429 : vector<2x8x8xi1>, vector<2x8x8xf32>
    "tpu.trace_start"() <{level = 10 : i32, message = "bqk,bkd->bqd"}> : () -> ()
    %cst_175 = arith.constant dense<0.000000e+00> : vector<2x8x16xf32>
    %431 = tpu.matmul %430, %409, %cst_175 {dimension_numbers = #tpu.dot_dimension_numbers<[2], [1], [1], [2], [0, 0, 0, 1, 1, 2], [0], [0]>} : vector<2x8x8xf32>, vector<2x8x16xf32>, vector<2x8x16xf32> -> vector<2x8x16xf32>
    "tpu.trace_stop"() : () -> ()
    %432 = tpu.concatenate %356, %381, %406, %431 in 2 : vector<2x8x16xf32>, vector<2x8x16xf32>, vector<2x8x16xf32>, vector<2x8x16xf32> -> vector<2x8x64xf32>
    %433 = vector.shape_cast %432 : vector<2x8x64xf32> to vector<16x64xf32>
    %c1_176 = arith.constant 1 : index
    %c0_177 = arith.constant 0 : index
    %c0_178 = arith.constant 0 : index
    %434 = vector.load %arg18[%c1_176, %c0_177, %c0_178] : memref<2x64x64xf32, #tpu.memory_space<vmem>>, vector<1x64x64xf32>
    %435 = vector.shape_cast %434 : vector<1x64x64xf32> to vector<64x64xf32>
    %cst_179 = arith.constant dense<0.000000e+00> : vector<16x64xf32>
    %436 = tpu.matmul %433, %435, %cst_179 {dimension_numbers = #tpu.dot_dimension_numbers<[1], [0], [0], [1], [0, 0, 1, 1], [], []>} : vector<16x64xf32>, vector<64x64xf32>, vector<16x64xf32> -> vector<16x64xf32>
    %437 = arith.addf %275, %436 : vector<16x64xf32>
    %c1_180 = arith.constant 1 : index
    %c0_181 = arith.constant 0 : index
    %c0_182 = arith.constant 0 : index
    %438 = vector.load %arg19[%c1_180, %c0_181, %c0_182] : memref<2x1x64xf32, #tpu.memory_space<vmem>>, vector<1x1x64xf32>
    %439 = vector.shape_cast %438 : vector<1x1x64xf32> to vector<1x64xf32>
    %440 = vector.broadcast %439 : vector<1x64xf32> to vector<16x64xf32>
    %441 = arith.addf %437, %440 : vector<16x64xf32>
    %c1_183 = arith.constant 1 : index
    %c0_184 = arith.constant 0 : index
    %c0_185 = arith.constant 0 : index
    %442 = vector.load %arg12[%c1_183, %c0_184, %c0_185] : memref<2x64x64xf32, #tpu.memory_space<vmem>>, vector<1x64x64xf32>
    %443 = vector.shape_cast %442 : vector<1x64x64xf32> to vector<64x64xf32>
    %c1_186 = arith.constant 1 : index
    %c0_187 = arith.constant 0 : index
    %c0_188 = arith.constant 0 : index
    %444 = vector.load %arg13[%c1_186, %c0_187, %c0_188] : memref<2x1x64xf32, #tpu.memory_space<vmem>>, vector<1x1x64xf32>
    %445 = vector.shape_cast %444 : vector<1x1x64xf32> to vector<1x64xf32>
    %c1_189 = arith.constant 1 : index
    %c0_190 = arith.constant 0 : index
    %c0_191 = arith.constant 0 : index
    %446 = vector.load %arg14[%c1_189, %c0_190, %c0_191] : memref<2x64x128xf32, #tpu.memory_space<vmem>>, vector<1x64x128xf32>
    %447 = vector.shape_cast %446 : vector<1x64x128xf32> to vector<64x128xf32>
    %c1_192 = arith.constant 1 : index
    %c0_193 = arith.constant 0 : index
    %c0_194 = arith.constant 0 : index
    %448 = vector.load %arg15[%c1_192, %c0_193, %c0_194] : memref<2x1x128xf32, #tpu.memory_space<vmem>>, vector<1x1x128xf32>
    %449 = vector.shape_cast %448 : vector<1x1x128xf32> to vector<1x128xf32>
    %cst_195 = arith.constant dense<0.000000e+00> : vector<2x64xf32>
    %450 = tpu.matmul %36, %443, %cst_195 {dimension_numbers = #tpu.dot_dimension_numbers<[1], [0], [0], [1], [0, 0, 1, 1], [], []>} : vector<2x64xf32>, vector<64x64xf32>, vector<2x64xf32> -> vector<2x64xf32>
    %451 = vector.broadcast %445 : vector<1x64xf32> to vector<2x64xf32>
    %452 = arith.addf %450, %451 : vector<2x64xf32>
    %453 = arith.negf %452 : vector<2x64xf32>
    %454 = math.exp %453 : vector<2x64xf32>
    %cst_196 = arith.constant 1.000000e+00 : f32
    %455 = vector.broadcast %cst_196 : f32 to vector<2x64xf32>
    %456 = arith.addf %455, %454 : vector<2x64xf32>
    %457 = arith.divf %455, %456 : vector<2x64xf32>
    %458 = arith.mulf %452, %457 : vector<2x64xf32>
    %cst_197 = arith.constant dense<0.000000e+00> : vector<2x128xf32>
    %459 = tpu.matmul %458, %447, %cst_197 {dimension_numbers = #tpu.dot_dimension_numbers<[1], [0], [0], [1], [0, 0, 1, 1], [], []>} : vector<2x64xf32>, vector<64x128xf32>, vector<2x128xf32> -> vector<2x128xf32>
    %460 = vector.broadcast %449 : vector<1x128xf32> to vector<2x128xf32>
    %461 = arith.addf %459, %460 : vector<2x128xf32>
    %462 = vector.extract_strided_slice %461 {offsets = [0, 0], sizes = [2, 64], strides = [1, 1]} : vector<2x128xf32> to vector<2x64xf32>
    %463 = vector.extract_strided_slice %461 {offsets = [0, 64], sizes = [2, 64], strides = [1, 1]} : vector<2x128xf32> to vector<2x64xf32>
    %cst_198 = arith.constant dense<0.000000e+00> : vector<16xf32>
    %464 = vector.multi_reduction <add>, %441, %cst_198 [1] : vector<16x64xf32> to vector<16xf32>
    %465 = vector.shape_cast %464 : vector<16xf32> to vector<16x1xf32>
    %cst_199 = arith.constant 6.400000e+01 : f32
    %466 = vector.broadcast %cst_199 : f32 to vector<16x1xf32>
    %467 = arith.divf %465, %466 : vector<16x1xf32>
    %468 = vector.broadcast %467 : vector<16x1xf32> to vector<16x64xf32>
    %469 = arith.subf %441, %468 : vector<16x64xf32>
    %470 = arith.mulf %469, %469 : vector<16x64xf32>
    %cst_200 = arith.constant dense<0.000000e+00> : vector<16xf32>
    %471 = vector.multi_reduction <add>, %470, %cst_200 [1] : vector<16x64xf32> to vector<16xf32>
    %472 = vector.shape_cast %471 : vector<16xf32> to vector<16x1xf32>
    %cst_201 = arith.constant 6.400000e+01 : f32
    %473 = vector.broadcast %cst_201 : f32 to vector<16x1xf32>
    %474 = arith.divf %472, %473 : vector<16x1xf32>
    %cst_202 = arith.constant 9.99999974E-6 : f32
    %475 = vector.broadcast %cst_202 : f32 to vector<16x1xf32>
    %476 = arith.addf %474, %475 : vector<16x1xf32>
    %477 = math.rsqrt %476 : vector<16x1xf32>
    %478 = vector.broadcast %477 : vector<16x1xf32> to vector<16x64xf32>
    %479 = arith.mulf %469, %478 : vector<16x64xf32>
    %480 = vector.shape_cast %479 : vector<16x64xf32> to vector<2x8x64xf32>
    %481 = vector.shape_cast %462 : vector<2x64xf32> to vector<2x1x64xf32>
    %cst_203 = arith.constant 1.000000e+00 : f32
    %482 = vector.broadcast %cst_203 : f32 to vector<2x1x64xf32>
    %483 = arith.addf %482, %481 : vector<2x1x64xf32>
    %484 = vector.broadcast %483 : vector<2x1x64xf32> to vector<2x8x64xf32>
    %485 = arith.mulf %480, %484 : vector<2x8x64xf32>
    %486 = vector.shape_cast %463 : vector<2x64xf32> to vector<2x1x64xf32>
    %487 = vector.broadcast %486 : vector<2x1x64xf32> to vector<2x8x64xf32>
    %488 = arith.addf %485, %487 : vector<2x8x64xf32>
    %489 = vector.shape_cast %488 : vector<2x8x64xf32> to vector<16x64xf32>
    %c1_204 = arith.constant 1 : index
    %c0_205 = arith.constant 0 : index
    %c0_206 = arith.constant 0 : index
    %490 = vector.load %arg20[%c1_204, %c0_205, %c0_206] : memref<2x64x128xf32, #tpu.memory_space<vmem>>, vector<1x64x128xf32>
    %491 = vector.shape_cast %490 : vector<1x64x128xf32> to vector<64x128xf32>
    %cst_207 = arith.constant dense<0.000000e+00> : vector<16x128xf32>
    %492 = tpu.matmul %489, %491, %cst_207 {dimension_numbers = #tpu.dot_dimension_numbers<[1], [0], [0], [1], [0, 0, 1, 1], [], []>} : vector<16x64xf32>, vector<64x128xf32>, vector<16x128xf32> -> vector<16x128xf32>
    %c1_208 = arith.constant 1 : index
    %c0_209 = arith.constant 0 : index
    %c0_210 = arith.constant 0 : index
    %493 = vector.load %arg21[%c1_208, %c0_209, %c0_210] : memref<2x1x128xf32, #tpu.memory_space<vmem>>, vector<1x1x128xf32>
    %494 = vector.shape_cast %493 : vector<1x1x128xf32> to vector<1x128xf32>
    %495 = vector.broadcast %494 : vector<1x128xf32> to vector<16x128xf32>
    %496 = arith.addf %492, %495 : vector<16x128xf32>
    %497 = arith.negf %496 : vector<16x128xf32>
    %498 = math.exp %497 : vector<16x128xf32>
    %cst_211 = arith.constant 1.000000e+00 : f32
    %499 = vector.broadcast %cst_211 : f32 to vector<16x128xf32>
    %500 = arith.addf %499, %498 : vector<16x128xf32>
    %501 = arith.divf %499, %500 : vector<16x128xf32>
    %502 = arith.mulf %496, %501 : vector<16x128xf32>
    %c1_212 = arith.constant 1 : index
    %c0_213 = arith.constant 0 : index
    %c0_214 = arith.constant 0 : index
    %503 = vector.load %arg22[%c1_212, %c0_213, %c0_214] : memref<2x128x64xf32, #tpu.memory_space<vmem>>, vector<1x128x64xf32>
    %504 = vector.shape_cast %503 : vector<1x128x64xf32> to vector<128x64xf32>
    %cst_215 = arith.constant dense<0.000000e+00> : vector<16x64xf32>
    %505 = tpu.matmul %502, %504, %cst_215 {dimension_numbers = #tpu.dot_dimension_numbers<[1], [0], [0], [1], [0, 0, 1, 1], [], []>} : vector<16x128xf32>, vector<128x64xf32>, vector<16x64xf32> -> vector<16x64xf32>
    %506 = arith.addf %441, %505 : vector<16x64xf32>
    %c1_216 = arith.constant 1 : index
    %c0_217 = arith.constant 0 : index
    %c0_218 = arith.constant 0 : index
    %507 = vector.load %arg23[%c1_216, %c0_217, %c0_218] : memref<2x1x64xf32, #tpu.memory_space<vmem>>, vector<1x1x64xf32>
    %508 = vector.shape_cast %507 : vector<1x1x64xf32> to vector<1x64xf32>
    %509 = vector.broadcast %508 : vector<1x64xf32> to vector<16x64xf32>
    %510 = arith.addf %506, %509 : vector<16x64xf32>
    %cst_219 = arith.constant dense<0.000000e+00> : vector<16xf32>
    %511 = vector.multi_reduction <add>, %510, %cst_219 [1] : vector<16x64xf32> to vector<16xf32>
    %512 = vector.shape_cast %511 : vector<16xf32> to vector<16x1xf32>
    %cst_220 = arith.constant 6.400000e+01 : f32
    %513 = vector.broadcast %cst_220 : f32 to vector<16x1xf32>
    %514 = arith.divf %512, %513 : vector<16x1xf32>
    %515 = vector.broadcast %514 : vector<16x1xf32> to vector<16x64xf32>
    %516 = arith.subf %510, %515 : vector<16x64xf32>
    %517 = arith.mulf %516, %516 : vector<16x64xf32>
    %cst_221 = arith.constant dense<0.000000e+00> : vector<16xf32>
    %518 = vector.multi_reduction <add>, %517, %cst_221 [1] : vector<16x64xf32> to vector<16xf32>
    %519 = vector.shape_cast %518 : vector<16xf32> to vector<16x1xf32>
    %cst_222 = arith.constant 6.400000e+01 : f32
    %520 = vector.broadcast %cst_222 : f32 to vector<16x1xf32>
    %521 = arith.divf %519, %520 : vector<16x1xf32>
    %cst_223 = arith.constant 9.99999996E-13 : f32
    %522 = vector.broadcast %cst_223 : f32 to vector<16x1xf32>
    %523 = arith.addf %521, %522 : vector<16x1xf32>
    %524 = math.rsqrt %523 : vector<16x1xf32>
    %525 = vector.broadcast %524 : vector<16x1xf32> to vector<16x64xf32>
    %526 = arith.mulf %516, %525 : vector<16x64xf32>
    %c0_224 = arith.constant 0 : index
    %c0_225 = arith.constant 0 : index
    %527 = vector.load %arg24[%c0_224, %c0_225] : memref<1x64xf32, #tpu.memory_space<vmem>>, vector<1x64xf32>
    %528 = vector.broadcast %527 : vector<1x64xf32> to vector<16x64xf32>
    %529 = arith.mulf %526, %528 : vector<16x64xf32>
    %c0_226 = arith.constant 0 : index
    %c0_227 = arith.constant 0 : index
    %530 = vector.load %arg25[%c0_226, %c0_227] : memref<1x64xf32, #tpu.memory_space<vmem>>, vector<1x64xf32>
    %531 = vector.broadcast %530 : vector<1x64xf32> to vector<16x64xf32>
    %532 = arith.addf %529, %531 : vector<16x64xf32>
    %c0_228 = arith.constant 0 : index
    %c0_229 = arith.constant 0 : index
    %533 = vector.load %arg26[%c0_228, %c0_229] : memref<16x64xf32, #tpu.memory_space<vmem>>, vector<16x64xf32>
    tpu.vector_store %arg26[%c0_228, %c0_229], %532 {strides = array<i32>} : memref<16x64xf32, #tpu.memory_space<vmem>>, vector<16x64xf32>,
    return
  }
}

</mosaic_0001>

<bundles_post_ra>
// kernel: _lambda_.1
= control target key start
LH: loop header
LB: loop body
LE: loop exit
PB: predicated region body
PF: predicated region fallthrough
CT: control target
= control target key end

     0   :  { %s3969_s0 = inlined_call_operand.vmem [shape: f32[16,16], index: 0, kind: input, shape index: {}]   ;;  %s3970_s1 = inlined_call_operand.vmem [shape: f32[2,8], index: 1, kind: input, shape index: {}]   ;;  %s3971_s2 = inlined_call_operand.vmem [shape: f32[2,64], index: 2, kind: input, shape index: {}]   ;;  %s3972_s3 = inlined_call_operand.vmem [shape: f32[8,64], index: 3, kind: input, shape index: {}]   ;;  %s3973_s4 = inlined_call_operand.vmem [shape: f32[16,64], index: 4, kind: input, shape index: {}]   ;;  %s3974_s5 = inlined_call_operand.vmem [shape: f32[1,64], index: 5, kind: input, shape index: {}]   ;;  %s3975_s6 = inlined_call_operand.vmem [shape: f32[1,64], index: 6, kind: input, shape index: {}, may-alias: {6,24}]   ;;  %s3976_s7 = inlined_call_operand.vmem [shape: f32[1,64], index: 7, kind: input, shape index: {}, may-alias: {7,25}]   ;;  %s3977_s8 = inlined_call_operand.vmem [shape: f32[2,64,64], index: 8, kind: input, shape index: {}]   ;;  %s3978_s9 = inlined_call_operand.vmem [shape: f32[2,1,64], index: 9, kind: input, shape index: {}]   ;;  %s3979_s10 = inlined_call_operand.hbm [shape: f32[2,64,128], index: 10, kind: input, shape index: {}]   ;;  %s3980_s11 = inlined_call_operand.vmem [shape: f32[2,1,128], index: 11, kind: input, shape index: {}]   ;;  %s3981_s12 = inlined_call_operand.hbm [shape: f32[2,64,64], index: 12, kind: input, shape index: {}]   ;;  %s3982_s13 = inlined_call_operand.vmem [shape: f32[2,1,64], index: 13, kind: input, shape index: {}]   ;;  %s3983_s14 = inlined_call_operand.hbm [shape: f32[2,64,128], index: 14, kind: input, shape index: {}]   ;;  %s3984_s15 = inlined_call_operand.vmem [shape: f32[2,1,128], index: 15, kind: input, shape index: {}]   ;;  %s3985_s16 = inlined_call_operand.hbm [shape: f32[2,64,192], index: 16, kind: input, shape index: {}]   ;;  %s3986_s17 = inlined_call_operand.vmem [shape: f32[2,1,192], index: 17, kind: input, shape index: {}]   ;;  %s3987_s18 = inlined_call_operand.hbm [shape: f32[2,64,64], index: 18, kind: input, shape index: {}]   ;;  %s3988_s19 = inlined_call_operand.vmem [shape: f32[2,1,64], index: 19, kind: input, shape index: {}]   ;;  %s3989_s20 = inlined_call_operand.hbm [shape: f32[2,64,128], index: 20, kind: input, shape index: {}]   ;;  %s3990_s21 = inlined_call_operand.vmem [shape: f32[2,1,128], index: 21, kind: input, shape index: {}]   ;;  %s3991_s22 = inlined_call_operand.hbm [shape: f32[2,128,64], index: 22, kind: input, shape index: {}]   ;;  %s3992_s23 = inlined_call_operand.vmem [shape: f32[2,1,64], index: 23, kind: input, shape index: {}]   ;;  %s3993_s24 = inlined_call_operand.vmem [shape: f32[1,64], index: 24, kind: input, shape index: {}, may-alias: {6,24}]   ;;  %s3994_s25 = inlined_call_operand.vmem [shape: f32[1,64], index: 25, kind: input, shape index: {}, may-alias: {7,25}]   ;;  %s3995_s26 = inlined_call_operand.hbm [shape: f32[16,64], index: 26, kind: output, shape index: {}]  }
   0x1   :  { %4001 = sst [smem:[#allocation20_spill]] %s3969_s0 }
   0x2   :  { %4002 = sst [smem:[#allocation21_spill]] %s3970_s1 }
   0x3   :  { %4003 = sst [smem:[#allocation22_spill]] %s3971_s2 }
   0x4   :  { %4004 = sst [smem:[#allocation23_spill]] %s3972_s3 }
   0x5   :  { %4005 = sst [smem:[#allocation24_spill]] %s3973_s4 }
   0x6   :  { %4006 = sst [smem:[#allocation25_spill]] %s3974_s5 }
   0x7   :  { %4007 = sst [smem:[#allocation26_spill]] %s3975_s6 }
   0x8   :  { %4008 = sst [smem:[#allocation27_spill]] %s3976_s7 }
   0x9   :  { %4009 = sst [smem:[#allocation28_spill]] %s3977_s8 }
   0xa   :  { %4010 = sst [smem:[#allocation29_spill]] %s3978_s9 }
   0xb   :  { %4011 = sst [smem:[#allocation30_spill]] %s3979_s10 }
   0xc   :  { %31 = vsyncpa [#allocation3], 0 }
   0xd   :  { %32 = vsyncpa [#allocation6], 0 }
   0xe   :  { %33 = vsyncpa [#allocation9], 0 }
   0xf   :  { %34 = vsyncpa [#allocation12], 0 }
  0x10   :  { %35 = vsyncpa [#allocation4], 0  ;;  %s75_s7 = sshll.u32 %s3981_s12, 4  ;;  %s3133_s28 = smov [#allocation5]   ;;  %s76_s7 = int_to_ptr.hbm [resolvable:$true] %s75_s7 }
  0x11   :  { %s77_s8 = sshll.u32 %s3133_s28, 4  ;;  %s105_s0 = sshll.u32 %s3985_s16, 4  ;;  %s78_s8 = int_to_ptr.vmem [resolvable:$true] %s77_s8  ;;  %s106_s0 = int_to_ptr.hbm [resolvable:$true] %s105_s0 }
  0x12   :  { %s3134_s9 = smov 128   ;;  %s3135_s30 = smov 8  }
  0x13   :  { %83 = dma.hbm_to_vmem [thread:$0]  %s76_s7, 2048, %s78_s8, [#allocation6], %s3134_s9, %s3134_s9, %s3135_s30  }
  0x14   :  { %s3136_s2 = smov [#allocation8]   ;;  %s3137_s10 = smov 256  }
  0x15   :  { %s107_s5 = sshll.u32 %s3136_s2, 4  ;;  %s3138_s12 = smov 16   ;;  %s108_s5 = int_to_ptr.vmem [resolvable:$true] %s107_s5 }
  0x16   :  { %113 = dma.hbm_to_vmem [thread:$0]  %s106_s0, 4096, %s108_s5, [#allocation9], %s3137_s10, %s3137_s10, %s3138_s12  }
  0x17   :  { %s135_s27 = sshll.u32 %s3989_s20, 4  ;;  %s3139_s16 = smov [#allocation11]   ;;  %s136_s27 = int_to_ptr.hbm [resolvable:$true] %s135_s27 }
  0x18   :  { %s137_s3 = sshll.u32 %s3139_s16, 4  ;;  %s4012_s29 = sld [smem:[#allocation30_spill]]  ;;  %s138_s3 = int_to_ptr.vmem [resolvable:$true] %s137_s3 }
  0x19   :  { %143 = dma.hbm_to_vmem [thread:$0]  %s136_s27, 2048, %s138_s3, [#allocation12], %s3134_s9, %s3134_s9, %s3135_s30  }
  0x1a   :  { %s3140_s8 = smov [#allocation2]   ;;  %s90_s10 = sshll.u32 %s3983_s14, 4  ;;  %s91_s10 = int_to_ptr.hbm [resolvable:$true] %s90_s10 }
  0x1b   :  { %s62_s2 = sshll.u32 %s3140_s8, 4  ;;  %s120_s1 = sshll.u32 %s3987_s18, 4  ;;  %s63_s2 = int_to_ptr.vmem [resolvable:$true] %s62_s2  ;;  %s121_s1 = int_to_ptr.hbm [resolvable:$true] %s120_s1 }
  0x1c   :  { %s3141_s16 = smov [#allocation7]   ;;  %s3142_s27 = smov [#allocation10]  }
  0x1d   :  { %s92_s28 = sshll.u32 %s3141_s16, 4  ;;  %s122_s14 = sshll.u32 %s3142_s27, 4  ;;  %s93_s28 = int_to_ptr.vmem [resolvable:$true] %s92_s28  ;;  %s123_s14 = int_to_ptr.vmem [resolvable:$true] %s122_s14 }
  0x1e   :  { %s60_s7 = sshll.u32 %s4012_s29, 4  ;;  %s150_s29 = sshll.u32 %s3991_s22, 4  ;;  %s61_s7 = int_to_ptr.hbm [resolvable:$true] %s60_s7  ;;  %s151_s29 = int_to_ptr.hbm [resolvable:$true] %s150_s29 }
  0x1f   :  { %68 = dma.hbm_to_vmem [thread:$0]  %s61_s7, 2048, %s63_s2, [#allocation3], %s3134_s9, %s3134_s9, %s3135_s30  }
  0x20   :  { %98 = dma.hbm_to_vmem [thread:$0]  %s91_s10, 2048, %s93_s28, [#allocation6], %s3134_s9, %s3134_s9, %s3135_s30  }
  0x21   :  { %128 = dma.hbm_to_vmem [thread:$0]  %s121_s1, 2048, %s123_s14, [#allocation9], %s3134_s9, %s3134_s9, %s3135_s30  }
  0x22   :  { %s3143_s18 = smov [#allocation13]  }
  0x23   :  { %s152_s7 = sshll.u32 %s3143_s18, 4  ;;  %s153_s7 = int_to_ptr.vmem [resolvable:$true] %s152_s7 }
  0x24   :  { %158 = dma.hbm_to_vmem [thread:$0]  %s151_s29, 4096, %s153_s7, [#allocation12], %s3134_s9, %s3134_s9, %s3135_s30  }
  0x25   :  { %3123 = dma.done.wait [#allocation3], 2048  }
  0x26   :  { %3124 = vsyncadd [#allocation3], 4294965248 }
  0x27   :  { %3125 = dma.done.wait [#allocation6], 4096  }
  0x28   :  { %3126 = vsyncadd [#allocation6], 4294963200 }
  0x29   :  { %3127 = dma.done.wait [#allocation9], 6144  }
  0x2a   :  { %3128 = vsyncadd [#allocation9], 4294961152 }
  0x2b   :  { %3129 = dma.done.wait [#allocation12], 6144  }
  0x2c   :  { %3130 = vsyncadd [#allocation12], 4294961152  ;;  %s4013_s2 = sld [smem:[#allocation24_spill]]  ;;  %vm201_vm0 = vcmask 130048   ;;  %vm231_vm1 = vcmask 523264   ;;  %v3144_v18 = vmov 64.0  }
  0x2d   :  { %s4014_s6 = sld [smem:[#allocation20_spill]]  ;;  %2808 = vrcp.f32 %v3144_v18  ;;  %v323_v43 = vld [vmem:[#allocation2 + $0x38] sm:$0xff]  ;;  %v322_v44 = vld [vmem:[#allocation2 + $0x30] sm:$0xff]  ;;  %v321_v46 = vld [vmem:[#allocation2 + $0x28] sm:$0xff]  ;;  %s3145_s3 = smov 64  }
  0x2e   :  { %s4015_s14 = sld [smem:[#allocation28_spill]]  ;;  %385 = vmatpush.msra.mxu3 %v323_v43  ;;  %v320_v53 = vld [vmem:[#allocation2 + $0x20] sm:$0xff]  ;;  %v319_v54 = vld [vmem:[#allocation2 + $0x18] sm:$0xff]  ;;  %v318_v57 = vld [vmem:[#allocation2 + $0x10] sm:$0xff]  ;;  %s3146_s7 = smov 48  }
  0x2f   :  { %s4016_s0 = sld [smem:[#allocation25_spill]]  ;;  %v317_v60 = vld [vmem:[#allocation2 + $0x8] sm:$0xff]  ;;  %v316_v63 = vld [vmem:[#allocation2] sm:$0xff]  ;;  %s3147_s8 = smov 96  }
  0x30   :  { %s4017_s29 = sld [smem:[#allocation22_spill]]  ;;  %386 = vmatpush.msra.mxu3 %v322_v44  ;;  %s3150_s5 = smov 80  }
  0x31   :  { %s4018_s22 = sld [smem:[#allocation29_spill]] }
  0x32   :  { %v196_v0 = vld [vmem:[%s4013_s2 + $0x8] sm:$0xff]  ;;  %v195_v1 = vld [vmem:[%s4013_s2] sm:$0xff]  ;;  %387 = vmatpush.msra.mxu3 %v321_v46  ;;  %s4020_s20 = sld [smem:[#allocation27_spill]]  ;;  %v478_v46 = vld [vmem:[#allocation8 + $0x70] sm:$0xff]  ;;  %s3148_s2 = smov 112  }
  0x33   :  { %222 = vmatpush.msra.mxu0 %v196_v0  ;;  %v193_v2 = vld [vmem:[%s4014_s6] sm:$0xff]  ;;  %v194_v3 = vld [vmem:[%s4014_s6 + $0x8] sm:$0xff]  ;;  %v2809_v21 = vpop.eup %2808  ;;  %s4021_s16 = sld [smem:[#allocation23_spill]] }
  0x34   :  { %v314_v4 = vld [vmem:[%s4015_s14 + $0x38] sm:$0xff]  ;;  %v313_v5 = vld [vmem:[%s4015_s14 + $0x30] sm:$0xff]  ;;  %v312_v6 = vld [vmem:[%s4015_s14 + $0x28] sm:$0xff]  ;;  %v239_v22 = vmul.f32 64.0, %v2809_v21  ;;  %vm243_vm2 = vweird.f32 %v2809_v21  ;;  %388 = vmatpush.msra.mxu3 %v320_v53  ;;  %s4022_s6 = sld [smem:[#allocation21_spill]] }
  0x35   :  { %223 = vmatpush.msra.mxu0 %v195_v1  ;;  %339 = vmatpush.msra.mxu1 %v314_v4  ;;  %v311_v7 = vld [vmem:[%s4015_s14 + $0x20] sm:$0xff]  ;;  %v310_v15 = vld [vmem:[%s4015_s14 + $0x18] sm:$0xff]  ;;  %v309_v16 = vld [vmem:[%s4015_s14 + $0x10] sm:$0xff] }
  0x36   :  { %2661 = vmatmul.msk.f32.vlgmr.msra.gmra.mxu0 %vm201_vm0, %v193_v2  ;;  %v2789_v8 = vld [vmem:[%s4016_s0] ss:$0 sm:$0xff]  ;;  %v308_v17 = vld [vmem:[%s4015_s14 + $0x8] sm:$0xff]  ;;  %v240_v23 = vsub.f32 1.0, %v239_v22  ;;  %389 = vmatpush.msra.mxu3 %v319_v54  ;;  %s4019_s0 = sld [smem:[#allocation26_spill]]  ;;  %v470_v54 = vld [vmem:[#allocation8 + $0x30] sm:$0xff] }
  0x37   :  { %340 = vmatpush.msra.mxu1 %v313_v5  ;;  %v307_v19 = vld [vmem:[%s4015_s14] sm:$0xff]  ;;  %v473_v53 = vld [vmem:[#allocation8 + $0x48] sm:$0xff] }
  0x38   :  { %v3374_v20 = vld [vmem:[%s4017_s29] sm:$0x3]  ;;  %v241_v24 = vmul.f32 %v2809_v21, %v240_v23  ;;  %390 = vmatpush.msra.mxu3 %v318_v57  ;;  %v469_v57 = vld [vmem:[#allocation8 + $0x28] sm:$0xff] }
  0x39   :  { %341 = vmatpush.msra.mxu1 %v312_v6  ;;  %v2790_v37 = vld [vmem:[%s4018_s22] ss:$0 sm:$0xff] }
  0x3a   :  { %v242_v25 = vadd.f32 %v2809_v21, %v241_v24  ;;  %391 = vmatpush.msra.mxu3 %v317_v60  ;;  %v297_v23 = vld [vmem:[%s4021_s16] sm:$0xff] }
  0x3b   :  { %342 = vmatpush.msra.mxu1 %v311_v7  ;;  %v464_v60 = vld [vmem:[#allocation8] sm:$0xff] }
  0x3c   :  { %v3378_v26 = vsel %vm243_vm2, %v2809_v21, %v242_v25  ;;  %392 = vmatpush.msra.mxu3 %v316_v63 }
  0x3d   :  { %343 = vmatpush.msra.mxu1 %v310_v15 }
  0x3e   :  { %2662 = vmatmul.msk.f32.gmra.mxu0 %vm201_vm0, %v194_v3  ;;  %500 = vmatpush.msrb.mxu3 %v478_v46 }
  0x3f   :  { %344 = vmatpush.msra.mxu1 %v309_v16  ;;  %v2792_v16 = vld [vmem:[%s4020_s20] ss:$0 sm:$0xff] }
  0x41   :  { %345 = vmatpush.msra.mxu1 %v308_v17 }
  0x43   :  { %346 = vmatpush.msra.mxu1 %v307_v19 }
  0x44   :  { %2663 = vmatmul.msk.f32.vlgmr.msra.gmra.mxu1 %vm231_vm1, %v3374_v20 }
  0xb3   :  { %v225_v9 = vpop.f32.mrf.mxu0 }
  0xb4   :  { %v226_v10 = vadd.f32 %v2789_v8, %v225_v9 }
  0xb6   :  { %v232_v11 = vsel %vm231_vm1, %v226_v10, 0.0 }
  0xb7   :  { %233 = vadd.xlane.f32.xlu0 %v232_v11 }
  0xbb   :  { %v228_v12 = vpop.f32.mrf.mxu0 }
  0xbc   :  { %v229_v13 = vadd.f32 %v2789_v8, %v228_v12  ;;  %v2791_v12 = vld [vmem:[%s4019_s0] ss:$0 sm:$0xff]  ;;  %s3149_s0 = smov 32  }
  0xbe   :  { %v235_v14 = vsel %vm231_vm1, %v229_v13, 0.0 }
  0xbf   :  { %236 = vadd.xlane.f32.xlu2 %v235_v14 }
  0xc1   :  { %v348_v38 = vpop.f32.mrf.mxu1 }
  0xc2   :  { %v349_v39 = vadd.f32 %v2790_v37, %v348_v38 }
  0xc4   :  { %v2664_v40 = vmul.f32 -1.442695, %v349_v39 }
  0xc6   :  { %2810 = vpow2.f32 %v2664_v40 }
  0xcc   :  { %v2811_v41 = vpop.eup %2810 }
  0xcd   :  { %v354_v42 = vadd.f32 1.0, %v2811_v41 }
  0xcf   :  { %2812 = vrcp.f32 %v354_v42  ;;  %v366_v50 = vand.u32 2147483648, %v354_v42  ;;  %vm360_vm3 = vweird.f32 %v354_v42  ;;  %v364_v52 = vand.u32 2147483647, %v354_v42 }
  0xd1   :  { %v367_v58 = vor.u32 1.1754944e-38, %v366_v50  ;;  %vm365_vm6 = vcmp.eq.f32.partialorder %v364_v52, 8.507059e+37  ;;  %v474_v50 = vld [vmem:[#allocation8 + $0x50] sm:$0xff]  ;;  %v472_v52 = vld [vmem:[#allocation8 + $0x40] sm:$0xff] }
  0xd5   :  { %v2813_v45 = vpop.eup %2812 }
  0xd6   :  { %v356_v48 = vmul.f32 %v2813_v45, %v354_v42  ;;  %vm361_vm4 = vweird.f32 %v2813_v45 }
  0xd7   :  { %vm362_vm5 = vmor %vm360_vm3, %vm361_vm4 }
  0xd8   :  { %v357_v51 = vsub.f32 1.0, %v356_v48  ;;  %v476_v48 = vld [vmem:[#allocation8 + $0x60] sm:$0xff] }
  0xd9   :  { %501 = vmatpush.msrb.mxu3 %v476_v48 }
  0xda   :  { %v358_v56 = vmul.f32 %v2813_v45, %v357_v51  ;;  %v475_v51 = vld [vmem:[#allocation8 + $0x58] sm:$0xff] }
  0xdb   :  { %502 = vmatpush.msrb.mxu3 %v474_v50 }
  0xdc   :  { %v359_v59 = vadd.f32 %v2813_v45, %v358_v56  ;;  %v468_v56 = vld [vmem:[#allocation8 + $0x20] sm:$0xff] }
  0xdd   :  { %503 = vmatpush.msrb.mxu3 %v472_v52 }
  0xde   :  { %v363_v62 = vsel %vm362_vm5, %v2813_v45, %v359_v59  ;;  %v467_v59 = vld [vmem:[#allocation8 + $0x18] sm:$0xff] }
  0xdf   :  { %v368_v1 = vsel %vm365_vm6, %v367_v58, %v363_v62  ;;  %504 = vmatpush.msrb.mxu3 %v470_v54  ;;  %v466_v58 = vld [vmem:[#allocation8 + $0x10] sm:$0xff] }
  0xe0   :  { %v370_v2 = vmul.f32 %v368_v1, %v349_v39 }
  0xe1   :  { %505 = vmatpush.msrb.mxu3 %v468_v56 }
  0xe2   :  { %2665 = vmatmul.msk.f32.vlgmr.msra.gmra.mxu3 %vm231_vm1, %v370_v2 }
  0xe3   :  { %506 = vmatpush.msrb.mxu3 %v466_v58 }
  0xe5   :  { %507 = vmatpush.msrb.mxu3 %v464_v60 }
 0x12a   :  { %v234_v27 = vpop.xlane.xlu0 %233 }
 0x12b   :  { %v245_v28 = vmul.f32 %v3378_v26, %v234_v27 }
 0x12d   :  { %v3381_v29 = vsub.f32 %v226_v10, %v245_v28 }
 0x12f   :  { %v249_v30 = vmul.f32 %v3381_v29, %v3381_v29 }
 0x131   :  { %v251_v31 = vsel %vm231_vm1, %v249_v30, 0.0 }
 0x132   :  { %v237_v32 = vpop.xlane.xlu2 %236  ;;  %252 = vadd.xlane.f32.xlu0 %v251_v31 }
 0x133   :  { %v246_v33 = vmul.f32 %v3378_v26, %v237_v32 }
 0x135   :  { %v3387_v34 = vsub.f32 %v229_v13, %v246_v33 }
 0x137   :  { %v250_v35 = vmul.f32 %v3387_v34, %v3387_v34 }
 0x139   :  { %v254_v36 = vsel %vm231_vm1, %v250_v35, 0.0  ;;  %v2793_v35 = vld [vmem:[%s3980_s11] ss:$0 sm:$0xff] }
 0x13a   :  { %255 = vadd.xlane.f32.xlu0 %v254_v36 }
 0x165   :  { %v394_v36 = vpop.f32.mrf.mxu3 }
 0x166   :  { %v3418_v37 = vadd.f32 %v2793_v35, %v394_v36 }
 0x168   :  { %v442_v44 = vrot.slane %v3418_v37, 1 }
 0x16a   :  { %v455_v45 = vperm.slane %v442_v44, 0 }
 0x1a5   :  { %v253_v47 = vpop.xlane.xlu0 %252 }
 0x1a6   :  { %v257_v49 = vmul.f32 %v253_v47, %v3378_v26  ;;  %v479_v47 = vld [vmem:[#allocation8 + $0x78] sm:$0xff] }
 0x1a7   :  { %523 = vmatpush.msrb.mxu0 %v479_v47 }
 0x1a8   :  { %v259_v55 = vadd.f32 1e-05, %v257_v49  ;;  %v477_v49 = vld [vmem:[#allocation8 + $0x68] sm:$0xff] }
 0x1a9   :  { %524 = vmatpush.msrb.mxu0 %v477_v49 }
 0x1aa   :  { %2814 = vrsqrt.f32 %v259_v55  ;;  %vm267_vm8 = vweird.f32 %v259_v55 }
 0x1ab   :  { %525 = vmatpush.msrb.mxu0 %v475_v51 }
 0x1ad   :  { %v256_v61 = vpop.xlane.xlu0 %255  ;;  %526 = vmatpush.msrb.mxu0 %v473_v53 }
 0x1ae   :  { %v258_v0 = vmul.f32 %v256_v61, %v3378_v26  ;;  %v465_v61 = vld [vmem:[#allocation8 + $0x8] sm:$0xff] }
 0x1b0   :  { %v2815_v3 = vpop.eup %2814  ;;  %v260_v4 = vadd.f32 1e-05, %v258_v0 }
 0x1b1   :  { %v262_v5 = vmul.f32 %v2815_v3, %v259_v55  ;;  %vm268_vm7 = vweird.f32 %v2815_v3  ;;  %v471_v55 = vld [vmem:[#allocation8 + $0x38] sm:$0xff] }
 0x1b2   :  { %2816 = vrsqrt.f32 %v260_v4  ;;  %vm269_vm9 = vmor %vm267_vm8, %vm268_vm7  ;;  %vm277_vm10 = vweird.f32 %v260_v4  ;;  %527 = vmatpush.msrb.mxu0 %v471_v55  ;;  %v3481_v55 = vld [vmem:[%s4022_s6] sm:$0x3]  ;;  %vm602_vm7 = vcmask 64512  }
 0x1b3   :  { %v263_v6 = vmul.f32 %v2815_v3, %v262_v5  ;;  %vm305_vm5 = vcmp.gt.f32.partialorder %v3481_v55, 0.0 }
 0x1b4   :  { %528 = vmatpush.msrb.mxu0 %v469_v57  ;;  %v3151_v57 = vmov 0  }
 0x1b5   :  { %v264_v7 = vmul.f32 0.5, %v263_v6  ;;  %v594_v58 = vsel %vm305_vm5, 1, %v3151_v57 }
 0x1b6   :  { %529 = vmatpush.msrb.mxu0 %v467_v59  ;;  %v596_v59 = vperm.slane %v594_v58, 0  ;;  %v303_v58 = vrot.slane %v3481_v55, 1 }
 0x1b7   :  { %v265_v8 = vsub.f32 1.5, %v264_v7 }
 0x1b8   :  { %v2817_v9 = vpop.eup %2816  ;;  %530 = vmatpush.msrb.mxu0 %v465_v61  ;;  %vm3485_vm6 = vcmp.eq.s32.totalorder %v596_v59, 1  ;;  %vm306_vm8 = vcmp.gt.f32.partialorder %v303_v58, 0.0 }
 0x1b9   :  { %v266_v10 = vmul.f32 %v2815_v3, %v265_v8  ;;  %v272_v11 = vmul.f32 %v2817_v9, %v260_v4  ;;  %vm278_vm11 = vweird.f32 %v2817_v9 }
 0x1ba   :  { %vm279_vm12 = vmor %vm277_vm10, %vm278_vm11  ;;  %vm1109_vm10 = vcmask 261120   ;;  %vm1112_vm11 = vcmask 392192  }
 0x1bb   :  { %v270_v13 = vsel %vm269_vm9, %v2815_v3, %v266_v10  ;;  %v273_v14 = vmul.f32 %v2817_v9, %v272_v11  ;;  %v444_v11 = vadd.f32 1.0, %v3418_v37 }
 0x1bc   :  { %v281_v15 = vmul.f32 %v270_v13, %v3381_v29 }
 0x1bd   :  { %v274_v17 = vmul.f32 0.5, %v273_v14  ;;  %v448_v14 = vperm.slane %v444_v11, 0 }
 0x1be   :  { %v287_v18 = vmul.f32 %v2791_v12, %v281_v15 }
 0x1bf   :  { %v275_v19 = vsub.f32 1.5, %v274_v17 }
 0x1c0   :  { %v293_v21 = vadd.f32 %v2792_v16, %v287_v18 }
 0x1c1   :  { %v276_v22 = vmul.f32 %v2817_v9, %v275_v19 }
 0x1c2   :  { %v295_v24 = vmul.f32 8.0, %v293_v21 }
 0x1c3   :  { %v280_v25 = vsel %vm279_vm12, %v2817_v9, %v276_v22 }
 0x1c4   :  { %v282_v27 = vmul.f32 %v280_v25, %v3387_v34  ;;  %v3409_v28 = vadd.f32 %v297_v23, %v295_v24  ;;  %v454_v34 = vperm.slane %v3418_v37, 0 }
 0x1c6   :  { %v397_v29 = vsel %vm231_vm1, %v3409_v28, 0.0  ;;  %v288_v30 = vmul.f32 %v2791_v12, %v282_v27  ;;  %456 = vrot.lane.b32.xlu2 %v454_v34, %s3145_s3  ;;  %v3449_v34 = vld [vmem:[%s3986_s17] sm:$0x3] }
 0x1c7   :  { %398 = vadd.xlane.f32.xlu1 %v397_v29  ;;  %v483_v46 = vperm.slane %v3449_v34, 1 }
 0x1c8   :  { %v294_v31 = vadd.f32 %v2792_v16, %v288_v30  ;;  %v445_v30 = vadd.f32 1.0, %v442_v44 }
 0x1ca   :  { %v296_v32 = vmul.f32 8.0, %v294_v31  ;;  %v449_v35 = vperm.slane %v445_v30, 0 }
 0x1cc   :  { %v3413_v33 = vadd.f32 %v297_v23, %v296_v32 }
 0x1ce   :  { %v400_v43 = vsel %vm231_vm1, %v3413_v33, 0.0 }
 0x220   :  { %v457_v17 = vpop.permute.xlu2 %456 }
 0x23a   :  { %v399_v38 = vpop.xlane.xlu1 %398 }
 0x23b   :  { %v403_v39 = vmul.f32 %v399_v38, %v3378_v26 }
 0x23d   :  { %v3424_v40 = vsub.f32 %v3409_v28, %v403_v39 }
 0x23f   :  { %v407_v41 = vmul.f32 %v3424_v40, %v3424_v40 }
 0x241   :  { %v409_v42 = vsel %vm231_vm1, %v407_v41, 0.0 }
 0x242   :  { %410 = vadd.xlane.f32.xlu1 %v409_v42 }
 0x24a   :  { %401 = vadd.xlane.f32.xlu1 %v400_v43 }
 0x263   :  { %458 = vrot.lane.b32.xlu1 %v455_v45, %s3145_s3 }
 0x2b5   :  { %v411_v62 = vpop.xlane.xlu1 %410 }
 0x2b6   :  { %v415_v63 = vmul.f32 %v411_v62, %v3378_v26 }
 0x2b8   :  { %v417_v0 = vadd.f32 1e-05, %v415_v63 }
 0x2ba   :  { %2818 = vrsqrt.f32 %v417_v0  ;;  %vm425_vm14 = vweird.f32 %v417_v0 }
 0x2bd   :  { %v402_v1 = vpop.xlane.xlu1 %401 }
 0x2be   :  { %v404_v2 = vmul.f32 %v402_v1, %v3378_v26 }
 0x2c0   :  { %v2819_v3 = vpop.eup %2818  ;;  %v406_v4 = vsub.f32 %v3413_v33, %v404_v2 }
 0x2c1   :  { %v420_v5 = vmul.f32 %v2819_v3, %v417_v0  ;;  %vm426_vm13 = vweird.f32 %v2819_v3 }
 0x2c2   :  { %v408_v6 = vmul.f32 %v406_v4, %v406_v4  ;;  %vm427_vm15 = vmor %vm425_vm14, %vm426_vm13 }
 0x2c3   :  { %v421_v7 = vmul.f32 %v2819_v3, %v420_v5 }
 0x2c4   :  { %v412_v8 = vsel %vm231_vm1, %v408_v6, 0.0 }
 0x2c5   :  { %v422_v9 = vmul.f32 0.5, %v421_v7  ;;  %413 = vadd.xlane.f32.xlu0 %v412_v8 }
 0x2c7   :  { %v423_v10 = vsub.f32 1.5, %v422_v9 }
 0x2c9   :  { %v424_v12 = vmul.f32 %v2819_v3, %v423_v10 }
 0x2cb   :  { %v428_v13 = vsel %vm427_vm15, %v2819_v3, %v424_v12 }
 0x2cc   :  { %v439_v15 = vmul.f32 %v428_v13, %v3424_v40  ;;  %v482_v40 = vperm.slane %v3449_v34, 0 }
 0x2ce   :  { %v452_v16 = vmul.f32 %v448_v14, %v439_v15 }
 0x2d0   :  { %v462_v18 = vadd.f32 %v457_v17, %v452_v16 }
 0x2d2   :  { %2666 = vmatmul.msk.f32.vlgmr.msrb.gmra.mxu3 %vm231_vm1, %v462_v18  ;;  %2668 = vmatmul.msk.f32.vlgmr.msrb.gmra.mxu0 %vm231_vm1, %v462_v18 }
 0x2d5   :  { %v459_v39 = vpop.permute.xlu1 %458 }
 0x338   :  { %v414_v19 = vpop.xlane.xlu0 %413 }
 0x339   :  { %v416_v21 = vmul.f32 %v414_v19, %v3378_v26 }
 0x33b   :  { %v418_v22 = vadd.f32 1e-05, %v416_v21 }
 0x33d   :  { %2820 = vrsqrt.f32 %v418_v22  ;;  %vm435_vm3 = vweird.f32 %v418_v22 }
 0x343   :  { %v2821_v23 = vpop.eup %2820 }
 0x344   :  { %v430_v24 = vmul.f32 %v2821_v23, %v418_v22  ;;  %vm436_vm2 = vweird.f32 %v2821_v23 }
 0x345   :  { %vm437_vm4 = vmor %vm435_vm3, %vm436_vm2 }
 0x346   :  { %v431_v25 = vmul.f32 %v2821_v23, %v430_v24 }
 0x348   :  { %v432_v27 = vmul.f32 0.5, %v431_v25 }
 0x34a   :  { %v433_v29 = vsub.f32 1.5, %v432_v27 }
 0x34c   :  { %v434_v31 = vmul.f32 %v2821_v23, %v433_v29 }
 0x34e   :  { %v438_v32 = vsel %vm437_vm4, %v2821_v23, %v434_v31 }
 0x34f   :  { %v440_v36 = vmul.f32 %v438_v32, %v406_v4  ;;  %v532_v47 = vpop.f32.mrf.mxu0 }
 0x350   :  { %v3467_v49 = vadd.f32 %v532_v47, %v483_v46 }
 0x351   :  { %v453_v38 = vmul.f32 %v449_v35, %v440_v36 }
 0x353   :  { %v463_v41 = vadd.f32 %v459_v39, %v453_v38 }
 0x355   :  { %v509_v42 = vpop.f32.mrf.mxu3  ;;  %2667 = vmatmul.msk.f32.gmra.mxu3 %vm231_vm1, %v463_v41  ;;  %2669 = vmatmul.msk.f32.gmra.mxu0 %vm231_vm1, %v463_v41 }
 0x356   :  { %v510_v37 = vadd.f32 %v509_v42, %v482_v40 }
 0x358   :  { %675 = vrot.lane.b32.xlu2 %v510_v37, %s3146_s7  ;;  %811 = vrot.lane.b32.xlu1 %v510_v37, %s3147_s8 }
 0x359   :  { %539 = vrot.lane.b32.xlu0 %v510_v37, %s3145_s3 }
 0x360   :  { %673 = vrot.lane.b32.xlu2 %v510_v37, %s3148_s2 }
 0x361   :  { %949 = vrot.lane.b32.xlu0 %v510_v37, %s3138_s12 }
 0x368   :  { %813 = vrot.lane.b32.xlu2 %v510_v37, %s3149_s0 }
 0x370   :  { %947 = vrot.lane.b32.xlu2 %v510_v37, %s3150_s5 }
 0x3b2   :  { %v676_v43 = vpop.permute.xlu2 %675 }
 0x3b3   :  { %2676 = vmatpush.xpose.msk.msra.mxu3 %vm201_vm0, %v676_v43 }
 0x3ba   :  { %v674_v44 = vpop.permute.xlu2 %673 }
 0x3bb   :  { %2677 = vmatmul.msk.f32.vlgmr.msra.gmra.mxu3 %vm201_vm0, %v674_v44 }
 0x3c2   :  { %v814_v45 = vpop.permute.xlu2 %813 }
 0x3c3   :  { %2682 = vmatpush.xpose.msk.msrb.mxu3 %vm201_vm0, %v814_v45 }
 0x3ca   :  { %v812_v48 = vpop.permute.xlu1 %811  ;;  %v948_v54 = vpop.permute.xlu2 %947 }
 0x3cb   :  { %v540_v50 = vpop.permute.xlu0 %539  ;;  %2683 = vmatmul.msk.f32.vlgmr.msrb.gmra.mxu3 %vm201_vm0, %v812_v48 }
 0x3cc   :  { %2670 = vmatpush.xpose.msk.msrb.mxu1 %vm201_vm0, %v540_v50 }
 0x3cf   :  { %2671 = vmatmul.msk.f32.vlgmr.msrb.gmra.mxu1 %vm201_vm0, %v510_v37 }
 0x3d0   :  { %645 = vmatpush.msra.mxu1 %v3467_v49 }
 0x3d2   :  { %v535_v51 = vpop.f32.mrf.mxu0 }
 0x3d3   :  { %v950_v52 = vpop.permute.xlu0 %949  ;;  %v3473_v53 = vadd.f32 %v535_v51, %v483_v46 }
 0x3d4   :  { %2688 = vmatpush.xpose.msk.msra.mxu3 %vm201_vm0, %v950_v52 }
 0x3d5   :  { %668 = vmatpush.msra.mxu2 %v3473_v53 }
 0x3d7   :  { %2689 = vmatmul.msk.f32.vlgmr.msra.gmra.mxu3 %vm201_vm0, %v948_v54 }
 0x3d8   :  { %v512_v56 = vpop.f32.mrf.mxu3 }
 0x3d9   :  { %v513_v9 = vadd.f32 %v512_v56, %v482_v40 }
 0x43e   :  { %v698_v60 = vpop.f32.mrf.mxu3 }
 0x43f   :  { %v729_v62 = vmul.f32 0.25, %v698_v60 }
 0x441   :  { %v731_v63 = vsel %vm3485_vm6, %v729_v62, -3.4028235e+38 }
 0x442   :  { %v733_v0 = vsel %vm602_vm7, %v731_v63, -inf }
 0x443   :  { %734 = vmax.xlane.f32.xlu0 %v733_v0  ;;  %v595_v0 = vsel %vm306_vm8, 1, %v3151_v57 }
 0x44c   :  { %v562_v1 = vpop.f32.mrf.mxu1 }
 0x44d   :  { %v592_v2 = vmul.f32 0.25, %v562_v1 }
 0x44e   :  { %v836_v3 = vpop.f32.mrf.mxu3 }
 0x44f   :  { %v867_v4 = vmul.f32 0.25, %v836_v3  ;;  %v600_v5 = vsel %vm3485_vm6, %v592_v2, -3.4028235e+38  ;;  %v597_v3 = vperm.slane %v595_v0, 0 }
 0x450   :  { %v603_v6 = vsel %vm602_vm7, %v600_v5, -inf }
 0x451   :  { %604 = vmax.xlane.f32.xlu1 %v603_v6  ;;  %v869_v7 = vsel %vm3485_vm6, %v867_v4, -3.4028235e+38  ;;  %vm3540_vm9 = vcmp.eq.s32.totalorder %v597_v3, 1 }
 0x452   :  { %v871_v8 = vsel %vm602_vm7, %v869_v7, -inf }
 0x453   :  { %872 = vmax.xlane.f32.xlu2 %v871_v8 }
 0x457   :  { %703 = vrot.lane.b32.xlu0 %v513_v9, %s3146_s7 }
 0x45a   :  { %v972_v10 = vpop.f32.mrf.mxu3 }
 0x45b   :  { %v1003_v11 = vmul.f32 0.25, %v972_v10 }
 0x45d   :  { %v1005_v12 = vsel %vm3485_vm6, %v1003_v11, -3.4028235e+38 }
 0x45e   :  { %v1007_v13 = vsel %vm602_vm7, %v1005_v12, -inf }
 0x45f   :  { %1008 = vmax.xlane.f32.xlu1 %v1007_v13 }
 0x46b   :  { %758 = vrot.lane.b32.xlu2 %v3467_v49, %s3148_s2 }
 0x478   :  { %566 = vrot.lane.b32.xlu1 %v513_v9, %s3145_s3 }
 0x4b6   :  { %v735_v14 = vpop.xlane.xlu0 %734 }
 0x4b7   :  { %v739_v15 = vsub.f32 %v731_v63, %v735_v14 }
 0x4b9   :  { %v741_v16 = vmul.f32 1.442695, %v739_v15 }
 0x4bb   :  { %2822 = vpow2.f32 %v741_v16 }
 0x4c1   :  { %v2823_v17 = vpop.eup %2822 }
 0x4c2   :  { %v745_v18 = vsel %vm602_vm7, %v2823_v17, 0.0 }
 0x4c3   :  { %746 = vadd.xlane.f32.xlu2 %v745_v18 }
 0x4c4   :  { %v605_v19 = vpop.xlane.xlu1 %604 }
 0x4c5   :  { %v609_v21 = vsub.f32 %v600_v5, %v605_v19 }
 0x4c6   :  { %v873_v22 = vpop.xlane.xlu2 %872 }
 0x4c7   :  { %v611_v23 = vmul.f32 1.442695, %v609_v21  ;;  %v877_v24 = vsub.f32 %v869_v7, %v873_v22 }
 0x4c9   :  { %2824 = vpow2.f32 %v611_v23  ;;  %v879_v25 = vmul.f32 1.442695, %v877_v24  ;;  %v704_v41 = vpop.permute.xlu0 %703 }
 0x4cb   :  { %2826 = vpow2.f32 %v879_v25 }
 0x4ce   :  { %v759_v27 = vpop.permute.xlu2 %758 }
 0x4cf   :  { %v2825_v29 = vpop.eup %2824  ;;  %779 = vmatpush.msrb.mxu1 %v759_v27 }
 0x4d0   :  { %v615_v30 = vsel %vm602_vm7, %v2825_v29, 0.0 }
 0x4d1   :  { %616 = vadd.xlane.f32.xlu0 %v615_v30  ;;  %v2827_v35 = vpop.eup %2826 }
 0x4d2   :  { %v1009_v31 = vpop.xlane.xlu1 %1008  ;;  %v883_v34 = vsel %vm602_vm7, %v2827_v35, 0.0 }
 0x4d3   :  { %v1013_v32 = vsub.f32 %v1005_v12, %v1009_v31 }
 0x4d5   :  { %v1015_v36 = vmul.f32 1.442695, %v1013_v32 }
 0x4d7   :  { %2828 = vpow2.f32 %v1015_v36  ;;  %v1122_v36 = vld [vmem:[#allocation10 + $0x38] sm:$0xff] }
 0x4d8   :  { %1137 = vmatpush.msrb.mxu3 %v1122_v36  ;;  %v1173_v36 = vld [vmem:[#allocation7 + $0x20] sm:$0xff] }
 0x4d9   :  { %884 = vadd.xlane.f32.xlu0 %v883_v34  ;;  %v1121_v34 = vld [vmem:[#allocation10 + $0x30] sm:$0xff] }
 0x4da   :  { %1138 = vmatpush.msrb.mxu3 %v1121_v34  ;;  %v1172_v34 = vld [vmem:[#allocation7 + $0x18] sm:$0xff] }
 0x4db   :  { %895 = vrot.lane.b32.xlu2 %v3467_v49, %s3147_s8 }
 0x4dd   :  { %v2829_v38 = vpop.eup %2828 }
 0x4de   :  { %v1019_v39 = vsel %vm602_vm7, %v2829_v38, 0.0 }
 0x4df   :  { %1020 = vadd.xlane.f32.xlu1 %v1019_v39  ;;  %v1119_v39 = vld [vmem:[#allocation10 + $0x20] sm:$0xff] }
 0x4e3   :  { %841 = vrot.lane.b32.xlu2 %v513_v9, %s3149_s0 }
 0x4ea   :  { %v567_v40 = vpop.permute.xlu1 %566 }
 0x4eb   :  { %2672 = vmatpush.xpose.msk.msra.mxu0 %vm201_vm0, %v567_v40  ;;  %839 = vrot.lane.b32.xlu2 %v513_v9, %s3147_s8  ;;  %v1118_v40 = vld [vmem:[#allocation10 + $0x18] sm:$0xff] }
 0x4ed   :  { %701 = vrot.lane.b32.xlu0 %v513_v9, %s3148_s2 }
 0x4ee   :  { %2673 = vmatmul.msk.f32.vlgmr.msra.gmra.mxu0 %vm201_vm0, %v513_v9 }
 0x4ef   :  { %2678 = vmatpush.xpose.msk.msrb.mxu0 %vm201_vm0, %v704_v41  ;;  %v1117_v41 = vld [vmem:[#allocation10 + $0x10] sm:$0xff] }
 0x4f3   :  { %975 = vrot.lane.b32.xlu2 %v513_v9, %s3150_s5 }
 0x4f5   :  { %1031 = vrot.lane.b32.xlu0 %v3467_v49, %s3150_s5 }
 0x4fd   :  { %977 = vrot.lane.b32.xlu0 %v513_v9, %s3138_s12 }
 0x536   :  { %v747_v42 = vpop.xlane.xlu2 %746 }
 0x53e   :  { %v896_v37 = vpop.permute.xlu2 %895 }
 0x544   :  { %v617_v43 = vpop.xlane.xlu0 %616 }
 0x545   :  { %2830 = vrcp.f32 %v617_v43  ;;  %v1167_v43 = vld [vmem:[#allocation5 + $0x38] sm:$0xff] }
 0x546   :  { %v842_v44 = vpop.permute.xlu2 %841  ;;  %2832 = vrcp.f32 %v747_v42  ;;  %v1116_v42 = vld [vmem:[#allocation10 + $0x8] sm:$0xff] }
 0x547   :  { %2684 = vmatpush.xpose.msk.msra.mxu0 %vm201_vm0, %v842_v44  ;;  %v1166_v44 = vld [vmem:[#allocation5 + $0x30] sm:$0xff] }
 0x54b   :  { %v2831_v45 = vpop.eup %2830 }
 0x54c   :  { %v623_v46 = vmul.f32 %v2831_v45, %v2825_v29  ;;  %v885_v47 = vpop.xlane.xlu0 %884  ;;  %v2833_v50 = vpop.eup %2832  ;;  %v1165_v45 = vld [vmem:[#allocation5 + $0x28] sm:$0xff] }
 0x54d   :  { %2834 = vrcp.f32 %v885_v47  ;;  %v753_v49 = vmul.f32 %v2833_v50, %v2823_v17  ;;  %v1163_v47 = vld [vmem:[#allocation5 + $0x18] sm:$0xff] }
 0x54e   :  { %v625_v48 = vsel %vm3485_vm6, %v623_v46, 0.0  ;;  %v840_v1 = vpop.permute.xlu2 %839  ;;  %v1164_v46 = vld [vmem:[#allocation5 + $0x20] sm:$0xff] }
 0x54f   :  { %2674 = vmatmul.msk.f32.vlgmr.msra.gmra.mxu1 %vm602_vm7, %v625_v48  ;;  %v755_v51 = vsel %vm3485_vm6, %v753_v49, 0.0  ;;  %v1162_v48 = vld [vmem:[#allocation5 + $0x10] sm:$0xff]  ;;  %v1161_v49 = vld [vmem:[#allocation5 + $0x8] sm:$0xff] }
 0x550   :  { %916 = vmatpush.msra.mxu1 %v896_v37  ;;  %v1115_v37 = vld [vmem:[#allocation10] sm:$0xff] }
 0x552   :  { %v1021_v54 = vpop.xlane.xlu1 %1020 }
 0x553   :  { %v2835_v52 = vpop.eup %2834  ;;  %2836 = vrcp.f32 %v1021_v54 }
 0x554   :  { %v891_v56 = vmul.f32 %v2835_v52, %v2827_v35 }
 0x556   :  { %v893_v59 = vsel %vm3485_vm6, %v891_v56, 0.0  ;;  %v976_v9 = vpop.permute.xlu2 %975 }
 0x557   :  { %2680 = vmatmul.msk.f32.vlgmr.msrb.gmra.mxu1 %vm602_vm7, %v755_v51  ;;  %v1160_v51 = vld [vmem:[#allocation5] sm:$0xff] }
 0x559   :  { %v2837_v62 = vpop.eup %2836 }
 0x55a   :  { %v1027_v63 = vmul.f32 %v2837_v62, %v2829_v38  ;;  %v1120_v38 = vld [vmem:[#allocation10 + $0x28] sm:$0xff] }
 0x55b   :  { %1139 = vmatpush.msrb.mxu3 %v1120_v38 }
 0x55c   :  { %v1029_v55 = vsel %vm3485_vm6, %v1027_v63, 0.0 }
 0x55d   :  { %1140 = vmatpush.msrb.mxu3 %v1119_v39  ;;  %v1171_v39 = vld [vmem:[#allocation7 + $0x10] sm:$0xff] }
 0x55f   :  { %2686 = vmatmul.msk.f32.vlgmr.msra.gmra.mxu1 %vm602_vm7, %v893_v59  ;;  %v702_v60 = vpop.permute.xlu0 %701  ;;  %1141 = vmatpush.msrb.mxu3 %v1118_v40 }
 0x560   :  { %2679 = vmatmul.msk.f32.vlgmr.msrb.gmra.mxu0 %vm201_vm0, %v702_v60 }
 0x561   :  { %1142 = vmatpush.msrb.mxu3 %v1117_v41 }
 0x563   :  { %1143 = vmatpush.msrb.mxu3 %v1116_v42 }
 0x565   :  { %1144 = vmatpush.msrb.mxu3 %v1115_v37  ;;  %v1170_v37 = vld [vmem:[#allocation7 + $0x8] sm:$0xff] }
 0x567   :  { %v1032_v2 = vpop.permute.xlu0 %1031 }
 0x568   :  { %2685 = vmatmul.msk.f32.vlgmr.msra.gmra.mxu0 %vm201_vm0, %v840_v1  ;;  %1052 = vmatpush.msrb.mxu1 %v1032_v2 }
 0x569   :  { %2692 = vmatmul.msk.f32.vlgmr.msrb.gmra.mxu1 %vm602_vm7, %v1029_v55 }
 0x56b   :  { %v589_v4 = vpop.f32.mrf.mxu0 }
 0x56c   :  { %v593_v6 = vmul.f32 0.25, %v589_v4 }
 0x56e   :  { %v601_v57 = vsel %vm3540_vm9, %v593_v6, -3.4028235e+38 }
 0x56f   :  { %v978_v7 = vpop.permute.xlu0 %977  ;;  %v606_v8 = vsel %vm602_vm7, %v601_v57, -inf }
 0x570   :  { %2690 = vmatpush.xpose.msk.msrb.mxu0 %vm201_vm0, %v978_v7  ;;  %607 = vmax.xlane.f32.xlu0 %v606_v8 }
 0x573   :  { %2691 = vmatmul.msk.f32.vlgmr.msrb.gmra.mxu0 %vm201_vm0, %v976_v9 }
 0x574   :  { %1189 = vmatpush.msra.mxu0 %v1167_v43 }
 0x576   :  { %1190 = vmatpush.msra.mxu0 %v1166_v44  ;;  %v1169_v44 = vld [vmem:[#allocation7] sm:$0xff] }
 0x578   :  { %1191 = vmatpush.msra.mxu0 %v1165_v45 }
 0x57a   :  { %1192 = vmatpush.msra.mxu0 %v1164_v46 }
 0x57c   :  { %1193 = vmatpush.msra.mxu0 %v1163_v47 }
 0x57e   :  { %1194 = vmatpush.msra.mxu0 %v1162_v48 }
 0x580   :  { %1195 = vmatpush.msra.mxu0 %v1161_v49 }
 0x582   :  { %1196 = vmatpush.msra.mxu0 %v1160_v51 }
 0x583   :  { %2696 = vmatmul.msk.f32.vlgmr.msra.gmra.mxu0 %vm231_vm1, %v3374_v20 }
 0x5cc   :  { %v3549_v10 = vpop.f32.mrf.mxu1 }
 0x5d4   :  { %v781_v11 = vpop.f32.mrf.mxu1 }
 0x5d5   :  { %1085 = vrot.lane.b32.xlu1 %v781_v11, %s3138_s12 }
 0x5dc   :  { %v918_v12 = vpop.f32.mrf.mxu1 }
 0x5dd   :  { %1093 = vrot.lane.b32.xlu1 %v918_v12, %s3149_s0  ;;  %v726_v13 = vpop.f32.mrf.mxu0 }
 0x5de   :  { %v730_v14 = vmul.f32 0.25, %v726_v13 }
 0x5e0   :  { %v3555_v15 = vsel %vm3540_vm9, %v730_v14, -3.4028235e+38  ;;  %v2795_v14 = vld [vmem:[%s3982_s13] ss:$0 sm:$0xff] }
 0x5e1   :  { %v736_v16 = vsel %vm602_vm7, %v3555_v15, -inf }
 0x5e2   :  { %737 = vmax.xlane.f32.xlu2 %v736_v16 }
 0x5e3   :  { %v608_v18 = vpop.xlane.xlu0 %607 }
 0x5e4   :  { %v610_v21 = vsub.f32 %v601_v57, %v608_v18 }
 0x5e5   :  { %v864_v19 = vpop.f32.mrf.mxu0 }
 0x5e6   :  { %v1054_v17 = vpop.f32.mrf.mxu1  ;;  %v613_v22 = vmul.f32 1.442695, %v610_v21  ;;  %v868_v31 = vmul.f32 0.25, %v864_v19  ;;  %v3610_v21 = vld [vmem:[%s3988_s19] ss:$0 sm:$0xff] }
 0x5e7   :  { %1101 = vrot.lane.b32.xlu0 %v1054_v17, %s3146_s7 }
 0x5e8   :  { %2838 = vpow2.f32 %v613_v22  ;;  %v3569_v32 = vsel %vm3540_vm9, %v868_v31, -3.4028235e+38  ;;  %v1174_v31 = vld [vmem:[#allocation7 + $0x28] sm:$0xff] }
 0x5e9   :  { %v874_v35 = vsel %vm602_vm7, %v3569_v32, -inf }
 0x5ee   :  { %v3563_v29 = vpop.eup %2838 }
 0x5ef   :  { %v618_v30 = vsel %vm602_vm7, %v3563_v29, 0.0 }
 0x5f0   :  { %v1000_v23 = vpop.f32.mrf.mxu0 }
 0x5f1   :  { %v1004_v24 = vmul.f32 0.25, %v1000_v23 }
 0x5f3   :  { %v1006_v25 = vsel %vm3540_vm9, %v1004_v24, -3.4028235e+38 }
 0x5f4   :  { %v1010_v27 = vsel %vm602_vm7, %v1006_v25, -inf }
 0x5f5   :  { %1011 = vmax.xlane.f32.xlu2 %v1010_v27 }
 0x5fd   :  { %619 = vadd.xlane.f32.xlu2 %v618_v30 }
 0x607   :  { %875 = vmax.xlane.f32.xlu1 %v874_v35 }
 0x647   :  { %v1086_v50 = vpop.permute.xlu1 %1085 }
 0x648   :  { %v1107_v58 = vsel %vm201_vm0, %v3549_v10, %v1086_v50 }
 0x64f   :  { %v1094_v54 = vpop.permute.xlu1 %1093 }
 0x650   :  { %v1110_v60 = vsel %vm1109_vm10, %v1107_v58, %v1094_v54 }
 0x655   :  { %v738_v52 = vpop.xlane.xlu2 %737 }
 0x656   :  { %v740_v56 = vsub.f32 %v3555_v15, %v738_v52  ;;  %v1198_v15 = vpop.f32.mrf.mxu0 }
 0x657   :  { %v1199_v16 = vadd.f32 %v2795_v14, %v1198_v15  ;;  %v1321_v14 = vld [vmem:[#allocation11 + $0x38] sm:$0xff]  ;;  %v1320_v15 = vld [vmem:[#allocation11 + $0x30] sm:$0xff] }
 0x658   :  { %v743_v59 = vmul.f32 1.442695, %v740_v56 }
 0x659   :  { %v1102_v62 = vpop.permute.xlu0 %1101  ;;  %v2697_v17 = vmul.f32 -1.442695, %v1199_v16 }
 0x65a   :  { %2840 = vpow2.f32 %v743_v59  ;;  %v1113_v63 = vsel %vm1112_vm11, %v1110_v60, %v1102_v62 }
 0x65b   :  { %2694 = vmatmul.msk.f32.vlgmr.msrb.gmra.mxu3 %vm231_vm1, %v1113_v63 }
 0x660   :  { %v3581_v0 = vpop.eup %2840 }
 0x661   :  { %v748_v20 = vsel %vm602_vm7, %v3581_v0, 0.0 }
 0x662   :  { %749 = vadd.xlane.f32.xlu0 %v748_v20 }
 0x668   :  { %v1012_v1 = vpop.xlane.xlu2 %1011 }
 0x669   :  { %v1014_v2 = vsub.f32 %v1006_v25, %v1012_v1  ;;  %v1175_v25 = vld [vmem:[#allocation7 + $0x30] sm:$0xff] }
 0x66b   :  { %v1017_v3 = vmul.f32 1.442695, %v1014_v2 }
 0x66d   :  { %2842 = vpow2.f32 %v1017_v3 }
 0x670   :  { %v620_v55 = vpop.xlane.xlu2 %619 }
 0x671   :  { %2844 = vrcp.f32 %v620_v55 }
 0x673   :  { %v3585_v4 = vpop.eup %2842 }
 0x674   :  { %v1022_v6 = vsel %vm602_vm7, %v3585_v4, 0.0 }
 0x675   :  { %1023 = vadd.xlane.f32.xlu1 %v1022_v6  ;;  %v2796_v6 = vld [vmem:[%s3984_s15] ss:$0 sm:$0xff] }
 0x677   :  { %v2845_v57 = vpop.eup %2844 }
 0x678   :  { %v624_v7 = vmul.f32 %v2845_v57, %v3563_v29 }
 0x67a   :  { %v876_v8 = vpop.xlane.xlu1 %875  ;;  %v626_v9 = vsel %vm3540_vm9, %v624_v7, 0.0 }
 0x67b   :  { %v878_v10 = vsub.f32 %v3569_v32, %v876_v8  ;;  %2675 = vmatmul.msk.f32.vlgmr.msra.gmra.mxu2 %vm602_vm7, %v626_v9 }
 0x67d   :  { %v881_v11 = vmul.f32 1.442695, %v878_v10 }
 0x67f   :  { %2846 = vpow2.f32 %v881_v11 }
 0x680   :  { %2848 = vpow2.f32 %v2697_v17 }
 0x685   :  { %v3594_v12 = vpop.eup %2846 }
 0x686   :  { %v886_v13 = vsel %vm602_vm7, %v3594_v12, 0.0  ;;  %v2849_v18 = vpop.eup %2848 }
 0x687   :  { %887 = vadd.xlane.f32.xlu2 %v886_v13  ;;  %v1204_v19 = vadd.f32 1.0, %v2849_v18 }
 0x689   :  { %2850 = vrcp.f32 %v1204_v19  ;;  %v1216_v32 = vand.u32 2147483648, %v1204_v19  ;;  %vm1210_vm12 = vweird.f32 %v1204_v19 }
 0x68b   :  { %v1217_v40 = vor.u32 1.1754944e-38, %v1216_v32 }
 0x68e   :  { %921 = vrot.lane.b32.xlu1 %v3473_v53, %s3147_s8 }
 0x68f   :  { %v2851_v27 = vpop.eup %2850 }
 0x690   :  { %v1206_v30 = vmul.f32 %v2851_v27, %v1204_v19  ;;  %vm1211_vm13 = vweird.f32 %v2851_v27 }
 0x691   :  { %vm1212_vm14 = vmor %vm1210_vm12, %vm1211_vm13 }
 0x692   :  { %v1207_v35 = vsub.f32 1.0, %v1206_v30 }
 0x694   :  { %v1208_v38 = vmul.f32 %v2851_v27, %v1207_v35 }
 0x696   :  { %v1209_v41 = vadd.f32 %v2851_v27, %v1208_v38 }
 0x698   :  { %v1213_v42 = vsel %vm1212_vm14, %v2851_v27, %v1209_v41 }
 0x69f   :  { %785 = vrot.lane.b32.xlu2 %v3473_v53, %s3148_s2 }
 0x6a7   :  { %1057 = vrot.lane.b32.xlu2 %v3473_v53, %s3150_s5  ;;  %v1176_v53 = vld [vmem:[#allocation7 + $0x38] sm:$0xff] }
 0x6a8   :  { %1235 = vmatpush.msra.mxu1 %v1176_v53  ;;  %v1316_v53 = vld [vmem:[#allocation11 + $0x10] sm:$0xff] }
 0x6aa   :  { %1236 = vmatpush.msra.mxu1 %v1175_v25  ;;  %v1315_v25 = vld [vmem:[#allocation11 + $0x8] sm:$0xff] }
 0x6ac   :  { %1237 = vmatpush.msra.mxu1 %v1174_v31 }
 0x6ae   :  { %1238 = vmatpush.msra.mxu1 %v1173_v36 }
 0x6b0   :  { %1239 = vmatpush.msra.mxu1 %v1172_v34 }
 0x6b2   :  { %1240 = vmatpush.msra.mxu1 %v1171_v39 }
 0x6b4   :  { %1241 = vmatpush.msra.mxu1 %v1170_v37 }
 0x6b6   :  { %1242 = vmatpush.msra.mxu1 %v1169_v44 }
 0x6d5   :  { %v750_v46 = vpop.xlane.xlu0 %749 }
 0x6d6   :  { %2852 = vrcp.f32 %v750_v46 }
 0x6dc   :  { %v2853_v48 = vpop.eup %2852 }
 0x6dd   :  { %v754_v49 = vmul.f32 %v2853_v48, %v3581_v0  ;;  %v1410_v48 = vld [vmem:[#allocation13 + $0x78] sm:$0xff] }
 0x6de   :  { %v1146_v22 = vpop.f32.mrf.mxu3  ;;  %1411 = vmatpush.msra.mxu3 %v1410_v48  ;;  %v1460_v48 = vld [vmem:[#allocation2 + $0x70] sm:$0xff] }
 0x6df   :  { %v1152_v23 = vadd.f32 %v1146_v22, %v3409_v28  ;;  %v1214_v28 = vand.u32 2147483647, %v1204_v19  ;;  %v756_v52 = vsel %vm3540_vm9, %v754_v49, 0.0  ;;  %v1319_v19 = vld [vmem:[#allocation11 + $0x28] sm:$0xff]  ;;  %v1318_v22 = vld [vmem:[#allocation11 + $0x20] sm:$0xff] }
 0x6e0   :  { %v1408_v49 = vld [vmem:[#allocation13 + $0x68] sm:$0xff] }
 0x6e1   :  { %v3614_v24 = vadd.f32 %v3610_v21, %v1152_v23  ;;  %vm1215_vm15 = vcmp.eq.f32.partialorder %v1214_v28, 8.507059e+37  ;;  %v1317_v23 = vld [vmem:[#allocation11 + $0x18] sm:$0xff] }
 0x6e2   :  { %v1218_v43 = vsel %vm1215_vm15, %v1217_v40, %v1213_v42 }
 0x6e3   :  { %v1247_v29 = vsel %vm231_vm1, %v3614_v24, 0.0  ;;  %v1220_v45 = vmul.f32 %v1218_v43, %v1199_v16 }
 0x6e4   :  { %1248 = vadd.xlane.f32.xlu0 %v1247_v29  ;;  %v1314_v29 = vld [vmem:[#allocation11] sm:$0xff] }
 0x6e5   :  { %2698 = vmatmul.msk.f32.vlgmr.msra.gmra.mxu1 %vm231_vm1, %v1220_v45 }
 0x6e8   :  { %v1024_v50 = vpop.xlane.xlu1 %1023 }
 0x6fa   :  { %v888_v47 = vpop.xlane.xlu2 %887 }
 0x6fb   :  { %2854 = vrcp.f32 %v888_v47 }
 0x6fc   :  { %2856 = vrcp.f32 %v1024_v50  ;;  %v1409_v50 = vld [vmem:[#allocation13 + $0x70] sm:$0xff] }
 0x6fd   :  { %1412 = vmatpush.msra.mxu3 %v1409_v50  ;;  %v1459_v50 = vld [vmem:[#allocation2 + $0x68] sm:$0xff] }
 0x6fe   :  { %v670_v9 = vpop.f32.mrf.mxu2 }
 0x6ff   :  { %1413 = vmatpush.msra.mxu3 %v1408_v49  ;;  %v1458_v49 = vld [vmem:[#allocation2 + $0x60] sm:$0xff] }
 0x700   :  { %v922_v56 = vpop.permute.xlu1 %921 }
 0x701   :  { %v2855_v54 = vpop.eup %2854 }
 0x702   :  { %v786_v51 = vpop.permute.xlu2 %785  ;;  %v892_v58 = vmul.f32 %v2855_v54, %v3594_v12  ;;  %v2857_v62 = vpop.eup %2856  ;;  %v1405_v54 = vld [vmem:[#allocation13 + $0x50] sm:$0xff] }
 0x703   :  { %806 = vmatpush.msrb.mxu2 %v786_v51  ;;  %v1028_v63 = vmul.f32 %v2857_v62, %v3585_v4  ;;  %v1407_v51 = vld [vmem:[#allocation13 + $0x60] sm:$0xff]  ;;  %v2709_v62 = vld [vmem:[%s4015_s14 + $0x70] sm:$0xff] }
 0x704   :  { %2681 = vmatmul.msk.f32.vlgmr.msrb.gmra.mxu2 %vm602_vm7, %v756_v52  ;;  %v894_v60 = vsel %vm3540_vm9, %v892_v58, 0.0  ;;  %1414 = vmatpush.msra.mxu3 %v1407_v51  ;;  %v1406_v52 = vld [vmem:[#allocation13 + $0x58] sm:$0xff]  ;;  %v1403_v58 = vld [vmem:[#allocation13 + $0x40] sm:$0xff] }
 0x705   :  { %942 = vmatpush.msra.mxu2 %v922_v56  ;;  %v1030_v0 = vsel %vm3540_vm9, %v1028_v63, 0.0  ;;  %v1404_v56 = vld [vmem:[#allocation13 + $0x48] sm:$0xff]  ;;  %v1401_v63 = vld [vmem:[#allocation13 + $0x30] sm:$0xff]  ;;  %v1457_v51 = vld [vmem:[#allocation2 + $0x58] sm:$0xff] }
 0x706   :  { %1415 = vmatpush.msra.mxu3 %v1406_v52 }
 0x708   :  { %1416 = vmatpush.msra.mxu3 %v1405_v54  ;;  %v1456_v54 = vld [vmem:[#allocation2 + $0x50] sm:$0xff] }
 0x70a   :  { %v1058_v59 = vpop.permute.xlu2 %1057  ;;  %1417 = vmatpush.msra.mxu3 %v1404_v56 }
 0x70b   :  { %1078 = vmatpush.msrb.mxu2 %v1058_v59  ;;  %v2710_v59 = vld [vmem:[%s4015_s14 + $0x78] sm:$0xff] }
 0x70c   :  { %2687 = vmatmul.msk.f32.vlgmr.msra.gmra.mxu2 %vm602_vm7, %v894_v60  ;;  %1418 = vmatpush.msra.mxu3 %v1403_v58  ;;  %v1402_v60 = vld [vmem:[#allocation13 + $0x38] sm:$0xff] }
 0x70d   :  { %1340 = vmatpush.msra.mxu2 %v1321_v14  ;;  %1475 = vmatpush.msrb.mxu0 %v2710_v59  ;;  %v1455_v59 = vld [vmem:[#allocation2 + $0x48] sm:$0xff] }
 0x70e   :  { %1419 = vmatpush.msra.mxu3 %v1402_v60 }
 0x70f   :  { %1341 = vmatpush.msra.mxu2 %v1320_v15  ;;  %1476 = vmatpush.msrb.mxu0 %v2709_v62  ;;  %v3688_v15 = vld [vmem:[%s4017_s29] sm:$0x3] }
 0x710   :  { %1420 = vmatpush.msra.mxu3 %v1401_v63  ;;  %v1454_v63 = vld [vmem:[#allocation2 + $0x40] sm:$0xff] }
 0x711   :  { %1342 = vmatpush.msra.mxu2 %v1319_v19 }
 0x713   :  { %1343 = vmatpush.msra.mxu2 %v1318_v22 }
 0x714   :  { %2693 = vmatmul.msk.f32.vlgmr.msrb.gmra.mxu2 %vm602_vm7, %v1030_v0  ;;  %v2708_v0 = vld [vmem:[%s4015_s14 + $0x68] sm:$0xff] }
 0x715   :  { %1344 = vmatpush.msra.mxu2 %v1317_v23  ;;  %1477 = vmatpush.msrb.mxu0 %v2708_v0 }
 0x717   :  { %1345 = vmatpush.msra.mxu2 %v1316_v53 }
 0x719   :  { %1346 = vmatpush.msra.mxu2 %v1315_v25 }
 0x71b   :  { %1347 = vmatpush.msra.mxu2 %v1314_v29 }
 0x757   :  { %v1249_v20 = vpop.xlane.xlu0 %1248 }
 0x758   :  { %v1253_v1 = vmul.f32 %v1249_v20, %v3378_v26  ;;  %v1400_v20 = vld [vmem:[#allocation13 + $0x28] sm:$0xff] }
 0x759   :  { %1421 = vmatpush.msra.mxu3 %v1400_v20 }
 0x75a   :  { %v1255_v2 = vsub.f32 %v3614_v24, %v1253_v1  ;;  %v2707_v1 = vld [vmem:[%s4015_s14 + $0x60] sm:$0xff] }
 0x75b   :  { %1478 = vmatpush.msrb.mxu0 %v2707_v1 }
 0x75c   :  { %v1257_v3 = vmul.f32 %v1255_v2, %v1255_v2 }
 0x75e   :  { %v1259_v55 = vsel %vm231_vm1, %v1257_v3, 0.0  ;;  %v2706_v3 = vld [vmem:[%s4015_s14 + $0x58] sm:$0xff] }
 0x75f   :  { %1260 = vadd.xlane.f32.xlu2 %v1259_v55  ;;  %1479 = vmatpush.msrb.mxu0 %v2706_v3  ;;  %v1398_v55 = vld [vmem:[#allocation13 + $0x18] sm:$0xff] }
 0x762   :  { %v1244_v57 = vpop.f32.mrf.mxu1 }
 0x763   :  { %v3637_v4 = vadd.f32 %v2796_v6, %v1244_v57  ;;  %v2705_v6 = vld [vmem:[%s4015_s14 + $0x50] sm:$0xff] }
 0x764   :  { %1480 = vmatpush.msrb.mxu0 %v2705_v6  ;;  %v1397_v57 = vld [vmem:[#allocation13 + $0x10] sm:$0xff]  ;;  %v3708_v6 = vld [vmem:[%s3992_s23] ss:$0 sm:$0xff] }
 0x765   :  { %v1292_v7 = vrot.slane %v3637_v4, 1  ;;  %v1304_v11 = vperm.slane %v3637_v4, 0  ;;  %v1294_v38 = vadd.f32 1.0, %v3637_v4 }
 0x767   :  { %v1305_v8 = vperm.slane %v1292_v7, 0  ;;  %v1298_v40 = vperm.slane %v1294_v38, 0 }
 0x777   :  { %1308 = vrot.lane.b32.xlu2 %v1305_v8, %s3145_s3  ;;  %v3676_v8 = vld [vmem:[%s3990_s21] ss:$0 sm:$0xff] }
 0x787   :  { %v808_v10 = vpop.f32.mrf.mxu2 }
 0x788   :  { %1087 = vrot.lane.b32.xlu0 %v808_v10, %s3138_s12  ;;  %v1396_v10 = vld [vmem:[#allocation13 + $0x8] sm:$0xff] }
 0x78f   :  { %v944_v12 = vpop.f32.mrf.mxu2 }
 0x790   :  { %1306 = vrot.lane.b32.xlu0 %v1304_v11, %s3145_s3  ;;  %1095 = vrot.lane.b32.xlu1 %v944_v12, %s3149_s0  ;;  %v2703_v11 = vld [vmem:[%s4015_s14 + $0x40] sm:$0xff] }
 0x791   :  { %v1395_v12 = vld [vmem:[#allocation13] sm:$0xff] }
 0x797   :  { %v1080_v13 = vpop.f32.mrf.mxu2 }
 0x798   :  { %1103 = vrot.lane.b32.xlu1 %v1080_v13, %s3146_s7 }
 0x7d2   :  { %v1261_v16 = vpop.xlane.xlu2 %1260 }
 0x7d3   :  { %v1265_v17 = vmul.f32 %v1261_v16, %v3378_v26 }
 0x7d5   :  { %v1267_v18 = vadd.f32 1e-05, %v1265_v17 }
 0x7d7   :  { %2858 = vrsqrt.f32 %v1267_v18  ;;  %vm1275_vm3 = vweird.f32 %v1267_v18 }
 0x7dd   :  { %v2859_v27 = vpop.eup %2858 }
 0x7de   :  { %v1270_v30 = vmul.f32 %v2859_v27, %v1267_v18  ;;  %vm1276_vm2 = vweird.f32 %v2859_v27 }
 0x7df   :  { %vm1277_vm4 = vmor %vm1275_vm3, %vm1276_vm2 }
 0x7e0   :  { %v1271_v31 = vmul.f32 %v2859_v27, %v1270_v30 }
 0x7e2   :  { %v1272_v32 = vmul.f32 0.5, %v1271_v31 }
 0x7e4   :  { %v1273_v35 = vsub.f32 1.5, %v1272_v32 }
 0x7e6   :  { %v1274_v28 = vmul.f32 %v2859_v27, %v1273_v35 }
 0x7e8   :  { %v1278_v34 = vsel %vm1277_vm4, %v2859_v27, %v1274_v28 }
 0x7e9   :  { %v1289_v39 = vmul.f32 %v1278_v34, %v1255_v2  ;;  %v1399_v2 = vld [vmem:[#allocation13 + $0x20] sm:$0xff] }
 0x7ea   :  { %1422 = vmatpush.msra.mxu3 %v1399_v2  ;;  %v2798_v34 = vld [vmem:[%s4018_s22 + $0x1] ss:$0 sm:$0xff] }
 0x7eb   :  { %v1302_v41 = vmul.f32 %v1298_v40, %v1289_v39 }
 0x7ec   :  { %1423 = vmatpush.msra.mxu3 %v1398_v55 }
 0x7ee   :  { %1424 = vmatpush.msra.mxu3 %v1397_v57 }
 0x7f0   :  { %1425 = vmatpush.msra.mxu3 %v1396_v10 }
 0x7f2   :  { %1426 = vmatpush.msra.mxu3 %v1395_v12 }
 0x7fa   :  { %v1088_v36 = vpop.permute.xlu0 %1087 }
 0x7fb   :  { %v1108_v44 = vsel %vm201_vm0, %v670_v9, %v1088_v36  ;;  %v2704_v9 = vld [vmem:[%s4015_s14 + $0x48] sm:$0xff] }
 0x7fc   :  { %1481 = vmatpush.msrb.mxu0 %v2704_v9 }
 0x7fe   :  { %1482 = vmatpush.msrb.mxu0 %v2703_v11 }
 0x7ff   :  { %2713 = vmatmul.msk.f32.vlgmr.msrb.gmra.mxu0 %vm231_vm1, %v3688_v15 }
 0x802   :  { %v1307_v42 = vpop.permute.xlu0 %1306  ;;  %v1096_v37 = vpop.permute.xlu1 %1095 }
 0x803   :  { %v1312_v43 = vadd.f32 %v1307_v42, %v1302_v41  ;;  %v1111_v45 = vsel %vm1109_vm10, %v1108_v44, %v1096_v37 }
 0x805   :  { %2699 = vmatmul.msk.f32.vlgmr.msra.gmra.mxu2 %vm231_vm1, %v1312_v43 }
 0x80a   :  { %v1104_v46 = vpop.permute.xlu1 %1103 }
 0x80b   :  { %v1114_v47 = vsel %vm1112_vm11, %v1111_v45, %v1104_v46 }
 0x80c   :  { %2695 = vmatmul.msk.f32.gmra.mxu3 %vm231_vm1, %v1114_v47  ;;  %v1461_v47 = vld [vmem:[#allocation2 + $0x78] sm:$0xff] }
 0x80d   :  { %1521 = vmatpush.msrb.mxu1 %v1461_v47  ;;  %v1610_v47 = vld [vmem:[#allocation8 + $0xc8] sm:$0xff] }
 0x80f   :  { %1522 = vmatpush.msrb.mxu1 %v1460_v48  ;;  %v1607_v48 = vld [vmem:[#allocation8 + $0xb0] sm:$0xff] }
 0x811   :  { %1523 = vmatpush.msrb.mxu1 %v1459_v50  ;;  %v1608_v50 = vld [vmem:[#allocation8 + $0xb8] sm:$0xff] }
 0x813   :  { %1524 = vmatpush.msrb.mxu1 %v1458_v49  ;;  %v1605_v49 = vld [vmem:[#allocation8 + $0xa0] sm:$0xff] }
 0x815   :  { %1525 = vmatpush.msrb.mxu1 %v1457_v51  ;;  %v1606_v51 = vld [vmem:[#allocation8 + $0xa8] sm:$0xff] }
 0x817   :  { %1526 = vmatpush.msrb.mxu1 %v1456_v54  ;;  %v1604_v54 = vld [vmem:[#allocation8 + $0x98] sm:$0xff] }
 0x819   :  { %1527 = vmatpush.msrb.mxu1 %v1455_v59 }
 0x81b   :  { %1528 = vmatpush.msrb.mxu1 %v1454_v63 }
 0x87c   :  { %v1484_v38 = vpop.f32.mrf.mxu0 }
 0x87d   :  { %v1485_v39 = vadd.f32 %v2798_v34, %v1484_v38 }
 0x87f   :  { %v2714_v42 = vmul.f32 -1.442695, %v1485_v39 }
 0x888   :  { %v1349_v13 = vpop.f32.mrf.mxu2 }
 0x889   :  { %v1350_v14 = vadd.f32 %v3676_v8, %v1349_v13 }
 0x88b   :  { %v2701_v16 = vmul.f32 -1.442695, %v1350_v14 }
 0x88d   :  { %2860 = vpow2.f32 %v2701_v16 }
 0x88f   :  { %v1149_v17 = vpop.f32.mrf.mxu3 }
 0x890   :  { %v1153_v18 = vadd.f32 %v1149_v17, %v3413_v33 }
 0x892   :  { %v3694_v19 = vadd.f32 %v3610_v21, %v1153_v18 }
 0x893   :  { %v2861_v22 = vpop.eup %2860 }
 0x894   :  { %v1361_v23 = vadd.f32 1.0, %v2861_v22  ;;  %v1250_v53 = vsel %vm231_vm1, %v3694_v19, 0.0 }
 0x895   :  { %1251 = vadd.xlane.f32.xlu1 %v1250_v53 }
 0x896   :  { %2862 = vrcp.f32 %v1361_v23  ;;  %v1374_v30 = vand.u32 2147483648, %v1361_v23  ;;  %v1372_v32 = vand.u32 2147483647, %v1361_v23  ;;  %vm1368_vm8 = vweird.f32 %v1361_v23 }
 0x897   :  { %2864 = vpow2.f32 %v2714_v42  ;;  %v1616_v42 = vld [vmem:[#allocation8 + $0xf8] sm:$0xff] }
 0x898   :  { %v1375_v33 = vor.u32 1.1754944e-38, %v1374_v30  ;;  %vm1373_vm13 = vcmp.eq.f32.partialorder %v1372_v32, 8.507059e+37  ;;  %1661 = vmatpush.msra.mxu0 %v1616_v42 }
 0x89c   :  { %v2863_v25 = vpop.eup %2862 }
 0x89d   :  { %v1364_v27 = vmul.f32 %v2863_v25, %v1361_v23  ;;  %vm1369_vm5 = vweird.f32 %v2863_v25  ;;  %v2865_v45 = vpop.eup %2864 }
 0x89e   :  { %vm1370_vm12 = vmor %vm1368_vm8, %vm1369_vm5  ;;  %v1490_v46 = vadd.f32 1.0, %v2865_v45  ;;  %v1612_v45 = vld [vmem:[#allocation8 + $0xd8] sm:$0xff] }
 0x89f   :  { %v1365_v29 = vsub.f32 1.0, %v1364_v27 }
 0x8a0   :  { %2866 = vrcp.f32 %v1490_v46  ;;  %v1502_v58 = vand.u32 2147483648, %v1490_v46  ;;  %vm1496_vm14 = vweird.f32 %v1490_v46  ;;  %v1500_v62 = vand.u32 2147483647, %v1490_v46 }
 0x8a1   :  { %v1366_v31 = vmul.f32 %v2863_v25, %v1365_v29 }
 0x8a2   :  { %v1503_v20 = vor.u32 1.1754944e-38, %v1502_v58  ;;  %vm1501_vm3 = vcmp.eq.f32.partialorder %v1500_v62, 8.507059e+37  ;;  %v1602_v58 = vld [vmem:[#allocation8 + $0x88] sm:$0xff] }
 0x8a3   :  { %v1367_v35 = vadd.f32 %v2863_v25, %v1366_v31  ;;  %v1309_v31 = vpop.permute.xlu2 %1308 }
 0x8a5   :  { %v1371_v21 = vsel %vm1370_vm12, %v2863_v25, %v1367_v35  ;;  %v2800_v35 = vld [vmem:[%s3980_s11 + $0x1] ss:$0 sm:$0xff] }
 0x8a6   :  { %v1376_v28 = vsel %vm1373_vm13, %v1375_v33, %v1371_v21  ;;  %v2867_v52 = vpop.eup %2866 }
 0x8a7   :  { %v1393_v36 = vmul.f32 %v1376_v28, %v1350_v14  ;;  %v1492_v56 = vmul.f32 %v2867_v52, %v1490_v46  ;;  %vm1497_vm15 = vweird.f32 %v2867_v52  ;;  %v1609_v46 = vld [vmem:[#allocation8 + $0xc0] sm:$0xff] }
 0x8a8   :  { %vm1498_vm2 = vmor %vm1496_vm14, %vm1497_vm15 }
 0x8a9   :  { %1427 = vmatmul.f32.vlgmr.msra.gmra.mxu3 %v1393_v36  ;;  %v1493_v60 = vsub.f32 1.0, %v1492_v56  ;;  %v1601_v56 = vld [vmem:[#allocation8 + $0x80] sm:$0xff] }
 0x8ab   :  { %v1494_v0 = vmul.f32 %v2867_v52, %v1493_v60 }
 0x8ad   :  { %v1495_v1 = vadd.f32 %v2867_v52, %v1494_v0 }
 0x8af   :  { %v1499_v2 = vsel %vm1498_vm2, %v2867_v52, %v1495_v1  ;;  %v1603_v52 = vld [vmem:[#allocation8 + $0x90] sm:$0xff] }
 0x8b0   :  { %v1504_v3 = vsel %vm1501_vm3, %v1503_v20, %v1499_v2 }
 0x8b1   :  { %v1506_v55 = vmul.f32 %v1504_v3, %v1485_v39 }
 0x8b3   :  { %2715 = vmatmul.msk.f32.vlgmr.msrb.gmra.mxu1 %vm231_vm1, %v1506_v55 }
 0x908   :  { %v1252_v40 = vpop.xlane.xlu1 %1251 }
 0x909   :  { %v1254_v41 = vmul.f32 %v1252_v40, %v3378_v26 }
 0x90b   :  { %v1256_v37 = vsub.f32 %v3694_v19, %v1254_v41  ;;  %v1615_v41 = vld [vmem:[#allocation8 + $0xf0] sm:$0xff] }
 0x90c   :  { %1638 = vmatpush.msrb.mxu2 %v1615_v41 }
 0x90d   :  { %v1258_v43 = vmul.f32 %v1256_v37, %v1256_v37 }
 0x90f   :  { %v1262_v44 = vsel %vm231_vm1, %v1258_v43, 0.0  ;;  %v1614_v43 = vld [vmem:[#allocation8 + $0xe8] sm:$0xff] }
 0x910   :  { %1263 = vadd.xlane.f32.xlu0 %v1262_v44  ;;  %1662 = vmatpush.msra.mxu0 %v1614_v43  ;;  %v1611_v44 = vld [vmem:[#allocation8 + $0xd0] sm:$0xff] }
 0x912   :  { %1663 = vmatpush.msra.mxu0 %v1612_v45 }
 0x914   :  { %1664 = vmatpush.msra.mxu0 %v1610_v47 }
 0x916   :  { %1665 = vmatpush.msra.mxu0 %v1608_v50 }
 0x918   :  { %1666 = vmatpush.msra.mxu0 %v1606_v51 }
 0x91a   :  { %1667 = vmatpush.msra.mxu0 %v1604_v54 }
 0x91c   :  { %1668 = vmatpush.msra.mxu0 %v1602_v58 }
 0x92c   :  { %v1428_v57 = vpop.f32.mrf.mxu3 }
 0x92d   :  { %v1434_v9 = vadd.f32 %v1428_v57, %v3614_v24  ;;  %v1295_v24 = vadd.f32 1.0, %v1292_v7 }
 0x92f   :  { %v3712_v10 = vadd.f32 %v3708_v6, %v1434_v9  ;;  %v1299_v27 = vperm.slane %v1295_v24, 0 }
 0x930   :  { %v1530_v33 = vpop.f32.mrf.mxu1 }
 0x931   :  { %v1533_v11 = vsel %vm231_vm1, %v3712_v10, 0.0  ;;  %v3723_v28 = vadd.f32 %v2800_v35, %v1530_v33 }
 0x932   :  { %1534 = vadd.xlane.f32.xlu2 %v1533_v11 }
 0x933   :  { %v1578_v7 = vrot.slane %v3723_v28, 1  ;;  %v1590_v36 = vperm.slane %v3723_v28, 0 }
 0x935   :  { %1592 = vrot.lane.b32.xlu0 %v1590_v36, %s3145_s3  ;;  %v1591_v38 = vperm.slane %v1578_v7, 0 }
 0x94a   :  { %1594 = vrot.lane.b32.xlu2 %v1591_v38, %s3145_s3 }
 0x983   :  { %v1264_v12 = vpop.xlane.xlu0 %1263 }
 0x984   :  { %v1266_v13 = vmul.f32 %v1264_v12, %v3378_v26  ;;  %v1580_v12 = vadd.f32 1.0, %v3723_v28 }
 0x986   :  { %v1268_v14 = vadd.f32 1e-05, %v1266_v13 }
 0x988   :  { %2868 = vrsqrt.f32 %v1268_v14  ;;  %vm1285_vm5 = vweird.f32 %v1268_v14 }
 0x98e   :  { %v2869_v16 = vpop.eup %2868 }
 0x98f   :  { %v1280_v17 = vmul.f32 %v2869_v16, %v1268_v14  ;;  %vm1286_vm4 = vweird.f32 %v2869_v16 }
 0x990   :  { %vm1287_vm8 = vmor %vm1285_vm5, %vm1286_vm4 }
 0x991   :  { %v1281_v18 = vmul.f32 %v2869_v16, %v1280_v17 }
 0x993   :  { %v1282_v22 = vmul.f32 0.5, %v1281_v18 }
 0x995   :  { %v1283_v23 = vsub.f32 1.5, %v1282_v22 }
 0x997   :  { %v1284_v53 = vmul.f32 %v2869_v16, %v1283_v23 }
 0x999   :  { %v1288_v25 = vsel %vm1287_vm8, %v2869_v16, %v1284_v53 }
 0x99a   :  { %v1290_v29 = vmul.f32 %v1288_v25, %v1256_v37  ;;  %v1613_v37 = vld [vmem:[#allocation8 + $0xe0] sm:$0xff] }
 0x99b   :  { %1639 = vmatpush.msrb.mxu2 %v1613_v37 }
 0x99c   :  { %v1303_v30 = vmul.f32 %v1299_v27, %v1290_v29 }
 0x99d   :  { %1640 = vmatpush.msrb.mxu2 %v1611_v44 }
 0x99e   :  { %v1313_v32 = vadd.f32 %v1309_v31, %v1303_v30 }
 0x99f   :  { %1641 = vmatpush.msrb.mxu2 %v1609_v46 }
 0x9a0   :  { %2700 = vmatmul.msk.f32.gmra.mxu2 %vm231_vm1, %v1313_v32 }
 0x9a1   :  { %1642 = vmatpush.msrb.mxu2 %v1607_v48 }
 0x9a3   :  { %1643 = vmatpush.msrb.mxu2 %v1605_v49 }
 0x9a5   :  { %v1535_v21 = vpop.xlane.xlu2 %1534  ;;  %1644 = vmatpush.msrb.mxu2 %v1603_v52 }
 0x9a6   :  { %v1539_v4 = vmul.f32 %v1535_v21, %v3378_v26  ;;  %v3747_v21 = vld [vmem:[%s3986_s17 + $0x2] sm:$0x3] }
 0x9a7   :  { %1645 = vmatpush.msrb.mxu2 %v1601_v56  ;;  %v1593_v18 = vpop.permute.xlu0 %1592  ;;  %v1620_v38 = vperm.slane %v3747_v21, 0 }
 0x9a8   :  { %v3729_v34 = vsub.f32 %v3712_v10, %v1539_v4  ;;  %v1621_v4 = vperm.slane %v3747_v21, 1 }
 0x9aa   :  { %v1543_v39 = vmul.f32 %v3729_v34, %v3729_v34 }
 0x9ac   :  { %v1545_v40 = vsel %vm231_vm1, %v1543_v39, 0.0 }
 0x9ad   :  { %1546 = vadd.xlane.f32.xlu1 %v1545_v40 }
 0xa20   :  { %v1547_v59 = vpop.xlane.xlu1 %1546 }
 0xa21   :  { %v1551_v60 = vmul.f32 %v1547_v59, %v3378_v26  ;;  %v1581_v59 = vadd.f32 1.0, %v1578_v7 }
 0xa23   :  { %v1553_v62 = vadd.f32 1e-05, %v1551_v60  ;;  %v1352_v63 = vpop.f32.mrf.mxu2 }
 0xa24   :  { %v1353_v0 = vadd.f32 %v3676_v8, %v1352_v63  ;;  %v1584_v8 = vperm.slane %v1580_v12, 0 }
 0xa25   :  { %2870 = vrsqrt.f32 %v1553_v62  ;;  %vm1561_vm13 = vweird.f32 %v1553_v62 }
 0xa26   :  { %v2702_v20 = vmul.f32 -1.442695, %v1353_v0 }
 0xa28   :  { %2872 = vpow2.f32 %v2702_v20 }
 0xa2b   :  { %v2871_v1 = vpop.eup %2870 }
 0xa2c   :  { %v1556_v2 = vmul.f32 %v2871_v1, %v1553_v62  ;;  %vm1562_vm12 = vweird.f32 %v2871_v1 }
 0xa2d   :  { %vm1563_vm14 = vmor %vm1561_vm13, %vm1562_vm12 }
 0xa2e   :  { %v2873_v3 = vpop.eup %2872  ;;  %v1557_v55 = vmul.f32 %v2871_v1, %v1556_v2  ;;  %v1595_v2 = vpop.permute.xlu2 %1594 }
 0xa2f   :  { %v1362_v57 = vadd.f32 1.0, %v2873_v3 }
 0xa30   :  { %v1558_v9 = vmul.f32 0.5, %v1557_v55 }
 0xa31   :  { %2874 = vrcp.f32 %v1362_v57  ;;  %v1389_v25 = vand.u32 2147483648, %v1362_v57  ;;  %v1387_v29 = vand.u32 2147483647, %v1362_v57  ;;  %vm1383_vm2 = vweird.f32 %v1362_v57 }
 0xa32   :  { %v1559_v11 = vsub.f32 1.5, %v1558_v9 }
 0xa33   :  { %v1390_v31 = vor.u32 1.1754944e-38, %v1389_v25  ;;  %vm1388_vm4 = vcmp.eq.f32.partialorder %v1387_v29, 8.507059e+37 }
 0xa34   :  { %v1560_v13 = vmul.f32 %v2871_v1, %v1559_v11 }
 0xa36   :  { %v1564_v14 = vsel %vm1563_vm14, %v2871_v1, %v1560_v13 }
 0xa37   :  { %v2875_v16 = vpop.eup %2874  ;;  %v1575_v17 = vmul.f32 %v1564_v14, %v3729_v34 }
 0xa38   :  { %v1379_v22 = vmul.f32 %v2875_v16, %v1362_v57  ;;  %vm1384_vm15 = vweird.f32 %v2875_v16 }
 0xa39   :  { %v1588_v23 = vmul.f32 %v1584_v8, %v1575_v17  ;;  %vm1385_vm3 = vmor %vm1383_vm2, %vm1384_vm15 }
 0xa3a   :  { %v1380_v24 = vsub.f32 1.0, %v1379_v22 }
 0xa3b   :  { %v1598_v53 = vadd.f32 %v1593_v18, %v1588_v23 }
 0xa3c   :  { %v1381_v27 = vmul.f32 %v2875_v16, %v1380_v24 }
 0xa3d   :  { %2717 = vmatmul.msk.f32.vlgmr.msrb.gmra.mxu2 %vm231_vm1, %v1598_v53  ;;  %2719 = vmatmul.msk.f32.vlgmr.msra.gmra.mxu0 %vm231_vm1, %v1598_v53 }
 0xa3e   :  { %v1382_v30 = vadd.f32 %v2875_v16, %v1381_v27 }
 0xa40   :  { %v1386_v32 = vsel %vm1385_vm3, %v2875_v16, %v1382_v30 }
 0xa41   :  { %v1391_v35 = vsel %vm1388_vm4, %v1390_v31, %v1386_v32 }
 0xa42   :  { %v1394_v33 = vmul.f32 %v1391_v35, %v1353_v0  ;;  %v1585_v0 = vperm.slane %v1581_v59, 0 }
 0xa44   :  { %1430 = vmatmul.f32.gmra.mxu3 %v1394_v33 }
 0xaba   :  { %v1670_v36 = vpop.f32.mrf.mxu0 }
 0xabb   :  { %v3752_v34 = vadd.f32 %v1670_v36, %v1621_v4 }
 0xabd   :  { %1776 = vmatpush.msra.mxu2 %v3752_v34 }
 0xac0   :  { %v1647_v39 = vpop.f32.mrf.mxu2 }
 0xac1   :  { %v3756_v40 = vadd.f32 %v1647_v39, %v1620_v38 }
 0xac3   :  { %1944 = vrot.lane.b32.xlu2 %v3756_v40, %s3149_s0 }
 0xac7   :  { %v1431_v41 = vpop.f32.mrf.mxu3 }
 0xac8   :  { %v1435_v42 = vadd.f32 %v1431_v41, %v3694_v19 }
 0xaca   :  { %v3762_v37 = vadd.f32 %v3708_v6, %v1435_v42 }
 0xacc   :  { %v1536_v43 = vsel %vm231_vm1, %v3762_v37, 0.0 }
 0xacd   :  { %1537 = vadd.xlane.f32.xlu1 %v1536_v43 }
 0xae6   :  { %1677 = vrot.lane.b32.xlu1 %v3756_v40, %s3145_s3 }
 0xb1d   :  { %v1945_v17 = vpop.permute.xlu2 %1944 }
 0xb40   :  { %v1538_v44 = vpop.xlane.xlu1 %1537 }
 0xb41   :  { %v1540_v45 = vmul.f32 %v1538_v44, %v3378_v26 }
 0xb43   :  { %v1542_v46 = vsub.f32 %v3762_v37, %v1540_v45 }
 0xb45   :  { %v1544_v47 = vmul.f32 %v1542_v46, %v1542_v46 }
 0xb47   :  { %v1548_v48 = vsel %vm231_vm1, %v1544_v47, 0.0 }
 0xb48   :  { %1549 = vadd.xlane.f32.xlu0 %v1548_v48 }
 0xb58   :  { %v1678_v19 = vpop.permute.xlu1 %1677 }
 0xb59   :  { %2721 = vmatpush.xpose.msk.msra.mxu1 %vm201_vm0, %v1678_v19 }
 0xb5c   :  { %1806 = vrot.lane.b32.xlu0 %v3756_v40, %s3146_s7  ;;  %2722 = vmatmul.msk.f32.vlgmr.msra.gmra.mxu1 %vm201_vm0, %v3756_v40 }
 0xbbb   :  { %v1550_v6 = vpop.xlane.xlu0 %1549 }
 0xbbc   :  { %v1552_v50 = vmul.f32 %v1550_v6, %v3378_v26 }
 0xbbe   :  { %v1554_v49 = vadd.f32 1e-05, %v1552_v50 }
 0xbc0   :  { %2876 = vrsqrt.f32 %v1554_v49  ;;  %vm1571_vm8 = vweird.f32 %v1554_v49 }
 0xbc6   :  { %v2877_v51 = vpop.eup %2876 }
 0xbc7   :  { %v1566_v52 = vmul.f32 %v2877_v51, %v1554_v49  ;;  %vm1572_vm5 = vweird.f32 %v2877_v51 }
 0xbc8   :  { %vm1573_vm12 = vmor %vm1571_vm8, %vm1572_vm5 }
 0xbc9   :  { %v1567_v54 = vmul.f32 %v2877_v51, %v1566_v52 }
 0xbcb   :  { %v1568_v56 = vmul.f32 0.5, %v1567_v54 }
 0xbcd   :  { %v1569_v58 = vsub.f32 1.5, %v1568_v56 }
 0xbce   :  { %v1807_v60 = vpop.permute.xlu0 %1806 }
 0xbcf   :  { %v1570_v62 = vmul.f32 %v2877_v51, %v1569_v58  ;;  %2727 = vmatpush.xpose.msk.msrb.mxu2 %vm201_vm0, %v1807_v60 }
 0xbd1   :  { %v1574_v63 = vsel %vm1573_vm12, %v2877_v51, %v1570_v62 }
 0xbd2   :  { %v1576_v20 = vmul.f32 %v1574_v63, %v1542_v46 }
 0xbd4   :  { %v1589_v1 = vmul.f32 %v1585_v0, %v1576_v20 }
 0xbd6   :  { %v1599_v3 = vadd.f32 %v1595_v2, %v1589_v1 }
 0xbd8   :  { %2718 = vmatmul.msk.f32.gmra.mxu2 %vm231_vm1, %v1599_v3  ;;  %2720 = vmatmul.msk.f32.gmra.mxu0 %vm231_vm1, %v1599_v3 }
 0xbd9   :  { %v1700_v55 = vpop.f32.mrf.mxu1 }
 0xbda   :  { %v1730_v57 = vmul.f32 0.25, %v1700_v55 }
 0xbdc   :  { %v1732_v28 = vsel %vm3485_vm6, %v1730_v57, -3.4028235e+38 }
 0xbdd   :  { %v1734_v7 = vsel %vm602_vm7, %v1732_v28, -inf }
 0xbde   :  { %1735 = vmax.xlane.f32.xlu1 %v1734_v7 }
 0xbf7   :  { %1804 = vrot.lane.b32.xlu1 %v3756_v40, %s3148_s2 }
 0xbff   :  { %1942 = vrot.lane.b32.xlu1 %v3756_v40, %s3147_s8 }
 0xc07   :  { %2080 = vrot.lane.b32.xlu1 %v3756_v40, %s3138_s12 }
 0xc51   :  { %v1736_v9 = vpop.xlane.xlu1 %1735 }
 0xc52   :  { %v1740_v11 = vsub.f32 %v1732_v28, %v1736_v9 }
 0xc54   :  { %v1742_v12 = vmul.f32 1.442695, %v1740_v11 }
 0xc55   :  { %v1673_v18 = vpop.f32.mrf.mxu0 }
 0xc56   :  { %2878 = vpow2.f32 %v1742_v12  ;;  %v3803_v23 = vadd.f32 %v1673_v18, %v1621_v4 }
 0xc58   :  { %v2779_v57 = vpack.i.bf16 %v3803_v23, %v3752_v34 }
 0xc5b   :  { %v1650_v13 = vpop.f32.mrf.mxu2 }
 0xc5c   :  { %v2879_v14 = vpop.eup %2878  ;;  %v1651_v16 = vadd.f32 %v1650_v13, %v1620_v38 }
 0xc5d   :  { %v1746_v8 = vsel %vm602_vm7, %v2879_v14, 0.0 }
 0xc5e   :  { %1704 = vrot.lane.b32.xlu0 %v1651_v16, %s3145_s3  ;;  %2108 = vrot.lane.b32.xlu1 %v1651_v16, %s3138_s12 }
 0xc5f   :  { %1747 = vadd.xlane.f32.xlu2 %v1746_v8 }
 0xc66   :  { %1834 = vrot.lane.b32.xlu0 %v1651_v16, %s3146_s7 }
 0xc69   :  { %v1805_v22 = vpop.permute.xlu1 %1804 }
 0xc6e   :  { %1832 = vrot.lane.b32.xlu0 %v1651_v16, %s3148_s2 }
 0xc71   :  { %v1943_v25 = vpop.permute.xlu1 %1942 }
 0xc76   :  { %1972 = vrot.lane.b32.xlu0 %v1651_v16, %s3149_s0 }
 0xc77   :  { %2078 = vrot.lane.b32.xlu2 %v3756_v40, %s3150_s5 }
 0xc79   :  { %v2081_v35 = vpop.permute.xlu1 %2080 }
 0xc7e   :  { %1970 = vrot.lane.b32.xlu0 %v1651_v16, %s3147_s8 }
 0xc86   :  { %2106 = vrot.lane.b32.xlu0 %v1651_v16, %s3150_s5 }
 0xcd0   :  { %v1705_v24 = vpop.permute.xlu0 %1704  ;;  %v2109_v21 = vpop.permute.xlu1 %2108 }
 0xcd1   :  { %2723 = vmatpush.xpose.msk.msrb.mxu1 %vm201_vm0, %v1705_v24 }
 0xcd2   :  { %v1748_v53 = vpop.xlane.xlu2 %1747 }
 0xcd3   :  { %2880 = vrcp.f32 %v1748_v53 }
 0xcd4   :  { %2724 = vmatmul.msk.f32.vlgmr.msrb.gmra.mxu1 %vm201_vm0, %v1651_v16 }
 0xcd5   :  { %1799 = vmatpush.msra.mxu1 %v3803_v23 }
 0xcd8   :  { %v1835_v27 = vpop.permute.xlu0 %1834 }
 0xcd9   :  { %v2881_v29 = vpop.eup %2880  ;;  %2729 = vmatpush.xpose.msk.msrb.mxu3 %vm201_vm0, %v1835_v27 }
 0xcda   :  { %v1754_v30 = vmul.f32 %v2881_v29, %v2879_v14  ;;  %v2079_v36 = vpop.permute.xlu2 %2078 }
 0xcdc   :  { %v1756_v31 = vsel %vm3485_vm6, %v1754_v30, 0.0 }
 0xcdd   :  { %2725 = vmatmul.msk.f32.vlgmr.msra.gmra.mxu2 %vm602_vm7, %v1756_v31 }
 0xcde   :  { %2733 = vmatpush.xpose.msk.msra.mxu2 %vm201_vm0, %v1945_v17 }
 0xce0   :  { %v1833_v32 = vpop.permute.xlu0 %1832 }
 0xce1   :  { %2730 = vmatmul.msk.f32.vlgmr.msrb.gmra.mxu3 %vm201_vm0, %v1833_v32 }
 0xce5   :  { %2728 = vmatmul.msk.f32.vlgmr.msrb.gmra.mxu2 %vm201_vm0, %v1805_v22 }
 0xce6   :  { %2739 = vmatpush.xpose.msk.msrb.mxu2 %vm201_vm0, %v2081_v35 }
 0xce8   :  { %v1973_v33 = vpop.permute.xlu0 %1972 }
 0xce9   :  { %2735 = vmatpush.xpose.msk.msra.mxu3 %vm201_vm0, %v1973_v33 }
 0xced   :  { %2741 = vmatpush.xpose.msk.msrb.mxu3 %vm201_vm0, %v2109_v21  ;;  %2734 = vmatmul.msk.f32.vlgmr.msra.gmra.mxu2 %vm201_vm0, %v1943_v25 }
 0xcf0   :  { %v1971_v4 = vpop.permute.xlu0 %1970 }
 0xcf1   :  { %2736 = vmatmul.msk.f32.vlgmr.msra.gmra.mxu3 %vm201_vm0, %v1971_v4 }
 0xcf5   :  { %2740 = vmatmul.msk.f32.vlgmr.msrb.gmra.mxu2 %vm201_vm0, %v2079_v36 }
 0xcf8   :  { %v2107_v38 = vpop.permute.xlu0 %2106 }
 0xcf9   :  { %2742 = vmatmul.msk.f32.vlgmr.msrb.gmra.mxu3 %vm201_vm0, %v2107_v38 }
 0xd51   :  { %v1727_v39 = vpop.f32.mrf.mxu1 }
 0xd52   :  { %v1731_v40 = vmul.f32 0.25, %v1727_v39 }
 0xd54   :  { %v1733_v41 = vsel %vm3540_vm9, %v1731_v40, -3.4028235e+38 }
 0xd55   :  { %v1737_v42 = vsel %vm602_vm7, %v1733_v41, -inf }
 0xd56   :  { %1738 = vmax.xlane.f32.xlu2 %v1737_v42 }
 0xd60   :  { %v3825_v43 = vpop.f32.mrf.mxu2 }
 0xd64   :  { %v1857_v44 = vpop.f32.mrf.mxu3 }
 0xd65   :  { %v1861_v45 = vmul.f32 0.25, %v1857_v44 }
 0xd67   :  { %v1863_v46 = vsel %vm3540_vm9, %v1861_v45, -3.4028235e+38 }
 0xd68   :  { %v1829_v47 = vpop.f32.mrf.mxu2  ;;  %v1867_v48 = vsel %vm602_vm7, %v1863_v46, -inf }
 0xd69   :  { %v1860_v19 = vmul.f32 0.25, %v1829_v47  ;;  %1868 = vmax.xlane.f32.xlu0 %v1867_v48 }
 0xd6b   :  { %v1862_v6 = vsel %vm3485_vm6, %v1860_v19, -3.4028235e+38 }
 0xd6c   :  { %v1864_v50 = vsel %vm602_vm7, %v1862_v6, -inf }
 0xd6d   :  { %1865 = vmax.xlane.f32.xlu1 %v1864_v50 }
 0xd70   :  { %v1967_v49 = vpop.f32.mrf.mxu2 }
 0xd71   :  { %v1998_v51 = vmul.f32 0.25, %v1967_v49 }
 0xd73   :  { %v2000_v52 = vsel %vm3485_vm6, %v1998_v51, -3.4028235e+38 }
 0xd74   :  { %v1995_v54 = vpop.f32.mrf.mxu3  ;;  %v2002_v56 = vsel %vm602_vm7, %v2000_v52, -inf }
 0xd75   :  { %v1999_v58 = vmul.f32 0.25, %v1995_v54  ;;  %2003 = vmax.xlane.f32.xlu2 %v2002_v56 }
 0xd77   :  { %v2001_v59 = vsel %vm3540_vm9, %v1999_v58, -3.4028235e+38 }
 0xd78   :  { %v2103_v60 = vpop.f32.mrf.mxu2  ;;  %v2005_v62 = vsel %vm602_vm7, %v2001_v59, -inf }
 0xd79   :  { %v2134_v63 = vmul.f32 0.25, %v2103_v60  ;;  %2006 = vmax.xlane.f32.xlu1 %v2005_v62 }
 0xd7b   :  { %v2136_v0 = vsel %vm3485_vm6, %v2134_v63, -3.4028235e+38 }
 0xd7c   :  { %v2138_v20 = vsel %vm602_vm7, %v2136_v0, -inf  ;;  %v2131_v1 = vpop.f32.mrf.mxu3 }
 0xd7d   :  { %2139 = vmax.xlane.f32.xlu0 %v2138_v20  ;;  %v2135_v2 = vmul.f32 0.25, %v2131_v1 }
 0xd7f   :  { %v2137_v3 = vsel %vm3540_vm9, %v2135_v2, -3.4028235e+38 }
 0xd80   :  { %v2141_v55 = vsel %vm602_vm7, %v2137_v3, -inf }
 0xd81   :  { %2142 = vmax.xlane.f32.xlu2 %v2141_v55 }
 0xd91   :  { %2780 = vrot.lane.b32.xlu0 %v2779_v57, %s3148_s2 }
 0xdc9   :  { %v1739_v28 = vpop.xlane.xlu2 %1738 }
 0xdca   :  { %v1741_v7 = vsub.f32 %v1733_v41, %v1739_v28 }
 0xdcc   :  { %v1744_v9 = vmul.f32 1.442695, %v1741_v7 }
 0xdce   :  { %2882 = vpow2.f32 %v1744_v9 }
 0xdd4   :  { %v2883_v11 = vpop.eup %2882 }
 0xdd5   :  { %v1749_v12 = vsel %vm602_vm7, %v2883_v11, 0.0 }
 0xdd6   :  { %1750 = vadd.xlane.f32.xlu1 %v1749_v12 }
 0xddc   :  { %v1869_v13 = vpop.xlane.xlu0 %1868 }
 0xddd   :  { %v1871_v14 = vsub.f32 %v1863_v46, %v1869_v13 }
 0xddf   :  { %v1874_v16 = vmul.f32 1.442695, %v1871_v14 }
 0xde0   :  { %v1866_v8 = vpop.xlane.xlu1 %1865 }
 0xde1   :  { %2884 = vpow2.f32 %v1874_v16  ;;  %v1870_v17 = vsub.f32 %v1862_v6, %v1866_v8 }
 0xde3   :  { %v1872_v18 = vmul.f32 1.442695, %v1870_v17 }
 0xde5   :  { %2886 = vpow2.f32 %v1872_v18 }
 0xde7   :  { %v2885_v22 = vpop.eup %2884 }
 0xde8   :  { %v1879_v24 = vsel %vm602_vm7, %v2885_v22, 0.0  ;;  %v2004_v25 = vpop.xlane.xlu2 %2003 }
 0xde9   :  { %1880 = vadd.xlane.f32.xlu2 %v1879_v24  ;;  %v2008_v21 = vsub.f32 %v2000_v52, %v2004_v25 }
 0xdeb   :  { %v2887_v53 = vpop.eup %2886  ;;  %v2010_v38 = vmul.f32 1.442695, %v2008_v21  ;;  %v2296_v21 = vld [vmem:[#allocation5 + $0x60] sm:$0xff] }
 0xdec   :  { %v1876_v27 = vsel %vm602_vm7, %v2887_v53, 0.0  ;;  %v2007_v29 = vpop.xlane.xlu1 %2006 }
 0xded   :  { %1877 = vadd.xlane.f32.xlu0 %v1876_v27  ;;  %v2009_v30 = vsub.f32 %v2001_v59, %v2007_v29 }
 0xdef   :  { %v2012_v31 = vmul.f32 1.442695, %v2009_v30 }
 0xdf0   :  { %v2140_v39 = vpop.xlane.xlu0 %2139 }
 0xdf1   :  { %2888 = vpow2.f32 %v2012_v31  ;;  %v2144_v41 = vsub.f32 %v2136_v0, %v2140_v39  ;;  %v2292_v39 = vld [vmem:[#allocation5 + $0x40] sm:$0xff] }
 0xdf3   :  { %v2146_v44 = vmul.f32 1.442695, %v2144_v41  ;;  %v2251_v41 = vld [vmem:[#allocation10 + $0x70] sm:$0xff] }
 0xdf4   :  { %v2143_v32 = vpop.xlane.xlu2 %2142 }
 0xdf5   :  { %v2145_v35 = vsub.f32 %v2137_v3, %v2143_v32  ;;  %v2299_v32 = vld [vmem:[#allocation5 + $0x78] sm:$0xff] }
 0xdf6   :  { %2324 = vmatpush.msra.mxu3 %v2299_v32 }
 0xdf7   :  { %v2889_v33 = vpop.eup %2888  ;;  %v2148_v4 = vmul.f32 1.442695, %v2145_v35  ;;  %v2298_v35 = vld [vmem:[#allocation5 + $0x70] sm:$0xff] }
 0xdf8   :  { %v2017_v36 = vsel %vm602_vm7, %v2889_v33, 0.0  ;;  %2325 = vmatpush.msra.mxu3 %v2298_v35  ;;  %v2803_v35 = vld [vmem:[%s3984_s15 + $0x1] ss:$0 sm:$0xff] }
 0xdf9   :  { %2890 = vpow2.f32 %v2148_v4  ;;  %2018 = vadd.xlane.f32.xlu2 %v2017_v36  ;;  %v2295_v4 = vld [vmem:[#allocation5 + $0x58] sm:$0xff]  ;;  %v2294_v36 = vld [vmem:[#allocation5 + $0x50] sm:$0xff] }
 0xdfa   :  { %2892 = vpow2.f32 %v2010_v38  ;;  %v2293_v38 = vld [vmem:[#allocation5 + $0x48] sm:$0xff] }
 0xdfb   :  { %2894 = vpow2.f32 %v2146_v44  ;;  %v2249_v44 = vld [vmem:[#allocation10 + $0x60] sm:$0xff] }
 0xdff   :  { %v3852_v40 = vpop.eup %2890 }
 0xe00   :  { %v2153_v42 = vsel %vm602_vm7, %v3852_v40, 0.0  ;;  %v2893_v48 = vpop.eup %2892 }
 0xe01   :  { %2162 = vrot.lane.b32.xlu0 %v3752_v34, %s3150_s5  ;;  %2154 = vadd.xlane.f32.xlu1 %v2153_v42  ;;  %v2014_v19 = vsel %vm602_vm7, %v2893_v48, 0.0  ;;  %v2895_v6 = vpop.eup %2894  ;;  %v2250_v42 = vld [vmem:[#allocation10 + $0x68] sm:$0xff] }
 0xe02   :  { %v2150_v50 = vsel %vm602_vm7, %v2895_v6, 0.0 }
 0xe03   :  { %v2781_v45 = vpop.permute.xlu0 %2780 }
 0xe04   :  { %v2783_v46 = vunpack.i.h.bf16 %v2781_v45  ;;  %v2782_v47 = vunpack.i.l.bf16 %v2781_v45  ;;  %v2248_v45 = vld [vmem:[#allocation10 + $0x58] sm:$0xff] }
 0xe06   :  { %1910 = vmatpush.msrb.mxu0 %v2782_v47  ;;  %1937 = vmatpush.msrb.mxu1 %v2783_v46  ;;  %v2247_v46 = vld [vmem:[#allocation10 + $0x50] sm:$0xff]  ;;  %v2246_v47 = vld [vmem:[#allocation10 + $0x48] sm:$0xff] }
 0xe09   :  { %2015 = vadd.xlane.f32.xlu1 %v2014_v19 }
 0xe11   :  { %2785 = vrot.lane.b32.xlu2 %v2779_v57, %s3147_s8  ;;  %2151 = vadd.xlane.f32.xlu1 %v2150_v50 }
 0xe2a   :  { %2188 = vrot.lane.b32.xlu1 %v3803_v23, %s3150_s5 }
 0xe49   :  { %v1751_v34 = vpop.xlane.xlu1 %1750 }
 0xe4a   :  { %2896 = vrcp.f32 %v1751_v34 }
 0xe50   :  { %v2897_v49 = vpop.eup %2896 }
 0xe51   :  { %v1755_v51 = vmul.f32 %v2897_v49, %v2883_v11 }
 0xe53   :  { %v1757_v52 = vsel %vm3540_vm9, %v1755_v51, 0.0 }
 0xe54   :  { %2726 = vmatmul.msk.f32.vlgmr.msra.gmra.mxu1 %vm602_vm7, %v1757_v52 }
 0xe5c   :  { %v1881_v54 = vpop.xlane.xlu2 %1880 }
 0xe5d   :  { %2898 = vrcp.f32 %v1881_v54 }
 0xe60   :  { %v1878_v56 = vpop.xlane.xlu0 %1877 }
 0xe61   :  { %2900 = vrcp.f32 %v1878_v56 }
 0xe63   :  { %v2899_v58 = vpop.eup %2898 }
 0xe64   :  { %v1885_v59 = vmul.f32 %v2899_v58, %v2885_v22 }
 0xe66   :  { %v1887_v60 = vsel %vm3540_vm9, %v1885_v59, 0.0 }
 0xe67   :  { %v2901_v62 = vpop.eup %2900  ;;  %2732 = vmatmul.msk.f32.vlgmr.msrb.gmra.mxu1 %vm602_vm7, %v1887_v60  ;;  %v2310_v60 = vld [vmem:[#allocation7 + $0x78] sm:$0xff] }
 0xe68   :  { %v1884_v23 = vmul.f32 %v2901_v62, %v2887_v53  ;;  %v2309_v62 = vld [vmem:[#allocation7 + $0x70] sm:$0xff] }
 0xe6a   :  { %v1886_v63 = vsel %vm3485_vm6, %v1884_v23, 0.0 }
 0xe6b   :  { %2731 = vmatmul.msk.f32.vlgmr.msrb.gmra.mxu0 %vm602_vm7, %v1886_v63 }
 0xe6c   :  { %v2019_v0 = vpop.xlane.xlu2 %2018 }
 0xe6d   :  { %2902 = vrcp.f32 %v2019_v0 }
 0xe73   :  { %v2903_v20 = vpop.eup %2902  ;;  %v2163_v7 = vpop.permute.xlu0 %2162 }
 0xe74   :  { %v2023_v1 = vmul.f32 %v2903_v20, %v2889_v33  ;;  %v2155_v2 = vpop.xlane.xlu1 %2154  ;;  %v2786_v3 = vpop.permute.xlu2 %2785  ;;  %v2297_v33 = vld [vmem:[#allocation5 + $0x68] sm:$0xff] }
 0xe75   :  { %v2788_v55 = vunpack.i.h.bf16 %v2786_v3  ;;  %v2787_v57 = vunpack.i.l.bf16 %v2786_v3  ;;  %2326 = vmatpush.msra.mxu3 %v2297_v33 }
 0xe76   :  { %v2025_v28 = vsel %vm3540_vm9, %v2023_v1, 0.0 }
 0xe77   :  { %2047 = vmatpush.msra.mxu0 %v2787_v57  ;;  %2073 = vmatpush.msra.mxu1 %v2788_v55  ;;  %v2308_v55 = vld [vmem:[#allocation7 + $0x68] sm:$0xff] }
 0xe78   :  { %2738 = vmatmul.msk.f32.vlgmr.msra.gmra.mxu1 %vm602_vm7, %v2025_v28  ;;  %2327 = vmatpush.msra.mxu3 %v2296_v21 }
 0xe79   :  { %2183 = vmatpush.msrb.mxu0 %v2163_v7 }
 0xe7a   :  { %2328 = vmatpush.msra.mxu3 %v2295_v4 }
 0xe7c   :  { %v2016_v9 = vpop.xlane.xlu1 %2015  ;;  %2329 = vmatpush.msra.mxu3 %v2294_v36 }
 0xe7d   :  { %2904 = vrcp.f32 %v2016_v9  ;;  %v2307_v9 = vld [vmem:[#allocation7 + $0x60] sm:$0xff] }
 0xe7e   :  { %2330 = vmatpush.msra.mxu3 %v2293_v38 }
 0xe80   :  { %2331 = vmatpush.msra.mxu3 %v2292_v39 }
 0xe81   :  { %2750 = vmatmul.msk.f32.vlgmr.msra.gmra.mxu3 %vm231_vm1, %v3688_v15 }
 0xe83   :  { %v2905_v11 = vpop.eup %2904 }
 0xe84   :  { %v2022_v12 = vmul.f32 %v2905_v11, %v2893_v48  ;;  %v2152_v13 = vpop.xlane.xlu1 %2151  ;;  %v2245_v48 = vld [vmem:[#allocation10 + $0x40] sm:$0xff] }
 0xe85   :  { %2906 = vrcp.f32 %v2152_v13 }
 0xe86   :  { %v2024_v14 = vsel %vm3485_vm6, %v2022_v12, 0.0  ;;  %2908 = vrcp.f32 %v2155_v2  ;;  %v2306_v12 = vld [vmem:[#allocation7 + $0x58] sm:$0xff] }
 0xe87   :  { %2737 = vmatmul.msk.f32.vlgmr.msra.gmra.mxu0 %vm602_vm7, %v2024_v14 }
 0xe88   :  { %2370 = vmatpush.msra.mxu0 %v2310_v60 }
 0xe8a   :  { %2371 = vmatpush.msra.mxu0 %v2309_v62 }
 0xe8b   :  { %v2907_v16 = vpop.eup %2906 }
 0xe8c   :  { %v2158_v8 = vmul.f32 %v2907_v16, %v2895_v6  ;;  %v2909_v18 = vpop.eup %2908  ;;  %2372 = vmatpush.msra.mxu0 %v2308_v55  ;;  %v2305_v16 = vld [vmem:[#allocation7 + $0x50] sm:$0xff] }
 0xe8d   :  { %v2159_v22 = vmul.f32 %v2909_v18, %v3852_v40  ;;  %v2252_v40 = vld [vmem:[#allocation10 + $0x78] sm:$0xff] }
 0xe8e   :  { %v2160_v17 = vsel %vm3485_vm6, %v2158_v8, 0.0  ;;  %2267 = vmatpush.msra.mxu2 %v2252_v40  ;;  %2373 = vmatpush.msra.mxu0 %v2307_v9 }
 0xe8f   :  { %2743 = vmatmul.msk.f32.vlgmr.msrb.gmra.mxu0 %vm602_vm7, %v2160_v17  ;;  %v2161_v53 = vsel %vm3540_vm9, %v2159_v22, 0.0  ;;  %v2304_v17 = vld [vmem:[#allocation7 + $0x48] sm:$0xff] }
 0xe90   :  { %2268 = vmatpush.msra.mxu2 %v2251_v41  ;;  %2374 = vmatpush.msra.mxu0 %v2306_v12 }
 0xe92   :  { %2269 = vmatpush.msra.mxu2 %v2250_v42  ;;  %2375 = vmatpush.msra.mxu0 %v2305_v16 }
 0xe94   :  { %2270 = vmatpush.msra.mxu2 %v2249_v44  ;;  %2376 = vmatpush.msra.mxu0 %v2304_v17 }
 0xe96   :  { %2271 = vmatpush.msra.mxu2 %v2248_v45 }
 0xe98   :  { %2272 = vmatpush.msra.mxu2 %v2247_v46 }
 0xe9a   :  { %2273 = vmatpush.msra.mxu2 %v2246_v47 }
 0xe9c   :  { %v2189_v24 = vpop.permute.xlu1 %2188  ;;  %2274 = vmatpush.msra.mxu2 %v2245_v48  ;;  %v2457_v48 = vld [vmem:[#allocation11 + $0x78] sm:$0xff] }
 0xe9d   :  { %2209 = vmatpush.msrb.mxu1 %v2189_v24  ;;  %v2303_v24 = vld [vmem:[#allocation7 + $0x40] sm:$0xff] }
 0xe9e   :  { %2744 = vmatmul.msk.f32.vlgmr.msrb.gmra.mxu1 %vm602_vm7, %v2161_v53  ;;  %2377 = vmatpush.msra.mxu0 %v2303_v24  ;;  %v2802_v53 = vld [vmem:[%s3988_s19 + $0x1] ss:$0 sm:$0xff] }
 0xe9f   :  { %2477 = vmatpush.msra.mxu1 %v2457_v48 }
 0xed1   :  { %v1801_v27 = vpop.f32.mrf.mxu1 }
 0xee4   :  { %v1939_v61 = vpop.f32.mrf.mxu1 }
 0xee8   :  { %v1912_v25 = vpop.f32.mrf.mxu0 }
 0xee9   :  { %2216 = vrot.lane.b32.xlu0 %v1912_v25, %s3138_s12 }
 0xef5   :  { %v2075_v31 = vpop.f32.mrf.mxu1 }
 0xf04   :  { %v2049_v29 = vpop.f32.mrf.mxu0  ;;  %v2333_v23 = vpop.f32.mrf.mxu3 }
 0xf05   :  { %2224 = vrot.lane.b32.xlu2 %v2049_v29, %s3149_s0 }
 0xf0c   :  { %v2185_v30 = vpop.f32.mrf.mxu0 }
 0xf0d   :  { %2218 = vrot.lane.b32.xlu2 %v1939_v61, %s3138_s12  ;;  %2232 = vrot.lane.b32.xlu0 %v2185_v30, %s3146_s7 }
 0xf15   :  { %2226 = vrot.lane.b32.xlu0 %v2075_v31, %s3149_s0 }
 0xf1b   :  { %v2211_v5 = vpop.f32.mrf.mxu1 }
 0xf1c   :  { %2234 = vrot.lane.b32.xlu1 %v2211_v5, %s3146_s7 }
 0xf5b   :  { %v2217_v19 = vpop.permute.xlu0 %2216 }
 0xf5c   :  { %v2238_v15 = vsel %vm201_vm0, %v3825_v43, %v2217_v19  ;;  %v2801_v43 = vld [vmem:[%s3982_s13 + $0x1] ss:$0 sm:$0xff]  ;;  %v2456_v19 = vld [vmem:[#allocation11 + $0x70] sm:$0xff] }
 0xf5d   :  { %v2334_v63 = vadd.f32 %v2801_v43, %v2333_v23  ;;  %2478 = vmatpush.msra.mxu1 %v2456_v19 }
 0xf5f   :  { %v2225_v6 = vpop.permute.xlu2 %2224  ;;  %v2751_v0 = vmul.f32 -1.442695, %v2334_v63 }
 0xf60   :  { %v2240_v50 = vsel %vm1109_vm10, %v2238_v15, %v2225_v6  ;;  %v2455_v6 = vld [vmem:[#allocation11 + $0x68] sm:$0xff]  ;;  %v2454_v15 = vld [vmem:[#allocation11 + $0x60] sm:$0xff] }
 0xf61   :  { %2910 = vpow2.f32 %v2751_v0  ;;  %2479 = vmatpush.msra.mxu1 %v2455_v6 }
 0xf63   :  { %2480 = vmatpush.msra.mxu1 %v2454_v15 }
 0xf67   :  { %v2219_v51 = vpop.permute.xlu2 %2218  ;;  %v2911_v20 = vpop.eup %2910 }
 0xf68   :  { %v2239_v54 = vsel %vm201_vm0, %v1801_v27, %v2219_v51  ;;  %v2339_v1 = vadd.f32 1.0, %v2911_v20  ;;  %v2450_v51 = vld [vmem:[#allocation11 + $0x40] sm:$0xff] }
 0xf6a   :  { %2912 = vrcp.f32 %v2339_v1  ;;  %v2351_v57 = vand.u32 2147483648, %v2339_v1  ;;  %vm2345_vm0 = vweird.f32 %v2339_v1  ;;  %v2349_v7 = vand.u32 2147483647, %v2339_v1 }
 0xf6c   :  { %v2352_v13 = vor.u32 1.1754944e-38, %v2351_v57  ;;  %vm2350_vm9 = vcmp.eq.f32.partialorder %v2349_v7, 8.507059e+37 }
 0xf70   :  { %v2913_v2 = vpop.eup %2912 }
 0xf71   :  { %v2341_v3 = vmul.f32 %v2913_v2, %v2339_v1  ;;  %vm2346_vm6 = vweird.f32 %v2913_v2 }
 0xf72   :  { %vm2347_vm7 = vmor %vm2345_vm0, %vm2346_vm6 }
 0xf73   :  { %v2342_v28 = vsub.f32 1.0, %v2341_v3 }
 0xf75   :  { %v2343_v11 = vmul.f32 %v2913_v2, %v2342_v28 }
 0xf77   :  { %v2344_v14 = vadd.f32 %v2913_v2, %v2343_v11 }
 0xf79   :  { %v2348_v8 = vsel %vm2347_vm7, %v2913_v2, %v2344_v14 }
 0xf7a   :  { %v2353_v18 = vsel %vm2350_vm9, %v2352_v13, %v2348_v8 }
 0xf7b   :  { %v2355_v22 = vmul.f32 %v2353_v18, %v2334_v63 }
 0xf7d   :  { %2752 = vmatmul.msk.f32.vlgmr.msra.gmra.mxu0 %vm231_vm1, %v2355_v22 }
 0xf7f   :  { %v2233_v34 = vpop.permute.xlu0 %2232 }
 0xf80   :  { %v2242_v49 = vsel %vm1112_vm11, %v2240_v50, %v2233_v34  ;;  %v2453_v50 = vld [vmem:[#allocation11 + $0x58] sm:$0xff]  ;;  %v2452_v34 = vld [vmem:[#allocation11 + $0x50] sm:$0xff] }
 0xf81   :  { %2745 = vmatmul.msk.f32.vlgmr.msra.gmra.mxu2 %vm231_vm1, %v2242_v49  ;;  %2481 = vmatpush.msra.mxu1 %v2453_v50  ;;  %v2451_v49 = vld [vmem:[#allocation11 + $0x48] sm:$0xff] }
 0xf83   :  { %2482 = vmatpush.msra.mxu1 %v2452_v34 }
 0xf85   :  { %2483 = vmatpush.msra.mxu1 %v2451_v49 }
 0xf87   :  { %v2227_v52 = vpop.permute.xlu0 %2226  ;;  %2484 = vmatpush.msra.mxu1 %v2450_v51 }
 0xf88   :  { %v2241_v56 = vsel %vm1109_vm10, %v2239_v54, %v2227_v52 }
 0xf8e   :  { %v2235_v58 = vpop.permute.xlu1 %2234 }
 0xf8f   :  { %v2243_v59 = vsel %vm1112_vm11, %v2241_v56, %v2235_v58 }
 0xf90   :  { %2746 = vmatmul.msk.f32.gmra.mxu2 %vm231_vm1, %v2243_v59 }
0x1004   :  { %v2276_v25 = vpop.f32.mrf.mxu2 }
0x1005   :  { %v2282_v27 = vadd.f32 %v2276_v25, %v3712_v10  ;;  %v2379_v10 = vpop.f32.mrf.mxu0 }
0x1006   :  { %v3922_v33 = vadd.f32 %v2803_v35, %v2379_v10  ;;  %v2543_v35 = vld [vmem:[#allocation13 + $0xd0] sm:$0xff]  ;;  %v2542_v10 = vld [vmem:[#allocation13 + $0xc8] sm:$0xff] }
0x1007   :  { %v3910_v29 = vadd.f32 %v2802_v53, %v2282_v27  ;;  %v2548_v27 = vld [vmem:[#allocation13 + $0xf8] sm:$0xff] }
0x1008   :  { %v2439_v21 = vperm.slane %v3922_v33, 0  ;;  %v2427_v46 = vrot.slane %v3922_v33, 1  ;;  %v2429_v20 = vadd.f32 1.0, %v3922_v33  ;;  %2549 = vmatpush.msrb.mxu2 %v2548_v27  ;;  %v2541_v33 = vld [vmem:[#allocation13 + $0xc0] sm:$0xff] }
0x1009   :  { %v2382_v61 = vsel %vm231_vm1, %v3910_v29, 0.0 }
0x100a   :  { %2383 = vadd.xlane.f32.xlu2 %v2382_v61  ;;  %v2440_v47 = vperm.slane %v2427_v46, 0  ;;  %v2433_v55 = vperm.slane %v2429_v20, 0  ;;  %v2430_v16 = vadd.f32 1.0, %v2427_v46  ;;  %v2547_v61 = vld [vmem:[#allocation13 + $0xf0] sm:$0xff] }
0x100b   :  { %2550 = vmatpush.msrb.mxu2 %v2547_v61 }
0x100c   :  { %v2434_v22 = vperm.slane %v2430_v16, 0 }
0x1013   :  { %v2279_v30 = vpop.f32.mrf.mxu2 }
0x1014   :  { %v2283_v31 = vadd.f32 %v2279_v30, %v3762_v37  ;;  %v2546_v30 = vld [vmem:[#allocation13 + $0xe8] sm:$0xff] }
0x1015   :  { %2551 = vmatpush.msrb.mxu2 %v2546_v30 }
0x1016   :  { %v3915_v5 = vadd.f32 %v2802_v53, %v2283_v31  ;;  %v2545_v31 = vld [vmem:[#allocation13 + $0xe0] sm:$0xff] }
0x1017   :  { %2552 = vmatpush.msrb.mxu2 %v2545_v31 }
0x1018   :  { %v2385_v32 = vsel %vm231_vm1, %v3915_v5, 0.0 }
0x1019   :  { %2386 = vadd.xlane.f32.xlu0 %v2385_v32  ;;  %v2544_v32 = vld [vmem:[#allocation13 + $0xd8] sm:$0xff] }
0x101a   :  { %2553 = vmatpush.msrb.mxu2 %v2544_v32 }
0x101c   :  { %2554 = vmatpush.msrb.mxu2 %v2543_v35 }
0x101e   :  { %2555 = vmatpush.msrb.mxu2 %v2542_v10 }
0x1020   :  { %2556 = vmatpush.msrb.mxu2 %v2541_v33 }
0x102d   :  { %2441 = vrot.lane.b32.xlu0 %v2439_v21, %s3145_s3  ;;  %v2540_v21 = vld [vmem:[#allocation13 + $0xb8] sm:$0xff] }
0x102e   :  { %2557 = vmatpush.msrb.mxu2 %v2540_v21 }
0x107d   :  { %v2384_v4 = vpop.xlane.xlu2 %2383 }
0x107e   :  { %v2388_v37 = vmul.f32 %v2384_v4, %v3378_v26  ;;  %v2539_v4 = vld [vmem:[#allocation13 + $0xb0] sm:$0xff] }
0x107f   :  { %2558 = vmatpush.msrb.mxu2 %v2539_v4 }
0x1080   :  { %v2390_v36 = vsub.f32 %v3910_v29, %v2388_v37  ;;  %v2538_v37 = vld [vmem:[#allocation13 + $0xa8] sm:$0xff] }
0x1081   :  { %2559 = vmatpush.msrb.mxu2 %v2538_v37 }
0x1082   :  { %v2392_v38 = vmul.f32 %v2390_v36, %v2390_v36 }
0x1084   :  { %v2394_v39 = vsel %vm231_vm1, %v2392_v38, 0.0  ;;  %v2536_v38 = vld [vmem:[#allocation13 + $0x98] sm:$0xff] }
0x1085   :  { %2395 = vadd.xlane.f32.xlu1 %v2394_v39  ;;  %v2804_v39 = vld [vmem:[%s3990_s21 + $0x1] ss:$0 sm:$0xff] }
0x108c   :  { %v2387_v40 = vpop.xlane.xlu0 %2386 }
0x108d   :  { %v2389_v41 = vmul.f32 %v2387_v40, %v3378_v26  ;;  %v2535_v40 = vld [vmem:[#allocation13 + $0x90] sm:$0xff] }
0x108f   :  { %v2391_v42 = vsub.f32 %v3915_v5, %v2389_v41  ;;  %v2534_v41 = vld [vmem:[#allocation13 + $0x88] sm:$0xff] }
0x1091   :  { %v2393_v44 = vmul.f32 %v2391_v42, %v2391_v42 }
0x1093   :  { %v2397_v45 = vsel %vm231_vm1, %v2393_v44, 0.0 }
0x1094   :  { %2398 = vadd.xlane.f32.xlu2 %v2397_v45 }
0x109e   :  { %2443 = vrot.lane.b32.xlu1 %v2440_v47, %s3145_s3 }
0x109f   :  { %v2442_v7 = vpop.permute.xlu0 %2441 }
0x10f8   :  { %v2396_v52 = vpop.xlane.xlu1 %2395 }
0x10f9   :  { %v2400_v54 = vmul.f32 %v2396_v52, %v3378_v26 }
0x10fb   :  { %v2402_v56 = vadd.f32 1e-05, %v2400_v54 }
0x10fd   :  { %2914 = vrsqrt.f32 %v2402_v56  ;;  %vm2410_vm11 = vweird.f32 %v2402_v56 }
0x1103   :  { %v2915_v58 = vpop.eup %2914 }
0x1104   :  { %v2405_v59 = vmul.f32 %v2915_v58, %v2402_v56  ;;  %vm2411_vm10 = vweird.f32 %v2915_v58 }
0x1105   :  { %vm2412_vm13 = vmor %vm2410_vm11, %vm2411_vm10 }
0x1106   :  { %v2406_v43 = vmul.f32 %v2915_v58, %v2405_v59 }
0x1107   :  { %v2399_v60 = vpop.xlane.xlu2 %2398 }
0x1108   :  { %v2407_v62 = vmul.f32 0.5, %v2406_v43  ;;  %v2401_v23 = vmul.f32 %v2399_v60, %v3378_v26 }
0x110a   :  { %v2408_v63 = vsub.f32 1.5, %v2407_v62  ;;  %v2403_v0 = vadd.f32 1e-05, %v2401_v23 }
0x110c   :  { %v2409_v1 = vmul.f32 %v2915_v58, %v2408_v63  ;;  %2916 = vrsqrt.f32 %v2403_v0  ;;  %vm2420_vm15 = vweird.f32 %v2403_v0 }
0x110e   :  { %v2413_v2 = vsel %vm2412_vm13, %v2915_v58, %v2409_v1 }
0x110f   :  { %v2424_v3 = vmul.f32 %v2413_v2, %v2390_v36  ;;  %v2537_v36 = vld [vmem:[#allocation13 + $0xa0] sm:$0xff] }
0x1110   :  { %v2444_v53 = vpop.permute.xlu1 %2443  ;;  %2560 = vmatpush.msrb.mxu2 %v2537_v36 }
0x1111   :  { %v2437_v57 = vmul.f32 %v2433_v55, %v2424_v3 }
0x1112   :  { %v2917_v28 = vpop.eup %2916  ;;  %2561 = vmatpush.msrb.mxu2 %v2536_v38 }
0x1113   :  { %v2447_v9 = vadd.f32 %v2442_v7, %v2437_v57  ;;  %v2415_v11 = vmul.f32 %v2917_v28, %v2403_v0  ;;  %vm2421_vm14 = vweird.f32 %v2917_v28 }
0x1114   :  { %vm2422_vm2 = vmor %vm2420_vm15, %vm2421_vm14  ;;  %2562 = vmatpush.msrb.mxu2 %v2535_v40 }
0x1115   :  { %v2416_v12 = vmul.f32 %v2917_v28, %v2415_v11  ;;  %2754 = vmatmul.msk.f32.vlgmr.msra.gmra.mxu1 %vm231_vm1, %v2447_v9  ;;  %v2805_v11 = vld [vmem:[%s3992_s23 + $0x1] ss:$0 sm:$0xff] }
0x1116   :  { %2563 = vmatpush.msrb.mxu2 %v2534_v41 }
0x1117   :  { %v2417_v13 = vmul.f32 0.5, %v2416_v12 }
0x1119   :  { %v2418_v14 = vsub.f32 1.5, %v2417_v13 }
0x111b   :  { %v2419_v8 = vmul.f32 %v2917_v28, %v2418_v14 }
0x111d   :  { %v2423_v17 = vsel %vm2422_vm2, %v2917_v28, %v2419_v8 }
0x111e   :  { %v2425_v18 = vmul.f32 %v2423_v17, %v2391_v42  ;;  %v2533_v42 = vld [vmem:[#allocation13 + $0x80] sm:$0xff] }
0x111f   :  { %2564 = vmatpush.msrb.mxu2 %v2533_v42 }
0x1120   :  { %v2438_v24 = vmul.f32 %v2434_v22, %v2425_v18 }
0x1122   :  { %v2448_v25 = vadd.f32 %v2444_v53, %v2438_v24 }
0x1124   :  { %2755 = vmatmul.msk.f32.gmra.mxu1 %vm231_vm1, %v2448_v25 }
0x1192   :  { %v2486_v44 = vpop.f32.mrf.mxu1 }
0x1193   :  { %v2487_v45 = vadd.f32 %v2804_v39, %v2486_v44  ;;  %v2806_v44 = vld [vmem:[%s3993_s24] ss:$0 sm:$0xff]  ;;  %s3152_s24 = smov [#allocation14]  }
0x1194   :  { %s2643_s4 = sshll.u32 %s3152_s24, 4  ;;  %s2644_s4 = int_to_ptr.vmem [resolvable:$true] %s2643_s4 }
0x1195   :  { %v2756_v46 = vmul.f32 -1.442695, %v2487_v45 }
0x1197   :  { %2918 = vpow2.f32 %v2756_v46 }
0x119d   :  { %v2919_v47 = vpop.eup %2918 }
0x119e   :  { %v2498_v48 = vadd.f32 1.0, %v2919_v47  ;;  %v2807_v47 = vld [vmem:[%s3994_s25] ss:$0 sm:$0xff]  ;;  %s2645_s25 = sshll.u32 %s3995_s26, 4  ;;  %s2646_s25 = int_to_ptr.hbm [resolvable:$true] %s2645_s25 }
0x11a0   :  { %2920 = vrcp.f32 %v2498_v48  ;;  %v2511_v51 = vand.u32 2147483648, %v2498_v48  ;;  %v2509_v54 = vand.u32 2147483647, %v2498_v48  ;;  %vm2505_vm4 = vweird.f32 %v2498_v48 }
0x11a1   :  { %v2489_v19 = vpop.f32.mrf.mxu1 }
0x11a2   :  { %v2490_v6 = vadd.f32 %v2804_v39, %v2489_v19  ;;  %v2512_v43 = vor.u32 1.1754944e-38, %v2511_v51  ;;  %vm2510_vm8 = vcmp.eq.f32.partialorder %v2509_v54, 8.507059e+37 }
0x11a4   :  { %v2757_v15 = vmul.f32 -1.442695, %v2490_v6 }
0x11a6   :  { %v2921_v50 = vpop.eup %2920  ;;  %2922 = vpow2.f32 %v2757_v15 }
0x11a7   :  { %v2501_v34 = vmul.f32 %v2921_v50, %v2498_v48  ;;  %vm2506_vm3 = vweird.f32 %v2921_v50 }
0x11a8   :  { %vm2507_vm5 = vmor %vm2505_vm4, %vm2506_vm3 }
0x11a9   :  { %v2502_v49 = vsub.f32 1.0, %v2501_v34 }
0x11ab   :  { %v2503_v52 = vmul.f32 %v2921_v50, %v2502_v49 }
0x11ac   :  { %v2923_v56 = vpop.eup %2922 }
0x11ad   :  { %v2504_v58 = vadd.f32 %v2921_v50, %v2503_v52  ;;  %v2499_v59 = vadd.f32 1.0, %v2923_v56 }
0x11af   :  { %v2508_v60 = vsel %vm2507_vm5, %v2921_v50, %v2504_v58  ;;  %2924 = vrcp.f32 %v2499_v59  ;;  %v2526_v1 = vand.u32 2147483648, %v2499_v59  ;;  %v2524_v3 = vand.u32 2147483647, %v2499_v59 }
0x11b0   :  { %v2513_v62 = vsel %vm2510_vm8, %v2512_v43, %v2508_v60  ;;  %vm2520_vm0 = vweird.f32 %v2499_v59 }
0x11b1   :  { %v2530_v23 = vmul.f32 %v2513_v62, %v2487_v45  ;;  %v2527_v57 = vor.u32 1.1754944e-38, %v2526_v1  ;;  %vm2525_vm7 = vcmp.eq.f32.partialorder %v2524_v3, 8.507059e+37 }
0x11b3   :  { %2565 = vmatmul.f32.vlgmr.msrb.gmra.mxu2 %v2530_v23 }
0x11b5   :  { %v2925_v63 = vpop.eup %2924 }
0x11b6   :  { %v2516_v0 = vmul.f32 %v2925_v63, %v2499_v59  ;;  %vm2521_vm12 = vweird.f32 %v2925_v63 }
0x11b7   :  { %vm2522_vm6 = vmor %vm2520_vm0, %vm2521_vm12 }
0x11b8   :  { %v2517_v20 = vsub.f32 1.0, %v2516_v0 }
0x11ba   :  { %v2518_v2 = vmul.f32 %v2925_v63, %v2517_v20 }
0x11bc   :  { %v2519_v55 = vadd.f32 %v2925_v63, %v2518_v2 }
0x11be   :  { %v2523_v28 = vsel %vm2522_vm6, %v2925_v63, %v2519_v55 }
0x11bf   :  { %v2528_v7 = vsel %vm2525_vm7, %v2527_v57, %v2523_v28 }
0x11c0   :  { %v2531_v9 = vmul.f32 %v2528_v7, %v2490_v6 }
0x11c2   :  { %2568 = vmatmul.f32.gmra.mxu2 %v2531_v9 }
0x1236   :  { %v2566_v12 = vpop.f32.mrf.mxu2 }
0x1237   :  { %v2572_v13 = vadd.f32 %v2566_v12, %v3910_v29 }
0x1239   :  { %v2579_v14 = vadd.f32 %v2805_v11, %v2572_v13 }
0x123b   :  { %v2581_v16 = vsel %vm231_vm1, %v2579_v14, 0.0 }
0x123c   :  { %2582 = vadd.xlane.f32.xlu2 %v2581_v16 }
0x1245   :  { %v2569_v8 = vpop.f32.mrf.mxu2 }
0x1246   :  { %v2573_v17 = vadd.f32 %v2569_v8, %v3915_v5 }
0x1248   :  { %v2580_v18 = vadd.f32 %v2805_v11, %v2573_v17 }
0x124a   :  { %v2584_v22 = vsel %vm231_vm1, %v2580_v18, 0.0 }
0x124b   :  { %2585 = vadd.xlane.f32.xlu2 %v2584_v22 }
0x12af   :  { %v2583_v24 = vpop.xlane.xlu2 %2582 }
0x12b0   :  { %v2587_v53 = vmul.f32 %v2583_v24, %v3378_v26 }
0x12b2   :  { %v2589_v25 = vsub.f32 %v2579_v14, %v2587_v53 }
0x12b4   :  { %v2591_v27 = vmul.f32 %v2589_v25, %v2589_v25 }
0x12b6   :  { %v2593_v61 = vsel %vm231_vm1, %v2591_v27, 0.0 }
0x12b7   :  { %2594 = vadd.xlane.f32.xlu0 %v2593_v61 }
0x12be   :  { %v2586_v29 = vpop.xlane.xlu2 %2585 }
0x12bf   :  { %v2588_v30 = vmul.f32 %v2586_v29, %v3378_v26 }
0x12c1   :  { %v2590_v31 = vsub.f32 %v2580_v18, %v2588_v30 }
0x12c3   :  { %v2592_v32 = vmul.f32 %v2590_v31, %v2590_v31 }
0x12c5   :  { %v2596_v35 = vsel %vm231_vm1, %v2592_v32, 0.0 }
0x12c6   :  { %2597 = vadd.xlane.f32.xlu2 %v2596_v35 }
0x132a   :  { %v2595_v5 = vpop.xlane.xlu0 %2594 }
0x132b   :  { %v2599_v10 = vmul.f32 %v2595_v5, %v3378_v26 }
0x132d   :  { %v2601_v33 = vadd.f32 1e-12, %v2599_v10 }
0x132f   :  { %2926 = vrsqrt.f32 %v2601_v33  ;;  %vm2609_vm10 = vweird.f32 %v2601_v33 }
0x1335   :  { %v2927_v21 = vpop.eup %2926 }
0x1336   :  { %v2604_v4 = vmul.f32 %v2927_v21, %v2601_v33  ;;  %vm2610_vm9 = vweird.f32 %v2927_v21 }
0x1337   :  { %vm2611_vm11 = vmor %vm2609_vm10, %vm2610_vm9 }
0x1338   :  { %v2605_v37 = vmul.f32 %v2927_v21, %v2604_v4 }
0x1339   :  { %v2598_v36 = vpop.xlane.xlu2 %2597 }
0x133a   :  { %v2606_v38 = vmul.f32 0.5, %v2605_v37  ;;  %v2600_v39 = vmul.f32 %v2598_v36, %v3378_v26 }
0x133c   :  { %v2607_v40 = vsub.f32 1.5, %v2606_v38  ;;  %v2602_v41 = vadd.f32 1e-12, %v2600_v39 }
0x133e   :  { %v2608_v42 = vmul.f32 %v2927_v21, %v2607_v40  ;;  %2928 = vrsqrt.f32 %v2602_v41  ;;  %vm2619_vm14 = vweird.f32 %v2602_v41 }
0x1340   :  { %v2612_v45 = vsel %vm2611_vm11, %v2927_v21, %v2608_v42 }
0x1341   :  { %v2623_v46 = vmul.f32 %v2612_v45, %v2589_v25 }
0x1343   :  { %v2629_v48 = vmul.f32 %v2806_v44, %v2623_v46 }
0x1344   :  { %v2929_v19 = vpop.eup %2928 }
0x1345   :  { %v2614_v26 = vmul.f32 %v2929_v19, %v2602_v41  ;;  %v2635_v6 = vadd.f32 %v2807_v47, %v2629_v48  ;;  %vm2620_vm13 = vweird.f32 %v2929_v19 }
0x1346   :  { %vm2621_vm15 = vmor %vm2619_vm14, %vm2620_vm13 }
0x1347   :  { %v2615_v15 = vmul.f32 %v2929_v19, %v2614_v26  ;;  %2637 = vst.msk [vmem:[#allocation14] sm:$0xff] %vm231_vm1, %v2635_v6 }
0x1349   :  { %v2616_v50 = vmul.f32 0.5, %v2615_v15 }
0x134b   :  { %v2617_v34 = vsub.f32 1.5, %v2616_v50 }
0x134d   :  { %v2618_v49 = vmul.f32 %v2929_v19, %v2617_v34 }
0x134f   :  { %v2622_v51 = vsel %vm2621_vm15, %v2929_v19, %v2618_v49 }
0x1350   :  { %v2624_v52 = vmul.f32 %v2622_v51, %v2590_v31 }
0x1352   :  { %v2630_v54 = vmul.f32 %v2806_v44, %v2624_v52 }
0x1354   :  { %v2636_v56 = vadd.f32 %v2807_v47, %v2630_v54 }
0x1356   :  { %2638 = vst.msk [vmem:[#allocation14 + $0x8] sm:$0xff] %vm231_vm1, %v2636_v56 }
0x1357   :  { %2651 = dma.vmem_to_hbm [thread:$0]  %s2644_s4, 256, %s2646_s25, [#allocation4], %s3134_s9, %s3134_s9, %s3135_s30  }
0x1358   :  { %3131 = dma.done.wait [#allocation4], 256  }
0x1359   :  { %3132 = vsyncadd [#allocation4], 4294967040 }
0x135a   :  { %2656 = vsyncpa [#allocation3], 1 }
0x135b   :  { %2657 = vsyncpa [#allocation6], 1 }
0x135c   :  { %2658 = vsyncpa [#allocation9], 1 }
0x135d   :  { %2659 = vsyncpa [#allocation12], 1 }
0x135e   :  { %2660 = vsyncpa [#allocation4], 1 }

</bundles_post_ra>
